<compile_context>
chip_gen: v5e
topology: v5e:2x2
jax: 0.10.0
libtpu: 0.0.40
codegen_flags: <defaults>
</compile_context>

<pallas_src>
import functools

import jax
import jax.numpy as jnp
from jax.experimental import pallas as pl
from jax.experimental.pallas import tpu as pltpu


FEATURESIZE = 100
FEAT_PAD = 128  # 100 padded up to one full lane tile


def _round_up(x, m):
    return ((x + m - 1) // m) * m


def discriminator_kernel(
    d1_ref, d2_ref,
    pw1, pb1, pw2, pb2, pw3, pb3,            # model_prob weights (bf16) / biases (f32)
    lw1, lb1, lw2, lb2,                      # model_label
    cw1a, cw1b, cb1, cw2, cb2, cw3_row, cb3,  # model_concatenation (cw1 pre-split)
    out_ref,
):
    f32 = jnp.float32
    bf16 = jnp.bfloat16

    def linear(x, w_ref, b_ref):
        # bf16 x bf16 on the MXU, f32 accumulation, f32 bias/epilogue.
        return jnp.dot(x.astype(bf16), w_ref[...],
                       preferred_element_type=f32) + b_ref[...]

    # ---- model_prob: (128) -> 1024 -> 512 -> 64 ----
    h = jnp.maximum(linear(d1_ref[...], pw1, pb1), 0.0)
    h = jnp.maximum(linear(h, pw2, pb2), 0.0)
    feat1 = linear(h, pw3, pb3)

    # ---- model_label: (128) -> 512 -> 64 ----
    g = jnp.maximum(linear(d2_ref[...], lw1, lb1), 0.0)
    feat2 = linear(g, lw2, lb2)

    # ---- model_concatenation: 128 -> 256 -> 64 -> 1, Sigmoid ----
    # cat([feat1, feat2], 1) @ cw1 == feat1 @ cw1[:64] + feat2 @ cw1[64:]
    z = (jnp.dot(feat1.astype(bf16), cw1a[...], preferred_element_type=f32)
         + jnp.dot(feat2.astype(bf16), cw1b[...], preferred_element_type=f32)
         + cb1[...])
    z = jnp.maximum(z, 0.0)
    z = jnp.maximum(linear(z, cw2, cb2), 0.0)

    # Final 64 -> 1 layer as multiply + lane reduction (avoids an N=1 MXU
    # matmul; output store is a 1-lane column either way).
    logit = jnp.sum(z * cw3_row[...], axis=-1, keepdims=True) + cb3[...]
    out_ref[...] = jax.nn.sigmoid(logit)


def init_params(key):
    """Deterministic params, PyTorch-default-like uniform(-1/sqrt(fan_in), 1/sqrt(fan_in)).
    Weights stored as [in, out] (transposed vs torch), biases as [1, N]."""
    shapes = [
        # model_prob
        (100, 1024), (1024,), (1024, 512), (512,), (512, 64), (64,),
        # model_label
        (100, 512), (512,), (512, 64), (64,),
        # model_concatenation
        (128, 256), (256,), (256, 64), (64,), (64, 1), (1,),
    ]
    params = []
    for shp in shapes:
        key, sub = jax.random.split(key)
        fan_in = shp[0] if len(shp) == 2 else params[-1].shape[0]
        bound = 1.0 / (fan_in ** 0.5)
        params.append(
            jax.random.uniform(sub, shp, dtype=jnp.float32, minval=-bound, maxval=bound)
        )
    # Biases to [1, N] so everything handed to the kernel is 2D (lane-major).
    params = [p if p.ndim == 2 else p.reshape(1, -1) for p in params]
    return params


@functools.partial(jax.jit, static_argnames=("tb",))
def discriminator_forward(data_1, data_2, params, *, tb=512):
    B, F = data_1.shape
    (pw1, pb1, pw2, pb2, pw3, pb3,
     lw1, lb1, lw2, lb2,
     cw1, cb1, cw2, cb2, cw3, cb3) = params

    bf16 = jnp.bfloat16

    # --- feature padding: 100 -> 128 (inputs and first-layer weight rows) ---
    d1 = jnp.pad(data_1, ((0, 0), (0, FEAT_PAD - F)))
    d2 = jnp.pad(data_2, ((0, 0), (0, FEAT_PAD - F)))
    pw1p = jnp.pad(pw1, ((0, FEAT_PAD - F), (0, 0)))
    lw1p = jnp.pad(lw1, ((0, FEAT_PAD - F), (0, 0)))

    # --- eliminate the lane-concat: split cw1 into the two 64-row halves ---
    cw1a, cw1b = cw1[:64, :], cw1[64:, :]
    # Final layer weight as a [1, 64] row (used via mul + lane-reduce).
    cw3_row = cw3.reshape(1, 64)

    # --- bf16 weights, f32 biases ---
    weights = dict(
        pw1=pw1p.astype(bf16), pw2=pw2.astype(bf16), pw3=pw3.astype(bf16),
        lw1=lw1p.astype(bf16), lw2=lw2.astype(bf16),
        cw1a=cw1a.astype(bf16), cw1b=cw1b.astype(bf16), cw2=cw2.astype(bf16),
    )

    # --- batch tiling: pad B to a multiple of the tile ---
    TB = min(tb, _round_up(B, 8))
    Bp = _round_up(B, TB)
    if Bp != B:
        d1 = jnp.pad(d1, ((0, Bp - B), (0, 0)))
        d2 = jnp.pad(d2, ((0, Bp - B), (0, 0)))
    grid = (Bp // TB,)

    # Operands in kernel order.
    param_list = [
        weights["pw1"], pb1, weights["pw2"], pb2, weights["pw3"], pb3,
        weights["lw1"], lb1, weights["lw2"], lb2,
        weights["cw1a"], weights["cw1b"], cb1, weights["cw2"], cb2, cw3_row, cb3,
    ]

    data_spec = pl.BlockSpec((TB, FEAT_PAD), lambda i: (i, 0))
    out_spec = pl.BlockSpec((TB, 1), lambda i: (i, 0))

    def const_spec(p):
        # Full-array block, same block every grid step -> stays resident in VMEM.
        return pl.BlockSpec(p.shape, lambda i: (0, 0))

    in_specs = [data_spec, data_spec] + [const_spec(p) for p in param_list]

    out = pl.pallas_call(
        discriminator_kernel,
        out_shape=jax.ShapeDtypeStruct((Bp, 1), jnp.float32),
        grid=grid,
        in_specs=in_specs,
        out_specs=out_spec,
        compiler_params=pltpu.CompilerParams(
            dimension_semantics=("parallel",),
            vmem_limit_bytes=32 * 1024 * 1024,
        ),
    )(d1, d2, *param_list)

    return out[:B]


def _reference(data_1, data_2, params):
    """Pure-JAX reference with the same bf16-weight / f32-accumulate math."""
    (pw1, pb1, pw2, pb2, pw3, pb3,
     lw1, lb1, lw2, lb2,
     cw1, cb1, cw2, cb2, cw3, cb3) = params
    bf16 = jnp.bfloat16

    def lin(x, w, b):
        return jnp.dot(x.astype(bf16), w.astype(bf16),
                       preferred_element_type=jnp.float32) + b

    h = jax.nn.relu(lin(data_1, pw1, pb1))
    h = jax.nn.relu(lin(h, pw2, pb2))
    f1 = lin(h, pw3, pb3)
    g = jax.nn.relu(lin(data_2, lw1, lb1))
    f2 = lin(g, lw2, lb2)
    feat = jnp.concatenate([f1, f2], axis=1)
    z = jax.nn.relu(lin(feat, cw1, cb1))
    z = jax.nn.relu(lin(z, cw2, cb2))
    logit = jnp.dot(z, cw3) + cb3
    return jax.nn.sigmoid(logit)


if __name__ == "__main__":
    key = jax.random.PRNGKey(0)
    k1, k2, kp = jax.random.split(key, 3)

    B = 2
    data_1 = jax.random.normal(k1, (B, FEATURESIZE), dtype=jnp.float32)
    data_2 = jax.random.normal(k2, (B, FEATURESIZE), dtype=jnp.float32)

    params = init_params(kp)

    validity = discriminator_forward(data_1, data_2, params)
    validity = jax.block_until_ready(validity)

    assert validity.shape == (B, 1)
    assert bool(jnp.all((validity >= 0.0) & (validity <= 1.0)))

    ref = _reference(data_1, data_2, params)
    assert bool(jnp.allclose(validity, ref, atol=1e-3, rtol=1e-3)), (
        f"kernel {validity} vs ref {ref}"
    )
    print("KERNEL_OK")
</pallas_src>

<mosaic_0001>
module attributes {stable_mosaic.version = 11 : i64} {
  func.func @discriminator_kernel(%arg0: i32, %arg1: memref<8x128xf32, #tpu.memory_space<vmem>>, %arg2: memref<8x128xf32, #tpu.memory_space<vmem>>, %arg3: memref<128x1024xbf16, #tpu.memory_space<vmem>>, %arg4: memref<1x1024xf32, #tpu.memory_space<vmem>>, %arg5: memref<1024x512xbf16, #tpu.memory_space<vmem>>, %arg6: memref<1x512xf32, #tpu.memory_space<vmem>>, %arg7: memref<512x64xbf16, #tpu.memory_space<vmem>>, %arg8: memref<1x64xf32, #tpu.memory_space<vmem>>, %arg9: memref<128x512xbf16, #tpu.memory_space<vmem>>, %arg10: memref<1x512xf32, #tpu.memory_space<vmem>>, %arg11: memref<512x64xbf16, #tpu.memory_space<vmem>>, %arg12: memref<1x64xf32, #tpu.memory_space<vmem>>, %arg13: memref<64x256xbf16, #tpu.memory_space<vmem>>, %arg14: memref<64x256xbf16, #tpu.memory_space<vmem>>, %arg15: memref<1x256xf32, #tpu.memory_space<vmem>>, %arg16: memref<256x64xbf16, #tpu.memory_space<vmem>>, %arg17: memref<1x64xf32, #tpu.memory_space<vmem>>, %arg18: memref<1x64xf32, #tpu.memory_space<vmem>>, %arg19: memref<1x1xf32, #tpu.memory_space<vmem>>, %arg20: memref<8x1xf32, #tpu.memory_space<vmem>>) attributes {dimension_semantics = [#tpu.dimension_semantics<parallel>], iteration_bounds = array<i64: 1>, scalar_prefetch = 0 : i64, scratch_operands = 0 : i64, tpu.core_type = #tpu.core_type<tc>, window_params = [{transform_indices = @transform_0, window_bounds = array<i64: 8, 128>}, {transform_indices = @transform_1, window_bounds = array<i64: 8, 128>}, {pipeline_mode = #tpu.pipeline_mode<synchronous>, transform_indices = @transform_2, window_bounds = array<i64: 128, 1024>}, {pipeline_mode = #tpu.pipeline_mode<synchronous>, transform_indices = @transform_3, window_bounds = array<i64: 1, 1024>}, {pipeline_mode = #tpu.pipeline_mode<synchronous>, transform_indices = @transform_4, window_bounds = array<i64: 1024, 512>}, {pipeline_mode = #tpu.pipeline_mode<synchronous>, transform_indices = @transform_5, window_bounds = array<i64: 1, 512>}, {pipeline_mode = #tpu.pipeline_mode<synchronous>, transform_indices = @transform_6, window_bounds = array<i64: 512, 64>}, {pipeline_mode = #tpu.pipeline_mode<synchronous>, transform_indices = @transform_7, window_bounds = array<i64: 1, 64>}, {pipeline_mode = #tpu.pipeline_mode<synchronous>, transform_indices = @transform_8, window_bounds = array<i64: 128, 512>}, {pipeline_mode = #tpu.pipeline_mode<synchronous>, transform_indices = @transform_9, window_bounds = array<i64: 1, 512>}, {pipeline_mode = #tpu.pipeline_mode<synchronous>, transform_indices = @transform_10, window_bounds = array<i64: 512, 64>}, {pipeline_mode = #tpu.pipeline_mode<synchronous>, transform_indices = @transform_11, window_bounds = array<i64: 1, 64>}, {pipeline_mode = #tpu.pipeline_mode<synchronous>, transform_indices = @transform_12, window_bounds = array<i64: 64, 256>}, {pipeline_mode = #tpu.pipeline_mode<synchronous>, transform_indices = @transform_13, window_bounds = array<i64: 64, 256>}, {pipeline_mode = #tpu.pipeline_mode<synchronous>, transform_indices = @transform_14, window_bounds = array<i64: 1, 256>}, {pipeline_mode = #tpu.pipeline_mode<synchronous>, transform_indices = @transform_15, window_bounds = array<i64: 256, 64>}, {pipeline_mode = #tpu.pipeline_mode<synchronous>, transform_indices = @transform_16, window_bounds = array<i64: 1, 64>}, {pipeline_mode = #tpu.pipeline_mode<synchronous>, transform_indices = @transform_17, window_bounds = array<i64: 1, 64>}, {pipeline_mode = #tpu.pipeline_mode<synchronous>, transform_indices = @transform_18, window_bounds = array<i64: 1, 1>}, {transform_indices = @transform_19, window_bounds = array<i64: 8, 1>}]} {
    %c0 = arith.constant 0 : index
    %c0_0 = arith.constant 0 : index
    %0 = vector.load %arg1[%c0, %c0_0] : memref<8x128xf32, #tpu.memory_space<vmem>>, vector<8x128xf32>
    %1 = arith.truncf %0 : vector<8x128xf32> to vector<8x128xbf16>
    %c0_1 = arith.constant 0 : index
    %c0_2 = arith.constant 0 : index
    %2 = vector.load %arg3[%c0_1, %c0_2] : memref<128x1024xbf16, #tpu.memory_space<vmem>>, vector<128x1024xbf16>
    %cst = arith.constant dense<0.000000e+00> : vector<8x1024xf32>
    %3 = tpu.matmul %1, %2, %cst {dimension_numbers = #tpu.dot_dimension_numbers<[1], [0], [0], [1], [0, 0, 1, 1], [], []>} : vector<8x128xbf16>, vector<128x1024xbf16>, vector<8x1024xf32> -> vector<8x1024xf32>
    %c0_3 = arith.constant 0 : index
    %c0_4 = arith.constant 0 : index
    %4 = vector.load %arg4[%c0_3, %c0_4] : memref<1x1024xf32, #tpu.memory_space<vmem>>, vector<1x1024xf32>
    %5 = vector.broadcast %4 : vector<1x1024xf32> to vector<8x1024xf32>
    %6 = arith.addf %3, %5 : vector<8x1024xf32>
    %cst_5 = arith.constant 0.000000e+00 : f32
    %7 = vector.broadcast %cst_5 : f32 to vector<8x1024xf32>
    %8 = arith.maximumf %6, %7 : vector<8x1024xf32>
    %9 = arith.truncf %8 : vector<8x1024xf32> to vector<8x1024xbf16>
    %c0_6 = arith.constant 0 : index
    %c0_7 = arith.constant 0 : index
    %10 = vector.load %arg5[%c0_6, %c0_7] : memref<1024x512xbf16, #tpu.memory_space<vmem>>, vector<1024x512xbf16>
    %cst_8 = arith.constant dense<0.000000e+00> : vector<8x512xf32>
    %11 = tpu.matmul %9, %10, %cst_8 {dimension_numbers = #tpu.dot_dimension_numbers<[1], [0], [0], [1], [0, 0, 1, 1], [], []>} : vector<8x1024xbf16>, vector<1024x512xbf16>, vector<8x512xf32> -> vector<8x512xf32>
    %c0_9 = arith.constant 0 : index
    %c0_10 = arith.constant 0 : index
    %12 = vector.load %arg6[%c0_9, %c0_10] : memref<1x512xf32, #tpu.memory_space<vmem>>, vector<1x512xf32>
    %13 = vector.broadcast %12 : vector<1x512xf32> to vector<8x512xf32>
    %14 = arith.addf %11, %13 : vector<8x512xf32>
    %cst_11 = arith.constant 0.000000e+00 : f32
    %15 = vector.broadcast %cst_11 : f32 to vector<8x512xf32>
    %16 = arith.maximumf %14, %15 : vector<8x512xf32>
    %17 = arith.truncf %16 : vector<8x512xf32> to vector<8x512xbf16>
    %c0_12 = arith.constant 0 : index
    %c0_13 = arith.constant 0 : index
    %18 = vector.load %arg7[%c0_12, %c0_13] : memref<512x64xbf16, #tpu.memory_space<vmem>>, vector<512x64xbf16>
    %cst_14 = arith.constant dense<0.000000e+00> : vector<8x64xf32>
    %19 = tpu.matmul %17, %18, %cst_14 {dimension_numbers = #tpu.dot_dimension_numbers<[1], [0], [0], [1], [0, 0, 1, 1], [], []>} : vector<8x512xbf16>, vector<512x64xbf16>, vector<8x64xf32> -> vector<8x64xf32>
    %c0_15 = arith.constant 0 : index
    %c0_16 = arith.constant 0 : index
    %20 = vector.load %arg8[%c0_15, %c0_16] : memref<1x64xf32, #tpu.memory_space<vmem>>, vector<1x64xf32>
    %21 = vector.broadcast %20 : vector<1x64xf32> to vector<8x64xf32>
    %22 = arith.addf %19, %21 : vector<8x64xf32>
    %c0_17 = arith.constant 0 : index
    %c0_18 = arith.constant 0 : index
    %23 = vector.load %arg2[%c0_17, %c0_18] : memref<8x128xf32, #tpu.memory_space<vmem>>, vector<8x128xf32>
    %24 = arith.truncf %23 : vector<8x128xf32> to vector<8x128xbf16>
    %c0_19 = arith.constant 0 : index
    %c0_20 = arith.constant 0 : index
    %25 = vector.load %arg9[%c0_19, %c0_20] : memref<128x512xbf16, #tpu.memory_space<vmem>>, vector<128x512xbf16>
    %cst_21 = arith.constant dense<0.000000e+00> : vector<8x512xf32>
    %26 = tpu.matmul %24, %25, %cst_21 {dimension_numbers = #tpu.dot_dimension_numbers<[1], [0], [0], [1], [0, 0, 1, 1], [], []>} : vector<8x128xbf16>, vector<128x512xbf16>, vector<8x512xf32> -> vector<8x512xf32>
    %c0_22 = arith.constant 0 : index
    %c0_23 = arith.constant 0 : index
    %27 = vector.load %arg10[%c0_22, %c0_23] : memref<1x512xf32, #tpu.memory_space<vmem>>, vector<1x512xf32>
    %28 = vector.broadcast %27 : vector<1x512xf32> to vector<8x512xf32>
    %29 = arith.addf %26, %28 : vector<8x512xf32>
    %cst_24 = arith.constant 0.000000e+00 : f32
    %30 = vector.broadcast %cst_24 : f32 to vector<8x512xf32>
    %31 = arith.maximumf %29, %30 : vector<8x512xf32>
    %32 = arith.truncf %31 : vector<8x512xf32> to vector<8x512xbf16>
    %c0_25 = arith.constant 0 : index
    %c0_26 = arith.constant 0 : index
    %33 = vector.load %arg11[%c0_25, %c0_26] : memref<512x64xbf16, #tpu.memory_space<vmem>>, vector<512x64xbf16>
    %cst_27 = arith.constant dense<0.000000e+00> : vector<8x64xf32>
    %34 = tpu.matmul %32, %33, %cst_27 {dimension_numbers = #tpu.dot_dimension_numbers<[1], [0], [0], [1], [0, 0, 1, 1], [], []>} : vector<8x512xbf16>, vector<512x64xbf16>, vector<8x64xf32> -> vector<8x64xf32>
    %c0_28 = arith.constant 0 : index
    %c0_29 = arith.constant 0 : index
    %35 = vector.load %arg12[%c0_28, %c0_29] : memref<1x64xf32, #tpu.memory_space<vmem>>, vector<1x64xf32>
    %36 = vector.broadcast %35 : vector<1x64xf32> to vector<8x64xf32>
    %37 = arith.addf %34, %36 : vector<8x64xf32>
    %38 = arith.truncf %22 : vector<8x64xf32> to vector<8x64xbf16>
    %c0_30 = arith.constant 0 : index
    %c0_31 = arith.constant 0 : index
    %39 = vector.load %arg13[%c0_30, %c0_31] : memref<64x256xbf16, #tpu.memory_space<vmem>>, vector<64x256xbf16>
    %cst_32 = arith.constant dense<0.000000e+00> : vector<8x256xf32>
    %40 = tpu.matmul %38, %39, %cst_32 {dimension_numbers = #tpu.dot_dimension_numbers<[1], [0], [0], [1], [0, 0, 1, 1], [], []>} : vector<8x64xbf16>, vector<64x256xbf16>, vector<8x256xf32> -> vector<8x256xf32>
    %41 = arith.truncf %37 : vector<8x64xf32> to vector<8x64xbf16>
    %c0_33 = arith.constant 0 : index
    %c0_34 = arith.constant 0 : index
    %42 = vector.load %arg14[%c0_33, %c0_34] : memref<64x256xbf16, #tpu.memory_space<vmem>>, vector<64x256xbf16>
    %cst_35 = arith.constant dense<0.000000e+00> : vector<8x256xf32>
    %43 = tpu.matmul %41, %42, %cst_35 {dimension_numbers = #tpu.dot_dimension_numbers<[1], [0], [0], [1], [0, 0, 1, 1], [], []>} : vector<8x64xbf16>, vector<64x256xbf16>, vector<8x256xf32> -> vector<8x256xf32>
    %44 = arith.addf %40, %43 : vector<8x256xf32>
    %c0_36 = arith.constant 0 : index
    %c0_37 = arith.constant 0 : index
    %45 = vector.load %arg15[%c0_36, %c0_37] : memref<1x256xf32, #tpu.memory_space<vmem>>, vector<1x256xf32>
    %46 = vector.broadcast %45 : vector<1x256xf32> to vector<8x256xf32>
    %47 = arith.addf %44, %46 : vector<8x256xf32>
    %cst_38 = arith.constant 0.000000e+00 : f32
    %48 = vector.broadcast %cst_38 : f32 to vector<8x256xf32>
    %49 = arith.maximumf %47, %48 : vector<8x256xf32>
    %50 = arith.truncf %49 : vector<8x256xf32> to vector<8x256xbf16>
    %c0_39 = arith.constant 0 : index
    %c0_40 = arith.constant 0 : index
    %51 = vector.load %arg16[%c0_39, %c0_40] : memref<256x64xbf16, #tpu.memory_space<vmem>>, vector<256x64xbf16>
    %cst_41 = arith.constant dense<0.000000e+00> : vector<8x64xf32>
    %52 = tpu.matmul %50, %51, %cst_41 {dimension_numbers = #tpu.dot_dimension_numbers<[1], [0], [0], [1], [0, 0, 1, 1], [], []>} : vector<8x256xbf16>, vector<256x64xbf16>, vector<8x64xf32> -> vector<8x64xf32>
    %c0_42 = arith.constant 0 : index
    %c0_43 = arith.constant 0 : index
    %53 = vector.load %arg17[%c0_42, %c0_43] : memref<1x64xf32, #tpu.memory_space<vmem>>, vector<1x64xf32>
    %54 = vector.broadcast %53 : vector<1x64xf32> to vector<8x64xf32>
    %55 = arith.addf %52, %54 : vector<8x64xf32>
    %cst_44 = arith.constant 0.000000e+00 : f32
    %56 = vector.broadcast %cst_44 : f32 to vector<8x64xf32>
    %57 = arith.maximumf %55, %56 : vector<8x64xf32>
    %c0_45 = arith.constant 0 : index
    %c0_46 = arith.constant 0 : index
    %58 = vector.load %arg18[%c0_45, %c0_46] : memref<1x64xf32, #tpu.memory_space<vmem>>, vector<1x64xf32>
    %59 = vector.broadcast %58 : vector<1x64xf32> to vector<8x64xf32>
    %60 = arith.mulf %57, %59 : vector<8x64xf32>
    %cst_47 = arith.constant dense<0.000000e+00> : vector<8xf32>
    %61 = vector.multi_reduction <add>, %60, %cst_47 [1] : vector<8x64xf32> to vector<8xf32>
    %62 = vector.shape_cast %61 : vector<8xf32> to vector<8x1xf32>
    %c0_48 = arith.constant 0 : index
    %c0_49 = arith.constant 0 : index
    %63 = vector.load %arg19[%c0_48, %c0_49] : memref<1x1xf32, #tpu.memory_space<vmem>>, vector<1x1xf32>
    %64 = vector.broadcast %63 : vector<1x1xf32> to vector<8x1xf32>
    %65 = arith.addf %62, %64 : vector<8x1xf32>
    %66 = arith.negf %65 : vector<8x1xf32>
    %67 = math.exp %66 : vector<8x1xf32>
    %cst_50 = arith.constant 1.000000e+00 : f32
    %68 = vector.broadcast %cst_50 : f32 to vector<8x1xf32>
    %69 = arith.addf %68, %67 : vector<8x1xf32>
    %70 = arith.divf %68, %69 : vector<8x1xf32>
    %c0_51 = arith.constant 0 : index
    %c0_52 = arith.constant 0 : index
    %71 = vector.load %arg20[%c0_51, %c0_52] : memref<8x1xf32, #tpu.memory_space<vmem>>, vector<8x1xf32>
    tpu.vector_store %arg20[%c0_51, %c0_52], %70 {strides = array<i32>} : memref<8x1xf32, #tpu.memory_space<vmem>>, vector<8x1xf32>,
    return
  }
  func.func @transform_0(%arg0: i32) -> (i32, i32) {
    %c0_i32 = arith.constant 0 : i32
    %c0_i32_0 = arith.constant 0 : i32
    return %arg0, %c0_i32 : i32, i32
  }
  func.func @transform_1(%arg0: i32) -> (i32, i32) {
    %c0_i32 = arith.constant 0 : i32
    %c0_i32_0 = arith.constant 0 : i32
    return %arg0, %c0_i32 : i32, i32
  }
  func.func @transform_2(%arg0: i32) -> (i32, i32) {
    %c0_i32 = arith.constant 0 : i32
    %c0_i32_0 = arith.constant 0 : i32
    %c0_i32_1 = arith.constant 0 : i32
    return %c0_i32, %c0_i32_0 : i32, i32
  }
  func.func @transform_3(%arg0: i32) -> (i32, i32) {
    %c0_i32 = arith.constant 0 : i32
    %c0_i32_0 = arith.constant 0 : i32
    %c0_i32_1 = arith.constant 0 : i32
    return %c0_i32, %c0_i32_0 : i32, i32
  }
  func.func @transform_4(%arg0: i32) -> (i32, i32) {
    %c0_i32 = arith.constant 0 : i32
    %c0_i32_0 = arith.constant 0 : i32
    %c0_i32_1 = arith.constant 0 : i32
    return %c0_i32, %c0_i32_0 : i32, i32
  }
  func.func @transform_5(%arg0: i32) -> (i32, i32) {
    %c0_i32 = arith.constant 0 : i32
    %c0_i32_0 = arith.constant 0 : i32
    %c0_i32_1 = arith.constant 0 : i32
    return %c0_i32, %c0_i32_0 : i32, i32
  }
  func.func @transform_6(%arg0: i32) -> (i32, i32) {
    %c0_i32 = arith.constant 0 : i32
    %c0_i32_0 = arith.constant 0 : i32
    %c0_i32_1 = arith.constant 0 : i32
    return %c0_i32, %c0_i32_0 : i32, i32
  }
  func.func @transform_7(%arg0: i32) -> (i32, i32) {
    %c0_i32 = arith.constant 0 : i32
    %c0_i32_0 = arith.constant 0 : i32
    %c0_i32_1 = arith.constant 0 : i32
    return %c0_i32, %c0_i32_0 : i32, i32
  }
  func.func @transform_8(%arg0: i32) -> (i32, i32) {
    %c0_i32 = arith.constant 0 : i32
    %c0_i32_0 = arith.constant 0 : i32
    %c0_i32_1 = arith.constant 0 : i32
    return %c0_i32, %c0_i32_0 : i32, i32
  }
  func.func @transform_9(%arg0: i32) -> (i32, i32) {
    %c0_i32 = arith.constant 0 : i32
    %c0_i32_0 = arith.constant 0 : i32
    %c0_i32_1 = arith.constant 0 : i32
    return %c0_i32, %c0_i32_0 : i32, i32
  }
  func.func @transform_10(%arg0: i32) -> (i32, i32) {
    %c0_i32 = arith.constant 0 : i32
    %c0_i32_0 = arith.constant 0 : i32
    %c0_i32_1 = arith.constant 0 : i32
    return %c0_i32, %c0_i32_0 : i32, i32
  }
  func.func @transform_11(%arg0: i32) -> (i32, i32) {
    %c0_i32 = arith.constant 0 : i32
    %c0_i32_0 = arith.constant 0 : i32
    %c0_i32_1 = arith.constant 0 : i32
    return %c0_i32, %c0_i32_0 : i32, i32
  }
  func.func @transform_12(%arg0: i32) -> (i32, i32) {
    %c0_i32 = arith.constant 0 : i32
    %c0_i32_0 = arith.constant 0 : i32
    %c0_i32_1 = arith.constant 0 : i32
    return %c0_i32, %c0_i32_0 : i32, i32
  }
  func.func @transform_13(%arg0: i32) -> (i32, i32) {
    %c0_i32 = arith.constant 0 : i32
    %c0_i32_0 = arith.constant 0 : i32
    %c0_i32_1 = arith.constant 0 : i32
    return %c0_i32, %c0_i32_0 : i32, i32
  }
  func.func @transform_14(%arg0: i32) -> (i32, i32) {
    %c0_i32 = arith.constant 0 : i32
    %c0_i32_0 = arith.constant 0 : i32
    %c0_i32_1 = arith.constant 0 : i32
    return %c0_i32, %c0_i32_0 : i32, i32
  }
  func.func @transform_15(%arg0: i32) -> (i32, i32) {
    %c0_i32 = arith.constant 0 : i32
    %c0_i32_0 = arith.constant 0 : i32
    %c0_i32_1 = arith.constant 0 : i32
    return %c0_i32, %c0_i32_0 : i32, i32
  }
  func.func @transform_16(%arg0: i32) -> (i32, i32) {
    %c0_i32 = arith.constant 0 : i32
    %c0_i32_0 = arith.constant 0 : i32
    %c0_i32_1 = arith.constant 0 : i32
    return %c0_i32, %c0_i32_0 : i32, i32
  }
  func.func @transform_17(%arg0: i32) -> (i32, i32) {
    %c0_i32 = arith.constant 0 : i32
    %c0_i32_0 = arith.constant 0 : i32
    %c0_i32_1 = arith.constant 0 : i32
    return %c0_i32, %c0_i32_0 : i32, i32
  }
  func.func @transform_18(%arg0: i32) -> (i32, i32) {
    %c0_i32 = arith.constant 0 : i32
    %c0_i32_0 = arith.constant 0 : i32
    %c0_i32_1 = arith.constant 0 : i32
    return %c0_i32, %c0_i32_0 : i32, i32
  }
  func.func @transform_19(%arg0: i32) -> (i32, i32) {
    %c0_i32 = arith.constant 0 : i32
    %c0_i32_0 = arith.constant 0 : i32
    return %arg0, %c0_i32 : i32, i32
  }
}

</mosaic_0001>

<bundles_post_ra>
// kernel: discriminator_forward.1
= control target key start
LH: loop header
LB: loop body
LE: loop exit
PB: predicated region body
PF: predicated region fallthrough
CT: control target
= control target key end

     0   :  { %vm3505_vm0 = vcmask 523264   ;;  %vm3807_vm4 = vcmask 7168   ;;  %s8770_s2 = inlined_call_operand.vmem [shape: bf16[128,1024], index: 2, kind: input, shape index: {}]   ;;  %s8771_s0 = inlined_call_operand.vmem [shape: f32[8,128], index: 0, kind: input, shape index: {}]   ;;  %s8772_s4 = inlined_call_operand.vmem [shape: bf16[1024,512], index: 4, kind: input, shape index: {}]   ;;  %s8773_s3 = inlined_call_operand.vmem [shape: f32[1,1024], index: 3, kind: input, shape index: {}]   ;;  %s8774_s5 = inlined_call_operand.vmem [shape: f32[1,512], index: 5, kind: input, shape index: {}]   ;;  %s8775_s6 = inlined_call_operand.vmem [shape: bf16[512,64], index: 6, kind: input, shape index: {}]   ;;  %s8776_s7 = inlined_call_operand.vmem [shape: f32[1,64], index: 7, kind: input, shape index: {}]   ;;  %s8777_s8 = inlined_call_operand.vmem [shape: bf16[128,512], index: 8, kind: input, shape index: {}]   ;;  %s8778_s1 = inlined_call_operand.vmem [shape: f32[8,128], index: 1, kind: input, shape index: {}]   ;;  %s8779_s11 = inlined_call_operand.vmem [shape: f32[1,64], index: 11, kind: input, shape index: {}]   ;;  %s8780_s10 = inlined_call_operand.vmem [shape: bf16[512,64], index: 10, kind: input, shape index: {}]   ;;  %s8781_s9 = inlined_call_operand.vmem [shape: f32[1,512], index: 9, kind: input, shape index: {}]   ;;  %s8782_s13 = inlined_call_operand.vmem [shape: bf16[64,256], index: 13, kind: input, shape index: {}]   ;;  %s8783_s12 = inlined_call_operand.vmem [shape: bf16[64,256], index: 12, kind: input, shape index: {}]   ;;  %s8784_s15 = inlined_call_operand.vmem [shape: bf16[256,64], index: 15, kind: input, shape index: {}]   ;;  %s8785_s16 = inlined_call_operand.vmem [shape: f32[1,64], index: 16, kind: input, shape index: {}]   ;;  %s8786_s14 = inlined_call_operand.vmem [shape: f32[1,256], index: 14, kind: input, shape index: {}]   ;;  %s8787_s17 = inlined_call_operand.vmem [shape: f32[1,64], index: 17, kind: input, shape index: {}]   ;;  %s8788_s18 = inlined_call_operand.<no memory space> [shape: f32[1,1], index: 18, kind: input, shape index: {}]   ;;  %s8789_s19 = inlined_call_operand.vmem [shape: f32[8,1], index: 19, kind: output, shape index: {}]  }
   0x1   :  { %8792 = sst [smem:[#allocation3_spill]] %s8770_s2 }
   0x2   :  { %8793 = sst [smem:[#allocation4_spill]] %s8771_s0 }
   0x3   :  { %8794 = sst [smem:[#allocation5_spill]] %s8772_s4 }
   0x4   :  { %8795 = sst [smem:[#allocation6_spill]] %s8773_s3 }
   0x5   :  { %s8796_s20 = sld [smem:[#allocation3_spill]] }
   0x6   :  { %s8797_s23 = sld [smem:[#allocation4_spill]] }
   0x7   :  { %s8798_s3 = sld [smem:[#allocation5_spill]] }
   0x8   :  { %s8799_s2 = sld [smem:[#allocation6_spill]] }
   0xb   :  { %v4039_v0 = vld [vmem:[%s8796_s20 + $0x1c0] sm:$0xf]  ;;  %v5666_v2 = vld [vmem:[%s8796_s20 + $0x1c4] sm:$0xf]  ;;  %v4047_v5 = vld [vmem:[%s8796_s20 + $0x1c8] sm:$0xf] }
   0xc   :  { %v5670_v1 = vld [vmem:[%s8796_s20 + $0x1dc] sm:$0xf0]  ;;  %v4041_v4 = vld [vmem:[%s8796_s20 + $0x1e0] sm:$0xf0]  ;;  %v5671_v6 = vld [vmem:[%s8796_s20 + $0x1e4] sm:$0xf0] }
   0xd   :  { %v4040_v3 = vor.u32 %v5670_v1, %v4039_v0  ;;  %v4044_v7 = vor.u32 %v5666_v2, %v4041_v4  ;;  %v4048_v8 = vor.u32 %v5671_v6, %v4047_v5  ;;  %v5667_v9 = vld [vmem:[%s8796_s20 + $0x1cc] sm:$0xf]  ;;  %v4007_v11 = vld [vmem:[%s8796_s20 + $0x180] sm:$0xf]  ;;  %v5658_v14 = vld [vmem:[%s8796_s20 + $0x184] sm:$0xf] }
   0xe   :  { %v4049_v10 = vld [vmem:[%s8796_s20 + $0x1e8] sm:$0xf0]  ;;  %v5662_v13 = vld [vmem:[%s8796_s20 + $0x19c] sm:$0xf0]  ;;  %v4009_v15 = vld [vmem:[%s8796_s20 + $0x1a0] sm:$0xf0] }
   0xf   :  { %469 = vmatpush.bf16.msra.mxu0 %v4040_v3  ;;  %v4052_v12 = vor.u32 %v5667_v9, %v4049_v10  ;;  %482 = vmatpush.bf16.msra.mxu1 %v4044_v7  ;;  %v4008_v16 = vor.u32 %v5662_v13, %v4007_v11  ;;  %v4012_v17 = vor.u32 %v5658_v14, %v4009_v15  ;;  %v4015_v18 = vld [vmem:[%s8796_s20 + $0x188] sm:$0xf]  ;;  %v5659_v20 = vld [vmem:[%s8796_s20 + $0x18c] sm:$0xf]  ;;  %v3975_v23 = vld [vmem:[%s8796_s20 + $0x140] sm:$0xf] }
  0x10   :  { %495 = vmatpush.bf16.msra.mxu2 %v4048_v8  ;;  %v5663_v19 = vld [vmem:[%s8796_s20 + $0x1a4] sm:$0xf0]  ;;  %v4017_v22 = vld [vmem:[%s8796_s20 + $0x1a8] sm:$0xf0]  ;;  %v5654_v24 = vld [vmem:[%s8796_s20 + $0x15c] sm:$0xf0] }
  0x11   :  { %508 = vmatpush.bf16.msra.mxu3 %v4052_v12  ;;  %v4016_v21 = vor.u32 %v5663_v19, %v4015_v18  ;;  %v4020_v25 = vor.u32 %v5659_v20, %v4017_v22  ;;  %v5650_v26 = vld [vmem:[%s8796_s20 + $0x144] sm:$0xf]  ;;  %v3983_v28 = vld [vmem:[%s8796_s20 + $0x148] sm:$0xf]  ;;  %v3976_v29 = vor.u32 %v5654_v24, %v3975_v23  ;;  %v5651_v31 = vld [vmem:[%s8796_s20 + $0x14c] sm:$0xf] }
  0x12   :  { %v3977_v27 = vld [vmem:[%s8796_s20 + $0x160] sm:$0xf0]  ;;  %v5655_v30 = vld [vmem:[%s8796_s20 + $0x164] sm:$0xf0]  ;;  %v3985_v32 = vld [vmem:[%s8796_s20 + $0x168] sm:$0xf0] }
  0x13   :  { %470 = vmatpush.bf16.msra.mxu0 %v4008_v16  ;;  %483 = vmatpush.bf16.msra.mxu1 %v4012_v17  ;;  %v3980_v33 = vor.u32 %v5650_v26, %v3977_v27  ;;  %v3984_v34 = vor.u32 %v5655_v30, %v3983_v28  ;;  %v3943_v35 = vld [vmem:[%s8796_s20 + $0x100] sm:$0xf]  ;;  %v5642_v37 = vld [vmem:[%s8796_s20 + $0x104] sm:$0xf]  ;;  %v3988_v38 = vor.u32 %v5651_v31, %v3985_v32  ;;  %v3951_v40 = vld [vmem:[%s8796_s20 + $0x108] sm:$0xf] }
  0x14   :  { %496 = vmatpush.bf16.msra.mxu2 %v4016_v21  ;;  %v5646_v36 = vld [vmem:[%s8796_s20 + $0x11c] sm:$0xf0]  ;;  %v3945_v39 = vld [vmem:[%s8796_s20 + $0x120] sm:$0xf0]  ;;  %v5647_v41 = vld [vmem:[%s8796_s20 + $0x124] sm:$0xf0] }
  0x15   :  { %509 = vmatpush.bf16.msra.mxu3 %v4020_v25  ;;  %v5643_v42 = vld [vmem:[%s8796_s20 + $0x10c] sm:$0xf]  ;;  %v3944_v44 = vor.u32 %v5646_v36, %v3943_v35  ;;  %v3948_v45 = vor.u32 %v5642_v37, %v3945_v39  ;;  %v3952_v46 = vor.u32 %v5647_v41, %v3951_v40  ;;  %v3911_v47 = vld [vmem:[%s8796_s20 + $0xc0] sm:$0xf]  ;;  %v5634_v49 = vld [vmem:[%s8796_s20 + $0xc4] sm:$0xf] }
  0x16   :  { %v3953_v43 = vld [vmem:[%s8796_s20 + $0x128] sm:$0xf0]  ;;  %v5638_v48 = vld [vmem:[%s8796_s20 + $0xdc] sm:$0xf0]  ;;  %v3913_v51 = vld [vmem:[%s8796_s20 + $0xe0] sm:$0xf0] }
  0x17   :  { %471 = vmatpush.bf16.msra.mxu0 %v3976_v29  ;;  %484 = vmatpush.bf16.msra.mxu1 %v3980_v33  ;;  %v3956_v50 = vor.u32 %v5643_v42, %v3953_v43  ;;  %v3919_v52 = vld [vmem:[%s8796_s20 + $0xc8] sm:$0xf]  ;;  %v5635_v54 = vld [vmem:[%s8796_s20 + $0xcc] sm:$0xf]  ;;  %v3912_v56 = vor.u32 %v5638_v48, %v3911_v47  ;;  %v3916_v57 = vor.u32 %v5634_v49, %v3913_v51  ;;  %v3879_v59 = vld [vmem:[%s8796_s20 + $0x80] sm:$0xf] }
  0x18   :  { %497 = vmatpush.bf16.msra.mxu2 %v3984_v34  ;;  %v5639_v53 = vld [vmem:[%s8796_s20 + $0xe4] sm:$0xf0]  ;;  %v3921_v55 = vld [vmem:[%s8796_s20 + $0xe8] sm:$0xf0]  ;;  %v5630_v60 = vld [vmem:[%s8796_s20 + $0x9c] sm:$0xf0] }
  0x19   :  { %510 = vmatpush.bf16.msra.mxu3 %v3988_v38  ;;  %v3920_v58 = vor.u32 %v5639_v53, %v3919_v52  ;;  %v5626_v61 = vld [vmem:[%s8796_s20 + $0x84] sm:$0xf]  ;;  %v3924_v62 = vor.u32 %v5635_v54, %v3921_v55  ;;  %v3887_v0 = vld [vmem:[%s8796_s20 + $0x88] sm:$0xf]  ;;  %v5627_v2 = vld [vmem:[%s8796_s20 + $0x8c] sm:$0xf]  ;;  %v3880_v4 = vor.u32 %v5630_v60, %v3879_v59 }
  0x1a   :  { %v3881_v63 = vld [vmem:[%s8796_s20 + $0xa0] sm:$0xf0]  ;;  %v5631_v1 = vld [vmem:[%s8796_s20 + $0xa4] sm:$0xf0]  ;;  %v3889_v3 = vld [vmem:[%s8796_s20 + $0xa8] sm:$0xf0] }
  0x1b   :  { %472 = vmatpush.bf16.msra.mxu0 %v3944_v44  ;;  %485 = vmatpush.bf16.msra.mxu1 %v3948_v45  ;;  %v3884_v5 = vor.u32 %v5626_v61, %v3881_v63  ;;  %v3888_v6 = vor.u32 %v5631_v1, %v3887_v0  ;;  %v3847_v7 = vld [vmem:[%s8796_s20 + $0x40] sm:$0xf]  ;;  %v5618_v9 = vld [vmem:[%s8796_s20 + $0x44] sm:$0xf]  ;;  %v3892_v10 = vor.u32 %v5627_v2, %v3889_v3  ;;  %v3855_v12 = vld [vmem:[%s8796_s20 + $0x48] sm:$0xf] }
  0x1c   :  { %498 = vmatpush.bf16.msra.mxu2 %v3952_v46  ;;  %v5622_v8 = vld [vmem:[%s8796_s20 + $0x5c] sm:$0xf0]  ;;  %v3849_v11 = vld [vmem:[%s8796_s20 + $0x60] sm:$0xf0]  ;;  %v5623_v13 = vld [vmem:[%s8796_s20 + $0x64] sm:$0xf0] }
  0x1d   :  { %511 = vmatpush.bf16.msra.mxu3 %v3956_v50  ;;  %v5619_v14 = vld [vmem:[%s8796_s20 + $0x4c] sm:$0xf]  ;;  %v3848_v16 = vor.u32 %v5622_v8, %v3847_v7  ;;  %v3815_v17 = vld [vmem:[%s8796_s20] sm:$0xf]  ;;  %v3852_v19 = vor.u32 %v5618_v9, %v3849_v11  ;;  %v3856_v20 = vor.u32 %v5623_v13, %v3855_v12  ;;  %v5610_v21 = vld [vmem:[%s8796_s20 + $0x4] sm:$0xf] }
  0x1e   :  { %v3857_v15 = vld [vmem:[%s8796_s20 + $0x68] sm:$0xf0]  ;;  %v5614_v18 = vld [vmem:[%s8796_s20 + $0x1c] sm:$0xf0]  ;;  %v3817_v22 = vld [vmem:[%s8796_s20 + $0x20] sm:$0xf0] }
  0x1f   :  { %473 = vmatpush.bf16.msra.mxu0 %v3912_v56  ;;  %486 = vmatpush.bf16.msra.mxu1 %v3916_v57  ;;  %v3823_v23 = vld [vmem:[%s8796_s20 + $0x8] sm:$0xf]  ;;  %v3860_v24 = vor.u32 %v5619_v14, %v3857_v15  ;;  %v5611_v26 = vld [vmem:[%s8796_s20 + $0xc] sm:$0xf]  ;;  %v4055_v28 = vld [vmem:[%s8796_s20 + $0x1d0] sm:$0xf]  ;;  %v3816_v31 = vor.u32 %v5614_v18, %v3815_v17  ;;  %v3820_v35 = vor.u32 %v5610_v21, %v3817_v22 }
  0x20   :  { %499 = vmatpush.bf16.msra.mxu2 %v3920_v58  ;;  %v5615_v25 = vld [vmem:[%s8796_s20 + $0x24] sm:$0xf0]  ;;  %v3825_v27 = vld [vmem:[%s8796_s20 + $0x28] sm:$0xf0]  ;;  %v5672_v29 = vld [vmem:[%s8796_s20 + $0x1ec] sm:$0xf0] }
  0x21   :  { %512 = vmatpush.bf16.msra.mxu3 %v3924_v62  ;;  %v5668_v30 = vld [vmem:[%s8796_s20 + $0x1d4] sm:$0xf]  ;;  %v4063_v33 = vld [vmem:[%s8796_s20 + $0x1d8] sm:$0xf]  ;;  %v3824_v36 = vor.u32 %v5615_v25, %v3823_v23  ;;  %v5669_v37 = vld [vmem:[%s8796_s20 + $0x1dc] sm:$0xf]  ;;  %v3828_v40 = vor.u32 %v5611_v26, %v3825_v27  ;;  %v4056_v41 = vor.u32 %v5672_v29, %v4055_v28 }
  0x22   :  { %v4057_v32 = vld [vmem:[%s8796_s20 + $0x1f0] sm:$0xf0]  ;;  %v5673_v34 = vld [vmem:[%s8796_s20 + $0x1f4] sm:$0xf0]  ;;  %v4065_v38 = vld [vmem:[%s8796_s20 + $0x1f8] sm:$0xf0] }
  0x23   :  { %474 = vmatpush.bf16.msra.mxu0 %v3880_v4  ;;  %487 = vmatpush.bf16.msra.mxu1 %v3884_v5  ;;  %v65_v39 = vld [vmem:[%s8797_s23] sm:$0xff]  ;;  %v4060_v42 = vor.u32 %v5668_v30, %v4057_v32  ;;  %v4064_v43 = vor.u32 %v5673_v34, %v4063_v33  ;;  %v4023_v44 = vld [vmem:[%s8796_s20 + $0x190] sm:$0xf]  ;;  %v5660_v46 = vld [vmem:[%s8796_s20 + $0x194] sm:$0xf]  ;;  %v4068_v47 = vor.u32 %v5669_v37, %v4065_v38 }
  0x24   :  { %500 = vmatpush.bf16.msra.mxu2 %v3888_v6  ;;  %v5664_v45 = vld [vmem:[%s8796_s20 + $0x1ac] sm:$0xf0]  ;;  %v6395_v48 = vpack.c.bf16 %v65_v39, %v65_v39  ;;  %v4025_v49 = vld [vmem:[%s8796_s20 + $0x1b0] sm:$0xf0]  ;;  %v4031_v50 = vld [vmem:[%s8796_s20 + $0x198] sm:$0xf] }
  0x25   :  { %513 = vmatpush.bf16.msra.mxu3 %v3892_v10  ;;  %v5665_v51 = vld [vmem:[%s8796_s20 + $0x1b4] sm:$0xf0]  ;;  %v5661_v52 = vld [vmem:[%s8796_s20 + $0x19c] sm:$0xf]  ;;  %v4024_v54 = vor.u32 %v5664_v45, %v4023_v44  ;;  %v4028_v55 = vor.u32 %v5660_v46, %v4025_v49  ;;  %v3991_v57 = vld [vmem:[%s8796_s20 + $0x150] sm:$0xf] }
  0x26   :  { %v4033_v53 = vld [vmem:[%s8796_s20 + $0x1b8] sm:$0xf0]  ;;  %v4032_v56 = vor.u32 %v5665_v51, %v4031_v50  ;;  %v5656_v58 = vld [vmem:[%s8796_s20 + $0x16c] sm:$0xf0]  ;;  %v5652_v59 = vld [vmem:[%s8796_s20 + $0x154] sm:$0xf] }
  0x27   :  { %475 = vmatpush.bf16.msra.mxu0 %v3848_v16  ;;  %488 = vmatpush.bf16.msra.mxu1 %v3852_v19  ;;  %v4036_v60 = vor.u32 %v5661_v52, %v4033_v53  ;;  %v3993_v61 = vld [vmem:[%s8796_s20 + $0x170] sm:$0xf0]  ;;  %v3999_v62 = vld [vmem:[%s8796_s20 + $0x158] sm:$0xf]  ;;  %v5653_v0 = vld [vmem:[%s8796_s20 + $0x15c] sm:$0xf]  ;;  %v3992_v2 = vor.u32 %v5656_v58, %v3991_v57 }
  0x28   :  { %501 = vmatpush.bf16.msra.mxu2 %v3856_v20  ;;  %v5657_v63 = vld [vmem:[%s8796_s20 + $0x174] sm:$0xf0]  ;;  %v4001_v1 = vld [vmem:[%s8796_s20 + $0x178] sm:$0xf0]  ;;  %v3996_v3 = vor.u32 %v5652_v59, %v3993_v61  ;;  %v3959_v5 = vld [vmem:[%s8796_s20 + $0x110] sm:$0xf] }
  0x29   :  { %514 = vmatpush.bf16.msra.mxu3 %v3860_v24  ;;  %v4000_v4 = vor.u32 %v5657_v63, %v3999_v62  ;;  %v5648_v6 = vld [vmem:[%s8796_s20 + $0x12c] sm:$0xf0]  ;;  %v5644_v7 = vld [vmem:[%s8796_s20 + $0x114] sm:$0xf]  ;;  %v4004_v8 = vor.u32 %v5653_v0, %v4001_v1  ;;  %v3967_v10 = vld [vmem:[%s8796_s20 + $0x118] sm:$0xf] }
  0x2a   :  { %v3961_v9 = vld [vmem:[%s8796_s20 + $0x130] sm:$0xf0]  ;;  %v5649_v11 = vld [vmem:[%s8796_s20 + $0x134] sm:$0xf0]  ;;  %v5645_v12 = vld [vmem:[%s8796_s20 + $0x11c] sm:$0xf]  ;;  %v3960_v14 = vor.u32 %v5648_v6, %v3959_v5 }
  0x2b   :  { %476 = vmatpush.bf16.msra.mxu0 %v3816_v31  ;;  %489 = vmatpush.bf16.msra.mxu1 %v3820_v35  ;;  %v3969_v13 = vld [vmem:[%s8796_s20 + $0x138] sm:$0xf0]  ;;  %v3964_v15 = vor.u32 %v5644_v7, %v3961_v9  ;;  %v3968_v16 = vor.u32 %v5649_v11, %v3967_v10  ;;  %v3927_v17 = vld [vmem:[%s8796_s20 + $0xd0] sm:$0xf]  ;;  %v5636_v19 = vld [vmem:[%s8796_s20 + $0xd4] sm:$0xf] }
  0x2c   :  { %502 = vmatpush.bf16.msra.mxu2 %v3824_v36  ;;  %v5640_v18 = vld [vmem:[%s8796_s20 + $0xec] sm:$0xf0]  ;;  %v3972_v20 = vor.u32 %v5645_v12, %v3969_v13  ;;  %v3929_v21 = vld [vmem:[%s8796_s20 + $0xf0] sm:$0xf0]  ;;  %v3935_v22 = vld [vmem:[%s8796_s20 + $0xd8] sm:$0xf] }
  0x2d   :  { %515 = vmatpush.bf16.msra.mxu3 %v3828_v40  ;;  %v5641_v23 = vld [vmem:[%s8796_s20 + $0xf4] sm:$0xf0]  ;;  %v5637_v24 = vld [vmem:[%s8796_s20 + $0xdc] sm:$0xf]  ;;  %v3928_v26 = vor.u32 %v5640_v18, %v3927_v17  ;;  %v3932_v27 = vor.u32 %v5636_v19, %v3929_v21  ;;  %v3895_v29 = vld [vmem:[%s8796_s20 + $0x90] sm:$0xf] }
  0x2e   :  { %477 = vmatmul.bf16.vlgmr.msra.gmra.mxu0 %v6395_v48  ;;  %490 = vmatmul.bf16.vlgmr.msra.gmra.mxu1 %v6395_v48  ;;  %v3937_v25 = vld [vmem:[%s8796_s20 + $0xf8] sm:$0xf0]  ;;  %v3936_v28 = vor.u32 %v5641_v23, %v3935_v22  ;;  %v5632_v30 = vld [vmem:[%s8796_s20 + $0xac] sm:$0xf0]  ;;  %v5628_v31 = vld [vmem:[%s8796_s20 + $0x94] sm:$0xf] }
  0x2f   :  { %521 = vmatpush.bf16.msrb.mxu0 %v4056_v41  ;;  %534 = vmatpush.bf16.msrb.mxu1 %v4060_v42  ;;  %v3940_v32 = vor.u32 %v5637_v24, %v3937_v25  ;;  %v3897_v33 = vld [vmem:[%s8796_s20 + $0xb0] sm:$0xf0]  ;;  %v3903_v34 = vld [vmem:[%s8796_s20 + $0x98] sm:$0xf]  ;;  %v5629_v36 = vld [vmem:[%s8796_s20 + $0x9c] sm:$0xf]  ;;  %v3896_v38 = vor.u32 %v5632_v30, %v3895_v29 }
  0x30   :  { %547 = vmatpush.bf16.msrb.mxu2 %v4064_v43  ;;  %516 = vmatmul.bf16.vlgmr.msra.gmra.mxu3 %v6395_v48  ;;  %v5633_v35 = vld [vmem:[%s8796_s20 + $0xb4] sm:$0xf0]  ;;  %v3905_v37 = vld [vmem:[%s8796_s20 + $0xb8] sm:$0xf0]  ;;  %v3900_v39 = vor.u32 %v5628_v31, %v3897_v33  ;;  %v3863_v41 = vld [vmem:[%s8796_s20 + $0x50] sm:$0xf] }
  0x31   :  { %560 = vmatpush.bf16.msrb.mxu3 %v4068_v47  ;;  %503 = vmatmul.bf16.vlgmr.msra.gmra.mxu2 %v6395_v48  ;;  %v3904_v40 = vor.u32 %v5633_v35, %v3903_v34  ;;  %v5624_v42 = vld [vmem:[%s8796_s20 + $0x6c] sm:$0xf0]  ;;  %v5620_v43 = vld [vmem:[%s8796_s20 + $0x54] sm:$0xf]  ;;  %v3908_v44 = vor.u32 %v5629_v36, %v3905_v37  ;;  %v3871_v46 = vld [vmem:[%s8796_s20 + $0x58] sm:$0xf] }
  0x32   :  { %v3865_v45 = vld [vmem:[%s8796_s20 + $0x70] sm:$0xf0]  ;;  %v5625_v47 = vld [vmem:[%s8796_s20 + $0x74] sm:$0xf0]  ;;  %v5621_v49 = vld [vmem:[%s8796_s20 + $0x5c] sm:$0xf]  ;;  %v3864_v51 = vor.u32 %v5624_v42, %v3863_v41 }
  0x33   :  { %522 = vmatpush.bf16.msrb.mxu0 %v4024_v54  ;;  %535 = vmatpush.bf16.msrb.mxu1 %v4028_v55  ;;  %v3873_v50 = vld [vmem:[%s8796_s20 + $0x78] sm:$0xf0]  ;;  %v3831_v52 = vld [vmem:[%s8796_s20 + $0x10] sm:$0xf]  ;;  %v3868_v53 = vor.u32 %v5620_v43, %v3865_v45  ;;  %v3872_v54 = vor.u32 %v5625_v47, %v3871_v46  ;;  %v3833_v57 = vld [vmem:[%s8796_s20 + $0x30] sm:$0xf0] }
  0x34   :  { %548 = vmatpush.bf16.msrb.mxu2 %v4032_v56  ;;  %v5616_v55 = vld [vmem:[%s8796_s20 + $0x2c] sm:$0xf0]  ;;  %v5612_v56 = vld [vmem:[%s8796_s20 + $0x14] sm:$0xf]  ;;  %v3876_v58 = vor.u32 %v5621_v49, %v3873_v50  ;;  %v3839_v59 = vld [vmem:[%s8796_s20 + $0x18] sm:$0xf] }
  0x35   :  { %561 = vmatpush.bf16.msrb.mxu3 %v4036_v60  ;;  %v5617_v60 = vld [vmem:[%s8796_s20 + $0x34] sm:$0xf0]  ;;  %v5613_v61 = vld [vmem:[%s8796_s20 + $0x1c] sm:$0xf]  ;;  %v4183_v63 = vld [vmem:[%s8798_s3 + $0xe0] sm:$0xf]  ;;  %v3832_v1 = vor.u32 %v5616_v55, %v3831_v52 }
  0x36   :  { %v3841_v62 = vld [vmem:[%s8796_s20 + $0x38] sm:$0xf0]  ;;  %v5704_v0 = vld [vmem:[%s8798_s3 + $0xec] sm:$0xf0]  ;;  %v3840_v5 = vor.u32 %v5617_v60, %v3839_v59  ;;  %v4439_v9 = vld [vmem:[%s8798_s3 + $0x2e0] sm:$0xf] }
  0x37   :  { %523 = vmatpush.bf16.msrb.mxu0 %v3992_v2  ;;  %536 = vmatpush.bf16.msrb.mxu1 %v3996_v3  ;;  %v4311_v2 = vld [vmem:[%s8798_s3 + $0x1e0] sm:$0xf]  ;;  %v5736_v3 = vld [vmem:[%s8798_s3 + $0x1ec] sm:$0xf0]  ;;  %v3844_v6 = vor.u32 %v5613_v61, %v3841_v62  ;;  %v4184_v7 = vor.u32 %v5704_v0, %v4183_v63 }
  0x38   :  { %549 = vmatpush.bf16.msrb.mxu2 %v4000_v4  ;;  %v3836_v4 = vor.u32 %v5612_v56, %v3833_v57  ;;  %v5768_v10 = vld [vmem:[%s8798_s3 + $0x2ec] sm:$0xf0]  ;;  %v4312_v11 = vor.u32 %v5736_v3, %v4311_v2  ;;  %v4567_v13 = vld [vmem:[%s8798_s3 + $0x3e0] sm:$0xf] }
  0x39   :  { %562 = vmatpush.bf16.msrb.mxu3 %v4004_v8  ;;  %v4167_v8 = vld [vmem:[%s8798_s3 + $0xc0] sm:$0xf]  ;;  %v5700_v12 = vld [vmem:[%s8798_s3 + $0xcc] sm:$0xf0]  ;;  %v4440_v17 = vor.u32 %v5768_v10, %v4439_v9 }
  0x3a   :  { %v4168_v18 = vor.u32 %v5700_v12, %v4167_v8  ;;  %v4423_v21 = vld [vmem:[%s8798_s3 + $0x2c0] sm:$0xf]  ;;  %v5764_v22 = vld [vmem:[%s8798_s3 + $0x2cc] sm:$0xf0] }
  0x3b   :  { %524 = vmatpush.bf16.msrb.mxu0 %v3960_v14  ;;  %537 = vmatpush.bf16.msrb.mxu1 %v3964_v15  ;;  %v5800_v14 = vld [vmem:[%s8798_s3 + $0x3ec] sm:$0xf0]  ;;  %v4295_v15 = vld [vmem:[%s8798_s3 + $0x1c0] sm:$0xf]  ;;  %v4424_v29 = vor.u32 %v5764_v22, %v4423_v21 }
  0x3c   :  { %550 = vmatpush.bf16.msrb.mxu2 %v3968_v16  ;;  %v5732_v16 = vld [vmem:[%s8798_s3 + $0x1cc] sm:$0xf0]  ;;  %v4568_v19 = vor.u32 %v5800_v14, %v4567_v13  ;;  %v4551_v25 = vld [vmem:[%s8798_s3 + $0x3c0] sm:$0xf] }
  0x3d   :  { %563 = vmatpush.bf16.msrb.mxu3 %v3972_v20  ;;  %v4151_v20 = vld [vmem:[%s8798_s3 + $0xa0] sm:$0xf]  ;;  %v4296_v23 = vor.u32 %v5732_v16, %v4295_v15  ;;  %v5696_v24 = vld [vmem:[%s8798_s3 + $0xac] sm:$0xf0] }
  0x3e   :  { %v4152_v30 = vor.u32 %v5696_v24, %v4151_v20  ;;  %v4407_v33 = vld [vmem:[%s8798_s3 + $0x2a0] sm:$0xf]  ;;  %v5760_v34 = vld [vmem:[%s8798_s3 + $0x2ac] sm:$0xf0] }
  0x3f   :  { %525 = vmatpush.bf16.msrb.mxu0 %v3928_v26  ;;  %538 = vmatpush.bf16.msrb.mxu1 %v3932_v27  ;;  %v5796_v26 = vld [vmem:[%s8798_s3 + $0x3cc] sm:$0xf0]  ;;  %v4279_v27 = vld [vmem:[%s8798_s3 + $0x1a0] sm:$0xf] }
  0x40   :  { %551 = vmatpush.bf16.msrb.mxu2 %v3936_v28  ;;  %v5728_v28 = vld [vmem:[%s8798_s3 + $0x1ac] sm:$0xf0]  ;;  %v4552_v31 = vor.u32 %v5796_v26, %v4551_v25  ;;  %v4535_v36 = vld [vmem:[%s8798_s3 + $0x3a0] sm:$0xf] }
  0x41   :  { %564 = vmatpush.bf16.msrb.mxu3 %v3940_v32  ;;  %v4135_v32 = vld [vmem:[%s8798_s3 + $0x80] sm:$0xf]  ;;  %v5692_v35 = vld [vmem:[%s8798_s3 + $0x8c] sm:$0xf0] }
  0x42   :  { %v5792_v37 = vld [vmem:[%s8798_s3 + $0x3ac] sm:$0xf0]  ;;  %v4136_v41 = vor.u32 %v5692_v35, %v4135_v32  ;;  %v4119_v43 = vld [vmem:[%s8798_s3 + $0x60] sm:$0xf] }
  0x43   :  { %526 = vmatpush.bf16.msrb.mxu0 %v3896_v38  ;;  %539 = vmatpush.bf16.msrb.mxu1 %v3900_v39  ;;  %v4263_v38 = vld [vmem:[%s8798_s3 + $0x180] sm:$0xf]  ;;  %v5724_v39 = vld [vmem:[%s8798_s3 + $0x18c] sm:$0xf0]  ;;  %v4536_v42 = vor.u32 %v5792_v37, %v4535_v36 }
  0x44   :  { %552 = vmatpush.bf16.msrb.mxu2 %v3904_v40  ;;  %v4408_v40 = vor.u32 %v5760_v34, %v4407_v33  ;;  %v5756_v45 = vld [vmem:[%s8798_s3 + $0x28c] sm:$0xf0]  ;;  %v4264_v46 = vor.u32 %v5724_v39, %v4263_v38  ;;  %v4519_v49 = vld [vmem:[%s8798_s3 + $0x380] sm:$0xf] }
  0x45   :  { %565 = vmatpush.bf16.msrb.mxu3 %v3908_v44  ;;  %v4391_v44 = vld [vmem:[%s8798_s3 + $0x280] sm:$0xf]  ;;  %v5688_v47 = vld [vmem:[%s8798_s3 + $0x6c] sm:$0xf0] }
  0x46   :  { %v5788_v50 = vld [vmem:[%s8798_s3 + $0x38c] sm:$0xf0]  ;;  %v4103_v56 = vld [vmem:[%s8798_s3 + $0x40] sm:$0xf] }
  0x47   :  { %527 = vmatpush.bf16.msrb.mxu0 %v3864_v51  ;;  %540 = vmatpush.bf16.msrb.mxu1 %v3868_v53  ;;  %v4247_v51 = vld [vmem:[%s8798_s3 + $0x160] sm:$0xf]  ;;  %v5720_v52 = vld [vmem:[%s8798_s3 + $0x16c] sm:$0xf0]  ;;  %v4392_v53 = vor.u32 %v5756_v45, %v4391_v44  ;;  %v4520_v55 = vor.u32 %v5788_v50, %v4519_v49 }
  0x48   :  { %553 = vmatpush.bf16.msrb.mxu2 %v3872_v54  ;;  %v4120_v54 = vor.u32 %v5688_v47, %v4119_v43  ;;  %v4375_v57 = vld [vmem:[%s8798_s3 + $0x260] sm:$0xf]  ;;  %v4248_v59 = vor.u32 %v5720_v52, %v4247_v51  ;;  %v5684_v60 = vld [vmem:[%s8798_s3 + $0x4c] sm:$0xf0] }
  0x49   :  { %566 = vmatpush.bf16.msrb.mxu3 %v3876_v58  ;;  %v5752_v58 = vld [vmem:[%s8798_s3 + $0x26c] sm:$0xf0]  ;;  %v4503_v61 = vld [vmem:[%s8798_s3 + $0x360] sm:$0xf]  ;;  %v4104_v2 = vor.u32 %v5684_v60, %v4103_v56 }
  0x4a   :  { %v5784_v62 = vld [vmem:[%s8798_s3 + $0x36c] sm:$0xf0]  ;;  %v4231_v63 = vld [vmem:[%s8798_s3 + $0x140] sm:$0xf] }
  0x4b   :  { %528 = vmatpush.bf16.msrb.mxu0 %v3832_v1  ;;  %541 = vmatpush.bf16.msrb.mxu1 %v3836_v4  ;;  %v5716_v0 = vld [vmem:[%s8798_s3 + $0x14c] sm:$0xf0]  ;;  %v4376_v1 = vor.u32 %v5752_v58, %v4375_v57  ;;  %v4504_v3 = vor.u32 %v5784_v62, %v4503_v61  ;;  %v4087_v4 = vld [vmem:[%s8798_s3 + $0x20] sm:$0xf] }
  0x4c   :  { %554 = vmatpush.bf16.msrb.mxu2 %v3840_v5  ;;  %v4359_v5 = vld [vmem:[%s8798_s3 + $0x240] sm:$0xf]  ;;  %v5680_v8 = vld [vmem:[%s8798_s3 + $0x2c] sm:$0xf0] }
  0x4d   :  { %567 = vmatpush.bf16.msrb.mxu3 %v3844_v6  ;;  %v5748_v6 = vld [vmem:[%s8798_s3 + $0x24c] sm:$0xf0]  ;;  %v4487_v9 = vld [vmem:[%s8798_s3 + $0x340] sm:$0xf]  ;;  %v4088_v15 = vor.u32 %v5680_v8, %v4087_v4 }
  0x4e   :  { %529 = vmatmul.bf16.vlgmr.msrb.gmra.mxu0 %v6395_v48  ;;  %542 = vmatmul.bf16.vlgmr.msrb.gmra.mxu1 %v6395_v48  ;;  %v5780_v10 = vld [vmem:[%s8798_s3 + $0x34c] sm:$0xf0]  ;;  %v4360_v13 = vor.u32 %v5748_v6, %v4359_v5  ;;  %v4071_v14 = vld [vmem:[%s8798_s3] sm:$0xf] }
  0x4f   :  { %2135 = vmatpush.bf16.msra.mxu0 %v4184_v7  ;;  %2148 = vmatpush.bf16.msra.mxu1 %v4312_v11  ;;  %v4232_v7 = vor.u32 %v5716_v0, %v4231_v63  ;;  %v4215_v11 = vld [vmem:[%s8798_s3 + $0x120] sm:$0xf]  ;;  %v5712_v12 = vld [vmem:[%s8798_s3 + $0x12c] sm:$0xf0]  ;;  %v4488_v16 = vor.u32 %v5780_v10, %v4487_v9 }
  0x50   :  { %555 = vmatmul.bf16.vlgmr.msrb.gmra.mxu2 %v6395_v48  ;;  %568 = vmatmul.bf16.vlgmr.msrb.gmra.mxu3 %v6395_v48  ;;  %v4280_v48 = vor.u32 %v5728_v28, %v4279_v27  ;;  %v4216_v20 = vor.u32 %v5712_v12, %v4215_v11  ;;  %v4199_v21 = vld [vmem:[%s8798_s3 + $0x100] sm:$0xf]  ;;  %v5708_v24 = vld [vmem:[%s8798_s3 + $0x10c] sm:$0xf0] }
  0x51   :  { %2161 = vmatpush.bf16.msra.mxu2 %v4440_v17  ;;  %2174 = vmatpush.bf16.msra.mxu3 %v4568_v19  ;;  %v5676_v17 = vld [vmem:[%s8798_s3 + $0xc] sm:$0xf0]  ;;  %v4471_v22 = vld [vmem:[%s8798_s3 + $0x320] sm:$0xf]  ;;  %v4200_v35 = vor.u32 %v5708_v24, %v4199_v21 }
  0x52   :  { %v5744_v19 = vld [vmem:[%s8798_s3 + $0x22c] sm:$0xf0]  ;;  %v4695_v25 = vld [vmem:[%s8798_s3 + $0x4e0] sm:$0xf] }
  0x53   :  { %2136 = vmatpush.bf16.msra.mxu0 %v4168_v18  ;;  %2149 = vmatpush.bf16.msra.mxu1 %v4296_v23  ;;  %v4343_v18 = vld [vmem:[%s8798_s3 + $0x220] sm:$0xf]  ;;  %v5776_v23 = vld [vmem:[%s8798_s3 + $0x32c] sm:$0xf0] }
  0x54   :  { %v5832_v26 = vld [vmem:[%s8798_s3 + $0x4ec] sm:$0xf0]  ;;  %v4823_v27 = vld [vmem:[%s8798_s3 + $0x5e0] sm:$0xf] }
  0x55   :  { %2162 = vmatpush.bf16.msra.mxu2 %v4424_v29  ;;  %2175 = vmatpush.bf16.msra.mxu3 %v4552_v31  ;;  %v5864_v28 = vld [vmem:[%s8798_s3 + $0x5ec] sm:$0xf0]  ;;  %v4344_v29 = vor.u32 %v5744_v19, %v4343_v18  ;;  %v4472_v31 = vor.u32 %v5776_v23, %v4471_v22  ;;  %v4679_v32 = vld [vmem:[%s8798_s3 + $0x4c0] sm:$0xf]  ;;  %v4696_v36 = vor.u32 %v5832_v26, %v4695_v25 }
  0x56   :  { %v4327_v33 = vld [vmem:[%s8798_s3 + $0x200] sm:$0xf]  ;;  %v5740_v34 = vld [vmem:[%s8798_s3 + $0x20c] sm:$0xf0] }
  0x57   :  { %2137 = vmatpush.bf16.msra.mxu0 %v4152_v30  ;;  %2150 = vmatpush.bf16.msra.mxu1 %v4280_v48  ;;  %v4072_v30 = vor.u32 %v5676_v17, %v4071_v14  ;;  %v4455_v48 = vld [vmem:[%s8798_s3 + $0x300] sm:$0xf]  ;;  %v5772_v37 = vld [vmem:[%s8798_s3 + $0x30c] sm:$0xf0] }
  0x58   :  { %v4951_v38 = vld [vmem:[%s8798_s3 + $0x6e0] sm:$0xf]  ;;  %v5896_v39 = vld [vmem:[%s8798_s3 + $0x6ec] sm:$0xf0]  ;;  %v4456_v47 = vor.u32 %v5772_v37, %v4455_v48 }
  0x59   :  { %2163 = vmatpush.bf16.msra.mxu2 %v4408_v40  ;;  %2176 = vmatpush.bf16.msra.mxu3 %v4536_v42  ;;  %v4824_v40 = vor.u32 %v5864_v28, %v4823_v27  ;;  %v5079_v42 = vld [vmem:[%s8798_s3 + $0x7e0] sm:$0xf]  ;;  %v5928_v43 = vld [vmem:[%s8798_s3 + $0x7ec] sm:$0xf0]  ;;  %v4952_v49 = vor.u32 %v5896_v39, %v4951_v38 }
  0x5a   :  { %v4807_v44 = vld [vmem:[%s8798_s3 + $0x5c0] sm:$0xf]  ;;  %v5860_v45 = vld [vmem:[%s8798_s3 + $0x5cc] sm:$0xf0]  ;;  %v5080_v51 = vor.u32 %v5928_v43, %v5079_v42 }
  0x5b   :  { %2138 = vmatpush.bf16.msra.mxu0 %v4136_v41  ;;  %2151 = vmatpush.bf16.msra.mxu1 %v4264_v46  ;;  %v5828_v41 = vld [vmem:[%s8798_s3 + $0x4cc] sm:$0xf0]  ;;  %v4328_v46 = vor.u32 %v5740_v34, %v4327_v33  ;;  %v4663_v52 = vld [vmem:[%s8798_s3 + $0x4a0] sm:$0xf] }
  0x5c   :  { %v4680_v50 = vor.u32 %v5828_v41, %v4679_v32  ;;  %v5824_v56 = vld [vmem:[%s8798_s3 + $0x4ac] sm:$0xf0]  ;;  %v5063_v57 = vld [vmem:[%s8798_s3 + $0x7c0] sm:$0xf] }
  0x5d   :  { %2164 = vmatpush.bf16.msra.mxu2 %v4392_v53  ;;  %2177 = vmatpush.bf16.msra.mxu3 %v4520_v55  ;;  %v4935_v53 = vld [vmem:[%s8798_s3 + $0x6c0] sm:$0xf]  ;;  %v4808_v55 = vor.u32 %v5860_v45, %v4807_v44  ;;  %v5924_v58 = vld [vmem:[%s8798_s3 + $0x7cc] sm:$0xf0]  ;;  %v4664_v62 = vor.u32 %v5824_v56, %v4663_v52 }
  0x5e   :  { %v5856_v60 = vld [vmem:[%s8798_s3 + $0x5ac] sm:$0xf0]  ;;  %v5064_v63 = vor.u32 %v5924_v58, %v5063_v57  ;;  %v4647_v0 = vld [vmem:[%s8798_s3 + $0x480] sm:$0xf] }
  0x5f   :  { %2139 = vmatpush.bf16.msra.mxu0 %v4120_v54  ;;  %2152 = vmatpush.bf16.msra.mxu1 %v4248_v59  ;;  %v5892_v54 = vld [vmem:[%s8798_s3 + $0x6cc] sm:$0xf0]  ;;  %v4791_v59 = vld [vmem:[%s8798_s3 + $0x5a0] sm:$0xf] }
  0x60   :  { %v4936_v61 = vor.u32 %v5892_v54, %v4935_v53  ;;  %v5820_v4 = vld [vmem:[%s8798_s3 + $0x48c] sm:$0xf0]  ;;  %v5047_v5 = vld [vmem:[%s8798_s3 + $0x7a0] sm:$0xf] }
  0x61   :  { %2165 = vmatpush.bf16.msra.mxu2 %v4376_v1  ;;  %2178 = vmatpush.bf16.msra.mxu3 %v4504_v3  ;;  %v4919_v1 = vld [vmem:[%s8798_s3 + $0x6a0] sm:$0xf]  ;;  %v4792_v3 = vor.u32 %v5856_v60, %v4791_v59  ;;  %v5920_v6 = vld [vmem:[%s8798_s3 + $0x7ac] sm:$0xf0]  ;;  %v4648_v10 = vor.u32 %v5820_v4, %v4647_v0 }
  0x62   :  { %v5852_v8 = vld [vmem:[%s8798_s3 + $0x58c] sm:$0xf0]  ;;  %v5048_v11 = vor.u32 %v5920_v6, %v5047_v5  ;;  %v4631_v12 = vld [vmem:[%s8798_s3 + $0x460] sm:$0xf] }
  0x63   :  { %2140 = vmatpush.bf16.msra.mxu0 %v4104_v2  ;;  %2153 = vmatpush.bf16.msra.mxu1 %v4232_v7  ;;  %v5888_v2 = vld [vmem:[%s8798_s3 + $0x6ac] sm:$0xf0]  ;;  %v4775_v7 = vld [vmem:[%s8798_s3 + $0x580] sm:$0xf] }
  0x64   :  { %v4920_v9 = vor.u32 %v5888_v2, %v4919_v1  ;;  %v5884_v14 = vld [vmem:[%s8798_s3 + $0x68c] sm:$0xf0]  ;;  %v5031_v17 = vld [vmem:[%s8798_s3 + $0x780] sm:$0xf] }
  0x65   :  { %2166 = vmatpush.bf16.msra.mxu2 %v4360_v13  ;;  %2179 = vmatpush.bf16.msra.mxu3 %v4488_v16  ;;  %v4903_v13 = vld [vmem:[%s8798_s3 + $0x680] sm:$0xf]  ;;  %v5816_v16 = vld [vmem:[%s8798_s3 + $0x46c] sm:$0xf0] }
  0x66   :  { %v5916_v18 = vld [vmem:[%s8798_s3 + $0x78c] sm:$0xf0]  ;;  %v4759_v19 = vld [vmem:[%s8798_s3 + $0x560] sm:$0xf]  ;;  %v4904_v21 = vor.u32 %v5884_v14, %v4903_v13  ;;  %v4632_v22 = vor.u32 %v5816_v16, %v4631_v12  ;;  %v5734_v12 = vld [vmem:[%s8798_s3 + $0x1e4] sm:$0xf] }
  0x67   :  { %2141 = vmatpush.bf16.msra.mxu0 %v4088_v15  ;;  %2154 = vmatpush.bf16.msra.mxu1 %v4216_v20  ;;  %v4776_v15 = vor.u32 %v5852_v8, %v4775_v7  ;;  %v5848_v20 = vld [vmem:[%s8798_s3 + $0x56c] sm:$0xf0]  ;;  %v5032_v23 = vor.u32 %v5916_v18, %v5031_v17  ;;  %v4615_v25 = vld [vmem:[%s8798_s3 + $0x440] sm:$0xf]  ;;  %v4313_v13 = vld [vmem:[%s8798_s3 + $0x1f0] sm:$0xf0] }
  0x68   :  { %v4760_v24 = vor.u32 %v5848_v20, %v4759_v19  ;;  %v5812_v26 = vld [vmem:[%s8798_s3 + $0x44c] sm:$0xf0]  ;;  %v4743_v27 = vld [vmem:[%s8798_s3 + $0x540] sm:$0xf]  ;;  %v4316_v20 = vor.u32 %v5734_v12, %v4313_v13  ;;  %v5754_v12 = vld [vmem:[%s8798_s3 + $0x284] sm:$0xf] }
  0x69   :  { %2167 = vmatpush.bf16.msra.mxu2 %v4344_v29  ;;  %2180 = vmatpush.bf16.msra.mxu3 %v4472_v31  ;;  %v5844_v28 = vld [vmem:[%s8798_s3 + $0x54c] sm:$0xf0]  ;;  %v4616_v29 = vor.u32 %v5812_v26, %v4615_v25  ;;  %v4887_v31 = vld [vmem:[%s8798_s3 + $0x660] sm:$0xf]  ;;  %v4297_v25 = vld [vmem:[%s8798_s3 + $0x1d0] sm:$0xf0] }
  0x6a   :  { %v5880_v32 = vld [vmem:[%s8798_s3 + $0x66c] sm:$0xf0]  ;;  %v5015_v33 = vld [vmem:[%s8798_s3 + $0x760] sm:$0xf]  ;;  %v4393_v13 = vld [vmem:[%s8798_s3 + $0x290] sm:$0xf0] }
  0x6b   :  { %2142 = vmatpush.bf16.msra.mxu0 %v4072_v30  ;;  %2155 = vmatpush.bf16.msra.mxu1 %v4200_v35  ;;  %v4744_v30 = vor.u32 %v5844_v28, %v4743_v27  ;;  %v4888_v34 = vor.u32 %v5880_v32, %v4887_v31  ;;  %v5912_v48 = vld [vmem:[%s8798_s3 + $0x76c] sm:$0xf0]  ;;  %v4727_v39 = vld [vmem:[%s8798_s3 + $0x520] sm:$0xf]  ;;  %v5766_v31 = vld [vmem:[%s8798_s3 + $0x2e4] sm:$0xf] }
  0x6c   :  { %v5016_v35 = vor.u32 %v5912_v48, %v5015_v33  ;;  %v5808_v37 = vld [vmem:[%s8798_s3 + $0x42c] sm:$0xf0]  ;;  %v4871_v42 = vld [vmem:[%s8798_s3 + $0x640] sm:$0xf]  ;;  %v4441_v32 = vld [vmem:[%s8798_s3 + $0x2f0] sm:$0xf0] }
  0x6d   :  { %2168 = vmatpush.bf16.msra.mxu2 %v4328_v46  ;;  %2181 = vmatpush.bf16.msra.mxu3 %v4456_v47  ;;  %v5876_v43 = vld [vmem:[%s8798_s3 + $0x64c] sm:$0xf0]  ;;  %v4999_v44 = vld [vmem:[%s8798_s3 + $0x740] sm:$0xf]  ;;  %v5798_v33 = vld [vmem:[%s8798_s3 + $0x3e4] sm:$0xf] }
  0x6e   :  { %v4872_v45 = vor.u32 %v5876_v43, %v4871_v42  ;;  %v5908_v46 = vld [vmem:[%s8798_s3 + $0x74c] sm:$0xf0]  ;;  %v4983_v58 = vld [vmem:[%s8798_s3 + $0x720] sm:$0xf]  ;;  %v4444_v43 = vor.u32 %v5766_v31, %v4441_v32  ;;  %v5678_v31 = vld [vmem:[%s8798_s3 + $0x24] sm:$0xf] }
  0x6f   :  { %2187 = vmatpush.bf16.msrb.mxu0 %v4696_v36  ;;  %2200 = vmatpush.bf16.msrb.mxu1 %v4824_v40  ;;  %v4599_v36 = vld [vmem:[%s8798_s3 + $0x420] sm:$0xf]  ;;  %v5840_v40 = vld [vmem:[%s8798_s3 + $0x52c] sm:$0xf0]  ;;  %v5000_v47 = vor.u32 %v5908_v46, %v4999_v44  ;;  %v4089_v32 = vld [vmem:[%s8798_s3 + $0x30] sm:$0xf0] }
  0x70   :  { %v4600_v38 = vor.u32 %v5808_v37, %v4599_v36  ;;  %v4728_v41 = vor.u32 %v5840_v40, %v4727_v39  ;;  %v5836_v53 = vld [vmem:[%s8798_s3 + $0x50c] sm:$0xf0]  ;;  %v4967_v0 = vld [vmem:[%s8798_s3 + $0x700] sm:$0xf]  ;;  %v4569_v36 = vld [vmem:[%s8798_s3 + $0x3f0] sm:$0xf0] }
  0x71   :  { %2213 = vmatpush.bf16.msrb.mxu2 %v4952_v49  ;;  %2226 = vmatpush.bf16.msrb.mxu3 %v5080_v51  ;;  %v4583_v49 = vld [vmem:[%s8798_s3 + $0x400] sm:$0xf]  ;;  %v5872_v56 = vld [vmem:[%s8798_s3 + $0x62c] sm:$0xf0]  ;;  %v5694_v37 = vld [vmem:[%s8798_s3 + $0xa4] sm:$0xf] }
  0x72   :  { %v4711_v51 = vld [vmem:[%s8798_s3 + $0x500] sm:$0xf]  ;;  %v5904_v59 = vld [vmem:[%s8798_s3 + $0x72c] sm:$0xf0]  ;;  %v5726_v40 = vld [vmem:[%s8798_s3 + $0x1a4] sm:$0xf] }
  0x73   :  { %2188 = vmatpush.bf16.msrb.mxu0 %v4680_v50  ;;  %2201 = vmatpush.bf16.msrb.mxu1 %v4808_v55  ;;  %v5804_v50 = vld [vmem:[%s8798_s3 + $0x40c] sm:$0xf0]  ;;  %v4712_v54 = vor.u32 %v5836_v53, %v4711_v51  ;;  %v4855_v55 = vld [vmem:[%s8798_s3 + $0x620] sm:$0xf]  ;;  %v4984_v60 = vor.u32 %v5904_v59, %v4983_v58  ;;  %v4553_v53 = vld [vmem:[%s8798_s3 + $0x3d0] sm:$0xf0] }
  0x74   :  { %v4584_v52 = vor.u32 %v5804_v50, %v4583_v49  ;;  %v4856_v57 = vor.u32 %v5872_v56, %v4855_v55  ;;  %v5900_v1 = vld [vmem:[%s8798_s3 + $0x70c] sm:$0xf0]  ;;  %v4425_v49 = vld [vmem:[%s8798_s3 + $0x2d0] sm:$0xf0]  ;;  %v5794_v50 = vld [vmem:[%s8798_s3 + $0x3c4] sm:$0xf] }
  0x75   :  { %2214 = vmatpush.bf16.msrb.mxu2 %v4936_v61  ;;  %2227 = vmatpush.bf16.msrb.mxu3 %v5064_v63  ;;  %v4839_v61 = vld [vmem:[%s8798_s3 + $0x600] sm:$0xf]  ;;  %v4968_v2 = vor.u32 %v5900_v1, %v4967_v0  ;;  %v4137_v55 = vld [vmem:[%s8798_s3 + $0x90] sm:$0xf0]  ;;  %v5722_v56 = vld [vmem:[%s8798_s3 + $0x184] sm:$0xf] }
  0x76   :  { %v4409_v0 = vld [vmem:[%s8798_s3 + $0x2b0] sm:$0xf0]  ;;  %v5790_v1 = vld [vmem:[%s8798_s3 + $0x3a4] sm:$0xf] }
  0x77   :  { %2189 = vmatpush.bf16.msrb.mxu0 %v4664_v62  ;;  %2202 = vmatpush.bf16.msrb.mxu1 %v4792_v3  ;;  %v5868_v62 = vld [vmem:[%s8798_s3 + $0x60c] sm:$0xf0]  ;;  %v6951_v3 = vld [vmem:[%s8799_s2] sm:$0xff] }
  0x78   :  { %v4840_v63 = vor.u32 %v5868_v62, %v4839_v61  ;;  %v133_v4 = vperm.slane %v6951_v3, 0  ;;  %v134_v5 = vperm.slane %v6951_v3, 1  ;;  %v135_v16 = vperm.slane %v6951_v3, 2 }
  0x79   :  { %2215 = vmatpush.bf16.msrb.mxu2 %v4920_v9  ;;  %2228 = vmatpush.bf16.msrb.mxu3 %v5048_v11  ;;  %v5702_v9 = vld [vmem:[%s8798_s3 + $0xe4] sm:$0xf]  ;;  %v136_v19 = vperm.slane %v6951_v3, 3  ;;  %v4556_v61 = vor.u32 %v5794_v50, %v4553_v53  ;;  %v4201_v53 = vld [vmem:[%s8798_s3 + $0x110] sm:$0xf0] }
  0x7b   :  { %2190 = vmatpush.bf16.msrb.mxu0 %v4648_v10  ;;  %2203 = vmatpush.bf16.msrb.mxu1 %v4776_v15  ;;  %v4185_v10 = vld [vmem:[%s8798_s3 + $0xf0] sm:$0xf0] }
  0x7c   :  { %v4188_v17 = vor.u32 %v5702_v9, %v4185_v10 }
  0x7d   :  { %2216 = vmatpush.bf16.msrb.mxu2 %v4904_v21  ;;  %2229 = vmatpush.bf16.msrb.mxu3 %v5032_v23  ;;  %v5698_v21 = vld [vmem:[%s8798_s3 + $0xc4] sm:$0xf] }
  0x7f   :  { %2191 = vmatpush.bf16.msrb.mxu0 %v4632_v22  ;;  %2204 = vmatpush.bf16.msrb.mxu1 %v4760_v24  ;;  %v4169_v22 = vld [vmem:[%s8798_s3 + $0xd0] sm:$0xf0]  ;;  %v5730_v24 = vld [vmem:[%s8798_s3 + $0x1c4] sm:$0xf] }
  0x81   :  { %2217 = vmatpush.bf16.msrb.mxu2 %v4888_v34  ;;  %2230 = vmatpush.bf16.msrb.mxu3 %v5016_v35  ;;  %v4300_v35 = vor.u32 %v5730_v24, %v4297_v25 }
  0x83   :  { %2192 = vmatpush.bf16.msrb.mxu0 %v4616_v29  ;;  %2205 = vmatpush.bf16.msrb.mxu1 %v4744_v30  ;;  %v4172_v30 = vor.u32 %v5698_v21, %v4169_v22  ;;  %v4233_v21 = vld [vmem:[%s8798_s3 + $0x150] sm:$0xf0]  ;;  %v4396_v22 = vor.u32 %v5754_v12, %v4393_v13  ;;  %v5826_v13 = vld [vmem:[%s8798_s3 + $0x4c4] sm:$0xf] }
  0x85   :  { %2218 = vmatpush.bf16.msrb.mxu2 %v4872_v45  ;;  %2231 = vmatpush.bf16.msrb.mxu3 %v5000_v47  ;;  %v4572_v45 = vor.u32 %v5798_v33, %v4569_v36  ;;  %v5762_v47 = vld [vmem:[%s8798_s3 + $0x2c4] sm:$0xf]  ;;  %v137_v33 = vperm.slane %v6951_v3, 4 }
  0x86   :  { %v4428_v59 = vor.u32 %v5762_v47, %v4425_v49  ;;  %v4073_v47 = vld [vmem:[%s8798_s3 + $0x10] sm:$0xf0] }
  0x87   :  { %2193 = vmatpush.bf16.msrb.mxu0 %v4600_v38  ;;  %2206 = vmatpush.bf16.msrb.mxu1 %v4728_v41  ;;  %v4153_v38 = vld [vmem:[%s8798_s3 + $0xb0] sm:$0xf0] }
  0x88   :  { %v4281_v41 = vld [vmem:[%s8798_s3 + $0x1b0] sm:$0xf0]  ;;  %v4156_v46 = vor.u32 %v5694_v37, %v4153_v38  ;;  %v4092_v38 = vor.u32 %v5678_v31, %v4089_v32  ;;  %v5926_v32 = vld [vmem:[%s8798_s3 + $0x7e4] sm:$0xf] }
  0x89   :  { %2219 = vmatpush.bf16.msrb.mxu2 %v4856_v57  ;;  %2232 = vmatpush.bf16.msrb.mxu3 %v4984_v60  ;;  %v4265_v57 = vld [vmem:[%s8798_s3 + $0x190] sm:$0xf0] }
  0x8a   :  { %v4953_v31 = vld [vmem:[%s8798_s3 + $0x6f0] sm:$0xf0] }
  0x8b   :  { %2194 = vmatpush.bf16.msrb.mxu0 %v4584_v52  ;;  %2207 = vmatpush.bf16.msrb.mxu1 %v4712_v54  ;;  %v4284_v52 = vor.u32 %v5726_v40, %v4281_v41  ;;  %v5690_v54 = vld [vmem:[%s8798_s3 + $0x84] sm:$0xf]  ;;  %v4361_v40 = vld [vmem:[%s8798_s3 + $0x250] sm:$0xf0] }
  0x8c   :  { %v4140_v62 = vor.u32 %v5690_v54, %v4137_v55  ;;  %v5778_v41 = vld [vmem:[%s8798_s3 + $0x344] sm:$0xf] }
  0x8d   :  { %2220 = vmatpush.bf16.msrb.mxu2 %v4840_v63  ;;  %2233 = vmatpush.bf16.msrb.mxu3 %v4968_v2  ;;  %v5758_v63 = vld [vmem:[%s8798_s3 + $0x2a4] sm:$0xf]  ;;  %v4268_v2 = vor.u32 %v5722_v56, %v4265_v57  ;;  %v4697_v57 = vld [vmem:[%s8798_s3 + $0x4f0] sm:$0xf0] }
  0x8e   :  { %v4412_v9 = vor.u32 %v5758_v63, %v4409_v0  ;;  %v5830_v54 = vld [vmem:[%s8798_s3 + $0x4e4] sm:$0xf]  ;;  %v4345_v0 = vld [vmem:[%s8798_s3 + $0x230] sm:$0xf0] }
  0x8f   :  { %v5742_v63 = vld [vmem:[%s8798_s3 + $0x224] sm:$0xf] }
  0x90   :  { %v4348_v12 = vor.u32 %v5742_v63, %v4345_v0  ;;  %v5886_v0 = vld [vmem:[%s8798_s3 + $0x6a4] sm:$0xf] }
  0xab   :  { %v478_v6 = vpop.f32.mrf.mxu0  ;;  %v491_v8 = vpop.f32.mrf.mxu1 }
  0xac   :  { %v479_v7 = vadd.f32 %v478_v6, %v133_v4  ;;  %v492_v11 = vadd.f32 %v491_v8, %v134_v5  ;;  %v4537_v4 = vld [vmem:[%s8798_s3 + $0x3b0] sm:$0xf0]  ;;  %v5686_v5 = vld [vmem:[%s8798_s3 + $0x64] sm:$0xf] }
  0xad   :  { %v4121_v6 = vld [vmem:[%s8798_s3 + $0x70] sm:$0xf0]  ;;  %v4540_v10 = vor.u32 %v5790_v1, %v4537_v4 }
  0xae   :  { %v573_v14 = vmax.f32 %v479_v7, 0.0  ;;  %v574_v15 = vmax.f32 %v492_v11, 0.0  ;;  %v5718_v7 = vld [vmem:[%s8798_s3 + $0x164] sm:$0xf]  ;;  %v4249_v8 = vld [vmem:[%s8798_s3 + $0x170] sm:$0xf0]  ;;  %v4124_v11 = vor.u32 %v5686_v5, %v4121_v6 }
  0xaf   :  { %v5774_v5 = vld [vmem:[%s8798_s3 + $0x324] sm:$0xf]  ;;  %v4473_v6 = vld [vmem:[%s8798_s3 + $0x330] sm:$0xf0] }
  0xb0   :  { %v6968_v18 = vpack.c.bf16 %v573_v14, %v573_v14  ;;  %v6977_v23 = vpack.c.bf16 %v574_v15, %v574_v15  ;;  %v5786_v14 = vld [vmem:[%s8798_s3 + $0x384] sm:$0xf]  ;;  %v4252_v15 = vor.u32 %v5718_v7, %v4249_v8  ;;  %v140_v8 = vperm.slane %v6951_v3, 7 }
  0xb2   :  { %2143 = vmatmul.bf16.vlgmr.msra.gmra.mxu0 %v6968_v18  ;;  %2156 = vmatmul.bf16.vlgmr.msra.gmra.mxu1 %v6977_v23 }
  0xb3   :  { %v517_v28 = vpop.f32.mrf.mxu3  ;;  %2239 = vmatpush.bf16.msra.mxu0 %v4188_v17  ;;  %v480_v29 = vpop.f32.mrf.mxu0  ;;  %2252 = vmatpush.bf16.msra.mxu1 %v4316_v20  ;;  %v5682_v17 = vld [vmem:[%s8798_s3 + $0x44] sm:$0xf] }
  0xb4   :  { %v504_v26 = vpop.f32.mrf.mxu2  ;;  %v518_v34 = vadd.f32 %v517_v28, %v136_v19  ;;  %v493_v48 = vpop.f32.mrf.mxu1  ;;  %v4105_v19 = vld [vmem:[%s8798_s3 + $0x50] sm:$0xf0]  ;;  %v5714_v20 = vld [vmem:[%s8798_s3 + $0x144] sm:$0xf] }
  0xb5   :  { %v505_v27 = vadd.f32 %v504_v26, %v135_v16  ;;  %v4521_v16 = vld [vmem:[%s8798_s3 + $0x390] sm:$0xf0]  ;;  %v4108_v25 = vor.u32 %v5682_v17, %v4105_v19  ;;  %v5750_v26 = vld [vmem:[%s8798_s3 + $0x264] sm:$0xf]  ;;  %v4236_v29 = vor.u32 %v5714_v20, %v4233_v21 }
  0xb6   :  { %v576_v42 = vmax.f32 %v518_v34, 0.0  ;;  %v4524_v24 = vor.u32 %v5786_v14, %v4521_v16  ;;  %v5782_v28 = vld [vmem:[%s8798_s3 + $0x364] sm:$0xf]  ;;  %v4217_v48 = vld [vmem:[%s8798_s3 + $0x130] sm:$0xf0]  ;;  %v4476_v16 = vor.u32 %v5774_v5, %v4473_v6 }
  0xb7   :  { %v575_v39 = vmax.f32 %v505_v27, 0.0  ;;  %2240 = vmatpush.bf16.msra.mxu0 %v4172_v30  ;;  %2253 = vmatpush.bf16.msra.mxu1 %v4300_v35  ;;  %v4377_v27 = vld [vmem:[%s8798_s3 + $0x270] sm:$0xf0]  ;;  %v5710_v34 = vld [vmem:[%s8798_s3 + $0x124] sm:$0xf]  ;;  %v138_v35 = vperm.slane %v6951_v3, 5 }
  0xb8   :  { %v7022_v51 = vpack.c.bf16 %v576_v42, %v576_v42  ;;  %v4505_v30 = vld [vmem:[%s8798_s3 + $0x370] sm:$0xf0]  ;;  %v4380_v36 = vor.u32 %v5750_v26, %v4377_v27  ;;  %v5738_v19 = vld [vmem:[%s8798_s3 + $0x204] sm:$0xf] }
  0xb9   :  { %v7011_v44 = vpack.c.bf16 %v575_v39, %v575_v39  ;;  %v4508_v37 = vor.u32 %v5782_v28, %v4505_v30  ;;  %v5746_v39 = vld [vmem:[%s8798_s3 + $0x244] sm:$0xf]  ;;  %v4681_v14 = vld [vmem:[%s8798_s3 + $0x4d0] sm:$0xf0] }
  0xba   :  { %2182 = vmatmul.bf16.vlgmr.msra.gmra.mxu3 %v7022_v51  ;;  %v4364_v56 = vor.u32 %v5746_v39, %v4361_v40  ;;  %v4809_v17 = vld [vmem:[%s8798_s3 + $0x5d0] sm:$0xf0]  ;;  %v5894_v27 = vld [vmem:[%s8798_s3 + $0x6e4] sm:$0xf]  ;;  %v4684_v30 = vor.u32 %v5826_v13, %v4681_v14 }
  0xbb   :  { %2169 = vmatmul.bf16.vlgmr.msra.gmra.mxu2 %v7011_v44  ;;  %2278 = vmatpush.bf16.msra.mxu3 %v4572_v45  ;;  %v519_v60 = vpop.f32.mrf.mxu3  ;;  %v4489_v45 = vld [vmem:[%s8798_s3 + $0x350] sm:$0xf0]  ;;  %v5854_v40 = vld [vmem:[%s8798_s3 + $0x5a4] sm:$0xf] }
  0xbc   :  { %2265 = vmatpush.bf16.msra.mxu2 %v4444_v43  ;;  %v506_v58 = vpop.f32.mrf.mxu2  ;;  %2241 = vmatpush.bf16.msra.mxu0 %v4156_v46  ;;  %v4220_v43 = vor.u32 %v5710_v34, %v4217_v48  ;;  %v5674_v46 = vld [vmem:[%s8798_s3 + $0x4] sm:$0xf]  ;;  %v4329_v20 = vld [vmem:[%s8798_s3 + $0x210] sm:$0xf0] }
  0xbd   :  { %2254 = vmatpush.bf16.msra.mxu1 %v4284_v52  ;;  %v5706_v52 = vld [vmem:[%s8798_s3 + $0x104] sm:$0xf]  ;;  %v4457_v26 = vld [vmem:[%s8798_s3 + $0x310] sm:$0xf0] }
  0xbe   :  { %v5862_v58 = vld [vmem:[%s8798_s3 + $0x5e4] sm:$0xf]  ;;  %v4204_v4 = vor.u32 %v5706_v52, %v4201_v53  ;;  %v5049_v5 = vld [vmem:[%s8798_s3 + $0x7b0] sm:$0xf0] }
  0xbf   :  { %2279 = vmatpush.bf16.msra.mxu3 %v4556_v61  ;;  %v4492_v61 = vor.u32 %v5778_v41, %v4489_v45  ;;  %v4793_v41 = vld [vmem:[%s8798_s3 + $0x5b0] sm:$0xf0]  ;;  %v5922_v52 = vld [vmem:[%s8798_s3 + $0x7c4] sm:$0xf] }
  0xc0   :  { %2266 = vmatpush.bf16.msra.mxu2 %v4428_v59  ;;  %2242 = vmatpush.bf16.msra.mxu0 %v4140_v62  ;;  %v4825_v59 = vld [vmem:[%s8798_s3 + $0x5f0] sm:$0xf0]  ;;  %v4076_v62 = vor.u32 %v5674_v46, %v4073_v47  ;;  %v4796_v53 = vor.u32 %v5854_v40, %v4793_v41  ;;  %v5814_v6 = vld [vmem:[%s8798_s3 + $0x464] sm:$0xf] }
  0xc1   :  { %2255 = vmatpush.bf16.msra.mxu1 %v4268_v2  ;;  %v139_v2 = vperm.slane %v6951_v3, 6  ;;  %v5882_v14 = vld [vmem:[%s8798_s3 + $0x684] sm:$0xf] }
  0xc2   :  { %v5906_v40 = vld [vmem:[%s8798_s3 + $0x744] sm:$0xf] }
  0xc3   :  { %2280 = vmatpush.bf16.msra.mxu3 %v4540_v10 }
  0xc4   :  { %2267 = vmatpush.bf16.msra.mxu2 %v4412_v9  ;;  %2243 = vmatpush.bf16.msra.mxu0 %v4124_v11  ;;  %v4700_v9 = vor.u32 %v5830_v54, %v4697_v57  ;;  %v4828_v11 = vor.u32 %v5862_v58, %v4825_v59  ;;  %v5065_v54 = vld [vmem:[%s8798_s3 + $0x7d0] sm:$0xf0]  ;;  %v5850_v58 = vld [vmem:[%s8798_s3 + $0x584] sm:$0xf] }
  0xc5   :  { %2256 = vmatpush.bf16.msra.mxu1 %v4252_v15  ;;  %v5858_v15 = vld [vmem:[%s8798_s3 + $0x5c4] sm:$0xf]  ;;  %v4777_v59 = vld [vmem:[%s8798_s3 + $0x590] sm:$0xf0] }
  0xc6   :  { %v4812_v48 = vor.u32 %v5858_v15, %v4809_v17  ;;  %v4905_v15 = vld [vmem:[%s8798_s3 + $0x690] sm:$0xf0]  ;;  %v5914_v17 = vld [vmem:[%s8798_s3 + $0x784] sm:$0xf] }
  0xc7   :  { %2281 = vmatpush.bf16.msra.mxu3 %v4524_v24 }
  0xc8   :  { %2268 = vmatpush.bf16.msra.mxu2 %v4396_v22  ;;  %2244 = vmatpush.bf16.msra.mxu0 %v4108_v25  ;;  %v5770_v25 = vld [vmem:[%s8798_s3 + $0x304] sm:$0xf] }
  0xc9   :  { %2257 = vmatpush.bf16.msra.mxu1 %v4236_v29  ;;  %v4460_v39 = vor.u32 %v5770_v25, %v4457_v26  ;;  %v4908_v25 = vor.u32 %v5882_v14, %v4905_v15  ;;  %v5898_v14 = vld [vmem:[%s8798_s3 + $0x704] sm:$0xf]  ;;  %v4969_v15 = vld [vmem:[%s8798_s3 + $0x710] sm:$0xf0] }
  0xcb   :  { %v530_v42 = vpop.f32.mrf.mxu0  ;;  %v543_v50 = vpop.f32.mrf.mxu1  ;;  %2282 = vmatpush.bf16.msra.mxu3 %v4508_v37  ;;  %v4665_v37 = vld [vmem:[%s8798_s3 + $0x4b0] sm:$0xf0] }
  0xcc   :  { %v531_v49 = vadd.f32 %v530_v42, %v137_v33  ;;  %v544_v55 = vadd.f32 %v543_v50, %v138_v35  ;;  %2269 = vmatpush.bf16.msra.mxu2 %v4380_v36  ;;  %2245 = vmatpush.bf16.msra.mxu0 %v4092_v38  ;;  %v5081_v33 = vld [vmem:[%s8798_s3 + $0x7f0] sm:$0xf0]  ;;  %v4332_v35 = vor.u32 %v5738_v19, %v4329_v20  ;;  %v5822_v36 = vld [vmem:[%s8798_s3 + $0x4a4] sm:$0xf] }
  0xcd   :  { %2258 = vmatpush.bf16.msra.mxu1 %v4220_v43  ;;  %v4956_v43 = vor.u32 %v5894_v27, %v4953_v31  ;;  %v5084_v46 = vor.u32 %v5926_v32, %v5081_v33  ;;  %v4668_v47 = vor.u32 %v5822_v36, %v4665_v37  ;;  %v4937_v50 = vld [vmem:[%s8798_s3 + $0x6d0] sm:$0xf0]  ;;  %v5810_v20 = vld [vmem:[%s8798_s3 + $0x444] sm:$0xf] }
  0xce   :  { %v577_v60 = vmax.f32 %v531_v49, 0.0  ;;  %v578_v1 = vmax.f32 %v544_v55, 0.0  ;;  %v5890_v49 = vld [vmem:[%s8798_s3 + $0x6c4] sm:$0xf]  ;;  %v5033_v19 = vld [vmem:[%s8798_s3 + $0x790] sm:$0xf0] }
  0xcf   :  { %2283 = vmatpush.bf16.msra.mxu3 %v4492_v61  ;;  %v5818_v55 = vld [vmem:[%s8798_s3 + $0x484] sm:$0xf]  ;;  %v4940_v61 = vor.u32 %v5890_v49, %v4937_v50  ;;  %v5036_v26 = vor.u32 %v5914_v17, %v5033_v19  ;;  %v5017_v32 = vld [vmem:[%s8798_s3 + $0x770] sm:$0xf0] }
  0xd0   :  { %v7164_v7 = vpack.c.bf16 %v577_v60, %v577_v60  ;;  %v7167_v10 = vpack.c.bf16 %v578_v1, %v578_v1  ;;  %2270 = vmatpush.bf16.msra.mxu2 %v4364_v56  ;;  %2246 = vmatpush.bf16.msra.mxu0 %v4076_v62  ;;  %v4649_v56 = vld [vmem:[%s8798_s3 + $0x490] sm:$0xf0]  ;;  %v5068_v62 = vor.u32 %v5922_v52, %v5065_v54  ;;  %v5878_v27 = vld [vmem:[%s8798_s3 + $0x664] sm:$0xf] }
  0xd1   :  { %2259 = vmatpush.bf16.msra.mxu1 %v4204_v4  ;;  %v4652_v63 = vor.u32 %v5818_v55, %v4649_v56  ;;  %v4921_v1 = vld [vmem:[%s8798_s3 + $0x6b0] sm:$0xf0]  ;;  %v5918_v4 = vld [vmem:[%s8798_s3 + $0x7a4] sm:$0xf]  ;;  %v5705_v55 = vld [vmem:[%s8798_s3 + $0xf4] sm:$0xf0] }
  0xd2   :  { %2195 = vmatmul.bf16.vlgmr.msrb.gmra.mxu0 %v7164_v7  ;;  %2208 = vmatmul.bf16.vlgmr.msrb.gmra.mxu1 %v7167_v10  ;;  %v5052_v13 = vor.u32 %v5918_v4, %v5049_v5  ;;  %v5910_v31 = vld [vmem:[%s8798_s3 + $0x764] sm:$0xf]  ;;  %v4585_v49 = vld [vmem:[%s8798_s3 + $0x410] sm:$0xf0]  ;;  %v4319_v56 = vld [vmem:[%s8798_s3 + $0x1e8] sm:$0xf] }
  0xd3   :  { %v556_v3 = vpop.f32.mrf.mxu2  ;;  %v569_v22 = vpop.f32.mrf.mxu3  ;;  %2284 = vmatpush.bf16.msra.mxu3 %v4476_v16  ;;  %v5806_v33 = vld [vmem:[%s8798_s3 + $0x424] sm:$0xf]  ;;  %v5020_v37 = vor.u32 %v5910_v31, %v5017_v32  ;;  %v4713_v52 = vld [vmem:[%s8798_s3 + $0x510] sm:$0xf0]  ;;  %v4175_v4 = vld [vmem:[%s8798_s3 + $0xc8] sm:$0xf] }
  0xd4   :  { %v557_v21 = vadd.f32 %v556_v3, %v139_v2  ;;  %v532_v24 = vpop.f32.mrf.mxu0  ;;  %v570_v28 = vadd.f32 %v569_v22, %v140_v8  ;;  %2291 = vmatpush.bf16.msrb.mxu0 %v4700_v9  ;;  %v545_v29 = vpop.f32.mrf.mxu1  ;;  %2271 = vmatpush.bf16.msra.mxu2 %v4348_v12  ;;  %v4780_v2 = vor.u32 %v5850_v58, %v4777_v59  ;;  %v4633_v8 = vld [vmem:[%s8798_s3 + $0x470] sm:$0xf0]  ;;  %v5846_v9 = vld [vmem:[%s8798_s3 + $0x564] sm:$0xf]  ;;  %v4431_v31 = vld [vmem:[%s8798_s3 + $0x2c8] sm:$0xf] }
  0xd5   :  { %2304 = vmatpush.bf16.msrb.mxu1 %v4828_v11  ;;  %v4761_v11 = vld [vmem:[%s8798_s3 + $0x570] sm:$0xf0]  ;;  %v4924_v12 = vor.u32 %v5886_v0, %v4921_v1  ;;  %v4636_v3 = vor.u32 %v5814_v6, %v4633_v8  ;;  %v5842_v22 = vld [vmem:[%s8798_s3 + $0x544] sm:$0xf]  ;;  %v5701_v6 = vld [vmem:[%s8798_s3 + $0xd4] sm:$0xf0] }
  0xd6   :  { %v579_v34 = vmax.f32 %v557_v21, 0.0  ;;  %v580_v38 = vmax.f32 %v570_v28, 0.0  ;;  %v4764_v16 = vor.u32 %v5846_v9, %v4761_v11  ;;  %v4617_v21 = vld [vmem:[%s8798_s3 + $0x450] sm:$0xf0]  ;;  %v5834_v50 = vld [vmem:[%s8798_s3 + $0x504] sm:$0xf]  ;;  %v4176_v17 = vor.u32 %v5701_v6, %v4175_v4 }
  0xd7   :  { %2285 = vmatpush.bf16.msra.mxu3 %v4460_v39  ;;  %v4745_v24 = vld [vmem:[%s8798_s3 + $0x550] sm:$0xf0]  ;;  %v4620_v29 = vor.u32 %v5810_v20, %v4617_v21  ;;  %v5870_v59 = vld [vmem:[%s8798_s3 + $0x624] sm:$0xf]  ;;  %v4303_v8 = vld [vmem:[%s8798_s3 + $0x1c8] sm:$0xf] }
  0xd8   :  { %v7219_v42 = vpack.c.bf16 %v579_v34, %v579_v34  ;;  %v7221_v45 = vpack.c.bf16 %v580_v38, %v580_v38  ;;  %2292 = vmatpush.bf16.msrb.mxu0 %v4684_v30  ;;  %2272 = vmatpush.bf16.msra.mxu2 %v4332_v35  ;;  %v4889_v28 = vld [vmem:[%s8798_s3 + $0x670] sm:$0xf0]  ;;  %v4748_v30 = vor.u32 %v5842_v22, %v4745_v24  ;;  %v5874_v38 = vld [vmem:[%s8798_s3 + $0x644] sm:$0xf]  ;;  %v5733_v9 = vld [vmem:[%s8798_s3 + $0x1d4] sm:$0xf0] }
  0xd9   :  { %2305 = vmatpush.bf16.msrb.mxu1 %v4812_v48  ;;  %v4601_v34 = vld [vmem:[%s8798_s3 + $0x430] sm:$0xf0]  ;;  %v5838_v48 = vld [vmem:[%s8798_s3 + $0x524] sm:$0xf]  ;;  %v4892_v36 = vor.u32 %v5878_v27, %v4889_v28  ;;  %v4304_v19 = vor.u32 %v5733_v9, %v4303_v8  ;;  %v4575_v20 = vld [vmem:[%s8798_s3 + $0x3e8] sm:$0xf]  ;;  %v4972_v28 = vor.u32 %v5898_v14, %v4969_v15 }
  0xda   :  { %2221 = vmatmul.bf16.vlgmr.msrb.gmra.mxu2 %v7219_v42  ;;  %2234 = vmatmul.bf16.vlgmr.msrb.gmra.mxu3 %v7221_v45  ;;  %v4729_v35 = vld [vmem:[%s8798_s3 + $0x530] sm:$0xf0]  ;;  %v4604_v41 = vor.u32 %v5806_v33, %v4601_v34  ;;  %v5801_v21 = vld [vmem:[%s8798_s3 + $0x3f4] sm:$0xf0]  ;;  %v4159_v22 = vld [vmem:[%s8798_s3 + $0xa8] sm:$0xf] }
  0xdb   :  { %v558_v57 = vpop.f32.mrf.mxu2  ;;  %v571_v60 = vpop.f32.mrf.mxu3  ;;  %2330 = vmatpush.bf16.msrb.mxu3 %v5084_v46  ;;  %v4873_v39 = vld [vmem:[%s8798_s3 + $0x650] sm:$0xf0]  ;;  %v5729_v27 = vld [vmem:[%s8798_s3 + $0x1b4] sm:$0xf0]  ;;  %v4239_v4 = vld [vmem:[%s8798_s3 + $0x148] sm:$0xf] }
  0xdc   :  { %2317 = vmatpush.bf16.msrb.mxu2 %v4956_v43  ;;  %2293 = vmatpush.bf16.msrb.mxu0 %v4668_v47  ;;  %v4732_v43 = vor.u32 %v5838_v48, %v4729_v35  ;;  %v5001_v46 = vld [vmem:[%s8798_s3 + $0x750] sm:$0xf0]  ;;  %v5802_v47 = vld [vmem:[%s8798_s3 + $0x404] sm:$0xf]  ;;  %v4876_v54 = vor.u32 %v5874_v38, %v4873_v39  ;;  %v5737_v57 = vld [vmem:[%s8798_s3 + $0x1f4] sm:$0xf0] }
  0xdd   :  { %2306 = vmatpush.bf16.msrb.mxu1 %v4796_v53  ;;  %v4191_v53 = vld [vmem:[%s8798_s3 + $0xe8] sm:$0xf]  ;;  %v5004_v58 = vor.u32 %v5906_v40, %v5001_v46  ;;  %v4857_v60 = vld [vmem:[%s8798_s3 + $0x630] sm:$0xf0]  ;;  %v5765_v32 = vld [vmem:[%s8798_s3 + $0x2d4] sm:$0xf0] }
  0xde   :  { %v4985_v0 = vld [vmem:[%s8798_s3 + $0x730] sm:$0xf0]  ;;  %v4192_v1 = vor.u32 %v5705_v55, %v4191_v53  ;;  %v4860_v5 = vor.u32 %v5870_v59, %v4857_v60  ;;  %v4559_v48 = vld [vmem:[%s8798_s3 + $0x3c8] sm:$0xf]  ;;  %v5797_v35 = vld [vmem:[%s8798_s3 + $0x3d4] sm:$0xf0]  ;;  %v4432_v40 = vor.u32 %v5765_v32, %v4431_v31 }
  0xdf   :  { %2331 = vmatpush.bf16.msrb.mxu3 %v5068_v62  ;;  %v4716_v62 = vor.u32 %v5834_v50, %v4713_v52  ;;  %v4271_v38 = vld [vmem:[%s8798_s3 + $0x188] sm:$0xf]  ;;  %v5725_v39 = vld [vmem:[%s8798_s3 + $0x194] sm:$0xf0] }
  0xe0   :  { %2318 = vmatpush.bf16.msrb.mxu2 %v4940_v61  ;;  %2294 = vmatpush.bf16.msrb.mxu0 %v4652_v63  ;;  %v4588_v61 = vor.u32 %v5802_v47, %v4585_v49  ;;  %v5902_v63 = vld [vmem:[%s8798_s3 + $0x724] sm:$0xf]  ;;  %v5761_v46 = vld [vmem:[%s8798_s3 + $0x2b4] sm:$0xf0]  ;;  %v4272_v49 = vor.u32 %v5725_v39, %v4271_v38  ;;  %v4543_v50 = vld [vmem:[%s8798_s3 + $0x3a8] sm:$0xf] }
  0xe1   :  { %2307 = vmatpush.bf16.msrb.mxu1 %v4780_v2  ;;  %v4320_v2 = vor.u32 %v5737_v57, %v4319_v56  ;;  %v4988_v11 = vor.u32 %v5902_v63, %v4985_v0  ;;  %v5793_v52 = vld [vmem:[%s8798_s3 + $0x3b4] sm:$0xf0]  ;;  %v4127_v53 = vld [vmem:[%s8798_s3 + $0x68] sm:$0xf] }
  0xe2   :  { %2247 = vmatmul.bf16.vlgmr.msra.gmra.mxu0 %v6968_v18  ;;  %2260 = vmatmul.bf16.vlgmr.msra.gmra.mxu1 %v6977_v23  ;;  %v4255_v55 = vld [vmem:[%s8798_s3 + $0x168] sm:$0xf]  ;;  %v5721_v56 = vld [vmem:[%s8798_s3 + $0x174] sm:$0xf0] }
  0xe3   :  { %2332 = vmatpush.bf16.msrb.mxu3 %v5052_v13  ;;  %v4841_v13 = vld [vmem:[%s8798_s3 + $0x610] sm:$0xf0]  ;;  %v4399_v59 = vld [vmem:[%s8798_s3 + $0x288] sm:$0xf]  ;;  %v5757_v60 = vld [vmem:[%s8798_s3 + $0x294] sm:$0xf0] }
  0xe4   :  { %2319 = vmatpush.bf16.msrb.mxu2 %v4924_v12  ;;  %2295 = vmatpush.bf16.msrb.mxu0 %v4636_v3  ;;  %v5866_v12 = vld [vmem:[%s8798_s3 + $0x604] sm:$0xf]  ;;  %v4447_v3 = vld [vmem:[%s8798_s3 + $0x2e8] sm:$0xf]  ;;  %v5789_v0 = vld [vmem:[%s8798_s3 + $0x394] sm:$0xf0]  ;;  %v4400_v6 = vor.u32 %v5757_v60, %v4399_v59 }
  0xe5   :  { %2308 = vmatpush.bf16.msrb.mxu1 %v4764_v16  ;;  %v5769_v16 = vld [vmem:[%s8798_s3 + $0x2f4] sm:$0xf0]  ;;  %v4844_v24 = vor.u32 %v5866_v12, %v4841_v13  ;;  %v4527_v63 = vld [vmem:[%s8798_s3 + $0x388] sm:$0xf] }
  0xe6   :  { %v4528_v8 = vor.u32 %v5789_v0, %v4527_v63  ;;  %v4383_v9 = vld [vmem:[%s8798_s3 + $0x268] sm:$0xf]  ;;  %v5785_v15 = vld [vmem:[%s8798_s3 + $0x374] sm:$0xf0] }
  0xe7   :  { %2333 = vmatpush.bf16.msrb.mxu3 %v5036_v26  ;;  %v4287_v26 = vld [vmem:[%s8798_s3 + $0x1a8] sm:$0xf]  ;;  %v5709_v32 = vld [vmem:[%s8798_s3 + $0x114] sm:$0xf0] }
  0xe8   :  { %2320 = vmatpush.bf16.msrb.mxu2 %v4908_v25  ;;  %2296 = vmatpush.bf16.msrb.mxu0 %v4620_v29  ;;  %v5697_v25 = vld [vmem:[%s8798_s3 + $0xb4] sm:$0xf0]  ;;  %v4448_v29 = vor.u32 %v5769_v16, %v4447_v3  ;;  %v4288_v34 = vor.u32 %v5729_v27, %v4287_v26  ;;  %v4511_v14 = vld [vmem:[%s8798_s3 + $0x368] sm:$0xf] }
  0xe9   :  { %2309 = vmatpush.bf16.msrb.mxu1 %v4748_v30  ;;  %v4576_v30 = vor.u32 %v5801_v21, %v4575_v20  ;;  %v4160_v33 = vor.u32 %v5697_v25, %v4159_v22  ;;  %v4095_v3 = vld [vmem:[%s8798_s3 + $0x28] sm:$0xf]  ;;  %v5681_v16 = vld [vmem:[%s8798_s3 + $0x34] sm:$0xf0]  ;;  %v4512_v21 = vor.u32 %v5785_v15, %v4511_v14 }
  0xea   :  { %2273 = vmatmul.bf16.vlgmr.msra.gmra.mxu2 %v7011_v44  ;;  %2286 = vmatmul.bf16.vlgmr.msra.gmra.mxu3 %v7022_v51  ;;  %v4367_v22 = vld [vmem:[%s8798_s3 + $0x248] sm:$0xf]  ;;  %v4096_v26 = vor.u32 %v5681_v16, %v4095_v3  ;;  %v5745_v39 = vld [vmem:[%s8798_s3 + $0x234] sm:$0xf0] }
  0xeb   :  { %2334 = vmatpush.bf16.msrb.mxu3 %v5020_v37  ;;  %v5693_v37 = vld [vmem:[%s8798_s3 + $0x94] sm:$0xf0]  ;;  %v4495_v25 = vld [vmem:[%s8798_s3 + $0x348] sm:$0xf] }
  0xec   :  { %2321 = vmatpush.bf16.msrb.mxu2 %v4892_v36  ;;  %2297 = vmatpush.bf16.msrb.mxu0 %v4604_v41  ;;  %v4143_v36 = vld [vmem:[%s8798_s3 + $0x88] sm:$0xf]  ;;  %v4560_v41 = vor.u32 %v5797_v35, %v4559_v48  ;;  %v5833_v48 = vld [vmem:[%s8798_s3 + $0x4f4] sm:$0xf0] }
  0xed   :  { %2310 = vmatpush.bf16.msrb.mxu1 %v4732_v43  ;;  %v4415_v43 = vld [vmem:[%s8798_s3 + $0x2a8] sm:$0xf]  ;;  %v4144_v47 = vor.u32 %v5693_v37, %v4143_v36  ;;  %v5865_v36 = vld [vmem:[%s8798_s3 + $0x5f4] sm:$0xf0] }
  0xee   :  { %v4416_v57 = vor.u32 %v5761_v46, %v4415_v43  ;;  %v4207_v31 = vld [vmem:[%s8798_s3 + $0x108] sm:$0xf]  ;;  %v5777_v46 = vld [vmem:[%s8798_s3 + $0x334] sm:$0xf0] }
  0xef   :  { %2335 = vmatpush.bf16.msrb.mxu3 %v5004_v58  ;;  %v4544_v58 = vor.u32 %v5793_v52, %v4543_v50  ;;  %v4831_v35 = vld [vmem:[%s8798_s3 + $0x5e8] sm:$0xf]  ;;  %v5773_v60 = vld [vmem:[%s8798_s3 + $0x314] sm:$0xf0] }
  0xf0   :  { %2322 = vmatpush.bf16.msrb.mxu2 %v4876_v54  ;;  %2298 = vmatpush.bf16.msrb.mxu0 %v4588_v61  ;;  %v5689_v54 = vld [vmem:[%s8798_s3 + $0x74] sm:$0xf0]  ;;  %v4351_v38 = vld [vmem:[%s8798_s3 + $0x228] sm:$0xf] }
  0xf1   :  { %2311 = vmatpush.bf16.msrb.mxu1 %v4716_v62  ;;  %v4128_v61 = vor.u32 %v5689_v54, %v4127_v53  ;;  %v4256_v62 = vor.u32 %v5721_v56, %v4255_v55  ;;  %v4479_v43 = vld [vmem:[%s8798_s3 + $0x328] sm:$0xf]  ;;  %v4352_v52 = vor.u32 %v5745_v39, %v4351_v38  ;;  %v5829_v53 = vld [vmem:[%s8798_s3 + $0x4d4] sm:$0xf0] }
  0xf2   :  { %v4687_v50 = vld [vmem:[%s8798_s3 + $0x4c8] sm:$0xf]  ;;  %v5861_v55 = vld [vmem:[%s8798_s3 + $0x5d4] sm:$0xf0]  ;;  %v4480_v56 = vor.u32 %v5777_v46, %v4479_v43 }
  0xf3   :  { %2336 = vmatpush.bf16.msrb.mxu3 %v4988_v11  ;;  %2299 = vmatmul.bf16.vlgmr.msrb.gmra.mxu0 %v7164_v7  ;;  %v5753_v11 = vld [vmem:[%s8798_s3 + $0x274] sm:$0xf0]  ;;  %v4815_v54 = vld [vmem:[%s8798_s3 + $0x5c8] sm:$0xf]  ;;  %v4688_v63 = vor.u32 %v5829_v53, %v4687_v50 }
  0xf4   :  { %2343 = vmatpush.bf16.msra.mxu0 %v4192_v1  ;;  %2323 = vmatpush.bf16.msrb.mxu2 %v4860_v5  ;;  %v4111_v1 = vld [vmem:[%s8798_s3 + $0x48] sm:$0xf]  ;;  %v5717_v5 = vld [vmem:[%s8798_s3 + $0x154] sm:$0xf0]  ;;  %v4384_v20 = vor.u32 %v5753_v11, %v4383_v9  ;;  %v4816_v0 = vor.u32 %v5861_v55, %v4815_v54 }
  0xf5   :  { %2356 = vmatpush.bf16.msra.mxu1 %v4320_v2  ;;  %v5685_v2 = vld [vmem:[%s8798_s3 + $0x54] sm:$0xf0]  ;;  %v4240_v13 = vor.u32 %v5717_v5, %v4239_v4  ;;  %v4463_v59 = vld [vmem:[%s8798_s3 + $0x308] sm:$0xf] }
  0xf6   :  { %2312 = vmatmul.bf16.vlgmr.msrb.gmra.mxu1 %v7167_v10  ;;  %v4112_v12 = vor.u32 %v5685_v2, %v4111_v1  ;;  %v5087_v1 = vld [vmem:[%s8798_s3 + $0x7e8] sm:$0xf]  ;;  %v5929_v2 = vld [vmem:[%s8798_s3 + $0x7f4] sm:$0xf0] }
  0xf7   :  { %2337 = vmatpush.bf16.msrb.mxu3 %v4972_v28  ;;  %v5781_v28 = vld [vmem:[%s8798_s3 + $0x354] sm:$0xf0]  ;;  %v4671_v5 = vld [vmem:[%s8798_s3 + $0x4a8] sm:$0xf] }
  0xf8   :  { %2344 = vmatpush.bf16.msra.mxu0 %v4176_v17  ;;  %2324 = vmatpush.bf16.msrb.mxu2 %v4844_v24  ;;  %v4223_v17 = vld [vmem:[%s8798_s3 + $0x128] sm:$0xf]  ;;  %v5749_v24 = vld [vmem:[%s8798_s3 + $0x254] sm:$0xf0]  ;;  %v4496_v37 = vor.u32 %v5781_v28, %v4495_v25 }
  0xf9   :  { %2357 = vmatpush.bf16.msra.mxu1 %v4304_v19  ;;  %v5713_v19 = vld [vmem:[%s8798_s3 + $0x134] sm:$0xf0]  ;;  %v4799_v11 = vld [vmem:[%s8798_s3 + $0x5a8] sm:$0xf] }
  0xfa   :  { %2338 = vmatmul.bf16.vlgmr.msrb.gmra.mxu3 %v7221_v45  ;;  %v4224_v27 = vor.u32 %v5713_v19, %v4223_v17  ;;  %v4943_v14 = vld [vmem:[%s8798_s3 + $0x6c8] sm:$0xf]  ;;  %v5893_v15 = vld [vmem:[%s8798_s3 + $0x6d4] sm:$0xf0] }
  0xfb   :  { %2382 = vmatpush.bf16.msra.mxu3 %v4576_v30  ;;  %2325 = vmatmul.bf16.vlgmr.msrb.gmra.mxu2 %v7219_v42  ;;  %v5677_v30 = vld [vmem:[%s8798_s3 + $0x14] sm:$0xf0]  ;;  %v5071_v16 = vld [vmem:[%s8798_s3 + $0x7c8] sm:$0xf] }
  0xfc   :  { %2369 = vmatpush.bf16.msra.mxu2 %v4448_v29  ;;  %2345 = vmatpush.bf16.msra.mxu0 %v4160_v33  ;;  %v4079_v29 = vld [vmem:[%s8798_s3 + $0x8] sm:$0xf]  ;;  %v5925_v17 = vld [vmem:[%s8798_s3 + $0x7d4] sm:$0xf0] }
  0xfd   :  { %2358 = vmatpush.bf16.msra.mxu1 %v4288_v34  ;;  %v4703_v33 = vld [vmem:[%s8798_s3 + $0x4e8] sm:$0xf]  ;;  %v4368_v34 = vor.u32 %v5749_v24, %v4367_v22  ;;  %v4944_v22 = vor.u32 %v5893_v15, %v4943_v14  ;;  %v5853_v25 = vld [vmem:[%s8798_s3 + $0x594] sm:$0xf0] }
  0xfe   :  { %v4783_v24 = vld [vmem:[%s8798_s3 + $0x588] sm:$0xf]  ;;  %v5889_v28 = vld [vmem:[%s8798_s3 + $0x6b4] sm:$0xf0] }
  0xff   :  { %2383 = vmatpush.bf16.msra.mxu3 %v4560_v41  ;;  %v4208_v41 = vor.u32 %v5709_v32, %v4207_v31  ;;  %v5921_v31 = vld [vmem:[%s8798_s3 + $0x7b4] sm:$0xf0]  ;;  %v4784_v32 = vor.u32 %v5853_v25, %v4783_v24  ;;  %v4911_v38 = vld [vmem:[%s8798_s3 + $0x688] sm:$0xf] }
 0x100   :  { %2370 = vmatpush.bf16.msra.mxu2 %v4432_v40  ;;  %2346 = vmatpush.bf16.msra.mxu0 %v4144_v47  ;;  %v4080_v40 = vor.u32 %v5677_v30, %v4079_v29  ;;  %v4704_v47 = vor.u32 %v5833_v48, %v4703_v33  ;;  %v5055_v30 = vld [vmem:[%s8798_s3 + $0x7a8] sm:$0xf]  ;;  %v5885_v39 = vld [vmem:[%s8798_s3 + $0x694] sm:$0xf0] }
 0x101   :  { %2359 = vmatpush.bf16.msra.mxu1 %v4272_v49  ;;  %v4832_v49 = vor.u32 %v5865_v36, %v4831_v35  ;;  %v4639_v33 = vld [vmem:[%s8798_s3 + $0x468] sm:$0xf]  ;;  %v5849_v36 = vld [vmem:[%s8798_s3 + $0x574] sm:$0xf0]  ;;  %v4912_v50 = vor.u32 %v5885_v39, %v4911_v38 }
 0x102   :  { %v4767_v35 = vld [vmem:[%s8798_s3 + $0x568] sm:$0xf]  ;;  %v5917_v43 = vld [vmem:[%s8798_s3 + $0x794] sm:$0xf0] }
 0x103   :  { %2384 = vmatpush.bf16.msra.mxu3 %v4544_v58  ;;  %v5741_v58 = vld [vmem:[%s8798_s3 + $0x214] sm:$0xf0]  ;;  %v4768_v46 = vor.u32 %v5849_v36, %v4767_v35  ;;  %v4895_v55 = vld [vmem:[%s8798_s3 + $0x668] sm:$0xf] }
 0x104   :  { %2371 = vmatpush.bf16.msra.mxu2 %v4416_v57  ;;  %2347 = vmatpush.bf16.msra.mxu0 %v4128_v61  ;;  %v4335_v57 = vld [vmem:[%s8798_s3 + $0x208] sm:$0xf]  ;;  %v5845_v53 = vld [vmem:[%s8798_s3 + $0x554] sm:$0xf0] }
 0x105   :  { %2360 = vmatpush.bf16.msra.mxu1 %v4256_v62  ;;  %v4959_v61 = vld [vmem:[%s8798_s3 + $0x6e8] sm:$0xf]  ;;  %v5897_v62 = vld [vmem:[%s8798_s3 + $0x6f4] sm:$0xf0]  ;;  %v4336_v4 = vor.u32 %v5741_v58, %v4335_v57 }
 0x106   :  { %v4960_v9 = vor.u32 %v5897_v62, %v4959_v61  ;;  %v5023_v58 = vld [vmem:[%s8798_s3 + $0x768] sm:$0xf]  ;;  %v5809_v62 = vld [vmem:[%s8798_s3 + $0x434] sm:$0xf0] }
 0x107   :  { %2385 = vmatpush.bf16.msra.mxu3 %v4528_v8  ;;  %v4464_v8 = vor.u32 %v5773_v60, %v4463_v59  ;;  %v5913_v59 = vld [vmem:[%s8798_s3 + $0x774] sm:$0xf0]  ;;  %v4607_v61 = vld [vmem:[%s8798_s3 + $0x428] sm:$0xf] }
 0x108   :  { %2372 = vmatpush.bf16.msra.mxu2 %v4400_v6  ;;  %2348 = vmatpush.bf16.msra.mxu0 %v4112_v12  ;;  %v5825_v6 = vld [vmem:[%s8798_s3 + $0x4b4] sm:$0xf0]  ;;  %v4719_v14 = vld [vmem:[%s8798_s3 + $0x508] sm:$0xf] }
 0x109   :  { %2361 = vmatpush.bf16.msra.mxu1 %v4240_v13  ;;  %v5857_v12 = vld [vmem:[%s8798_s3 + $0x5b4] sm:$0xf0]  ;;  %v5088_v13 = vor.u32 %v5929_v2, %v5087_v1  ;;  %v4672_v3 = vor.u32 %v5825_v6, %v4671_v5  ;;  %v5024_v2 = vor.u32 %v5913_v59, %v5023_v58  ;;  %v4608_v6 = vor.u32 %v5809_v62, %v4607_v61  ;;  %v4847_v36 = vld [vmem:[%s8798_s3 + $0x608] sm:$0xf]  ;;  %v5763_v59 = vld [vmem:[%s8798_s3 + $0x2cc] sm:$0xf] }
 0x10a   :  { %v4800_v19 = vor.u32 %v5857_v12, %v4799_v11  ;;  %v5841_v1 = vld [vmem:[%s8798_s3 + $0x534] sm:$0xf0]  ;;  %v4591_v11 = vld [vmem:[%s8798_s3 + $0x408] sm:$0xf]  ;;  %v5795_v62 = vld [vmem:[%s8798_s3 + $0x3cc] sm:$0xf] }
 0x10b   :  { %2386 = vmatpush.bf16.msra.mxu3 %v4512_v21  ;;  %v5821_v21 = vld [vmem:[%s8798_s3 + $0x494] sm:$0xf0]  ;;  %v4975_v38 = vld [vmem:[%s8798_s3 + $0x708] sm:$0xf] }
 0x10c   :  { %2373 = vmatpush.bf16.msra.mxu2 %v4384_v20  ;;  %2349 = vmatpush.bf16.msra.mxu0 %v4096_v26  ;;  %v4655_v20 = vld [vmem:[%s8798_s3 + $0x488] sm:$0xf]  ;;  %v5072_v26 = vor.u32 %v5925_v17, %v5071_v16  ;;  %v5877_v5 = vld [vmem:[%s8798_s3 + $0x654] sm:$0xf0]  ;;  %v5703_v16 = vld [vmem:[%s8798_s3 + $0xec] sm:$0xf] }
 0x10d   :  { %2362 = vmatpush.bf16.msra.mxu1 %v4224_v27  ;;  %v4927_v27 = vld [vmem:[%s8798_s3 + $0x6a8] sm:$0xf]  ;;  %v4656_v29 = vor.u32 %v5821_v21, %v4655_v20  ;;  %v5837_v15 = vld [vmem:[%s8798_s3 + $0x514] sm:$0xf0]  ;;  %v4193_v17 = vld [vmem:[%s8798_s3 + $0xf8] sm:$0xf0] }
 0x10e   :  { %v4928_v48 = vor.u32 %v5889_v28, %v4927_v27  ;;  %v4321_v21 = vld [vmem:[%s8798_s3 + $0x1f8] sm:$0xf0]  ;;  %v5873_v24 = vld [vmem:[%s8798_s3 + $0x634] sm:$0xf0]  ;;  %v4720_v28 = vor.u32 %v5837_v15, %v4719_v14  ;;  %v5791_v15 = vld [vmem:[%s8798_s3 + $0x3ac] sm:$0xf] }
 0x10f   :  { %2387 = vmatpush.bf16.msra.mxu3 %v4496_v37  ;;  %v5056_v37 = vor.u32 %v5921_v31, %v5055_v30  ;;  %v5905_v27 = vld [vmem:[%s8798_s3 + $0x734] sm:$0xf0]  ;;  %v5699_v30 = vld [vmem:[%s8798_s3 + $0xcc] sm:$0xf] }
 0x110   :  { %2374 = vmatpush.bf16.msra.mxu2 %v4368_v34  ;;  %2350 = vmatpush.bf16.msra.mxu0 %v4080_v40  ;;  %v5817_v34 = vld [vmem:[%s8798_s3 + $0x474] sm:$0xf0] }
 0x111   :  { %2363 = vmatpush.bf16.msra.mxu1 %v4208_v41  ;;  %v4640_v40 = vor.u32 %v5817_v34, %v4639_v33  ;;  %v5039_v41 = vld [vmem:[%s8798_s3 + $0x788] sm:$0xf]  ;;  %v4177_v33 = vld [vmem:[%s8798_s3 + $0xd8] sm:$0xf0]  ;;  %v5731_v34 = vld [vmem:[%s8798_s3 + $0x1cc] sm:$0xf] }
 0x112   :  { %v5040_v54 = vor.u32 %v5917_v43, %v5039_v41  ;;  %v5901_v39 = vld [vmem:[%s8798_s3 + $0x714] sm:$0xf0]  ;;  %v4449_v41 = vld [vmem:[%s8798_s3 + $0x2f8] sm:$0xf0]  ;;  %v4180_v43 = vor.u32 %v5699_v30, %v4177_v33 }
 0x113   :  { %2388 = vmatpush.bf16.msra.mxu3 %v4480_v56  ;;  %2351 = vmatmul.bf16.vlgmr.msra.gmra.mxu0 %v6968_v18  ;;  %v5881_v56 = vld [vmem:[%s8798_s3 + $0x674] sm:$0xf0] }
 0x114   :  { %2395 = vmatpush.bf16.msrb.mxu0 %v4704_v47  ;;  %2375 = vmatpush.bf16.msra.mxu2 %v4352_v52  ;;  %v4623_v47 = vld [vmem:[%s8798_s3 + $0x448] sm:$0xf] }
 0x115   :  { %2408 = vmatpush.bf16.msrb.mxu1 %v4832_v49  ;;  %v5813_v49 = vld [vmem:[%s8798_s3 + $0x454] sm:$0xf0]  ;;  %v4751_v52 = vld [vmem:[%s8798_s3 + $0x548] sm:$0xf] }
 0x116   :  { %2364 = vmatmul.bf16.vlgmr.msra.gmra.mxu1 %v6977_v23  ;;  %v4624_v57 = vor.u32 %v5813_v49, %v4623_v47  ;;  %v4752_v60 = vor.u32 %v5845_v53, %v4751_v52  ;;  %v4577_v47 = vld [vmem:[%s8798_s3 + $0x3f8] sm:$0xf0]  ;;  %v5695_v52 = vld [vmem:[%s8798_s3 + $0xac] sm:$0xf] }
 0x117   :  { %2389 = vmatpush.bf16.msra.mxu3 %v4464_v8  ;;  %v5007_v8 = vld [vmem:[%s8798_s3 + $0x748] sm:$0xf]  ;;  %v4161_v53 = vld [vmem:[%s8798_s3 + $0xb8] sm:$0xf0] }
 0x118   :  { %2396 = vmatpush.bf16.msrb.mxu0 %v4688_v63  ;;  %2376 = vmatpush.bf16.msra.mxu2 %v4336_v4  ;;  %v4896_v63 = vor.u32 %v5881_v56, %v4895_v55  ;;  %v4879_v4 = vld [vmem:[%s8798_s3 + $0x648] sm:$0xf]  ;;  %v5727_v56 = vld [vmem:[%s8798_s3 + $0x1ac] sm:$0xf]  ;;  %v4164_v61 = vor.u32 %v5695_v52, %v4161_v53  ;;  %v4225_v53 = vld [vmem:[%s8798_s3 + $0x138] sm:$0xf0] }
 0x119   :  { %2409 = vmatpush.bf16.msrb.mxu1 %v4816_v0  ;;  %v4735_v0 = vld [vmem:[%s8798_s3 + $0x528] sm:$0xf]  ;;  %v5711_v52 = vld [vmem:[%s8798_s3 + $0x12c] sm:$0xf] }
 0x11a   :  { %2390 = vmatmul.bf16.vlgmr.msra.gmra.mxu3 %v7022_v51  ;;  %v4736_v12 = vor.u32 %v5841_v1, %v4735_v0  ;;  %v5691_v1 = vld [vmem:[%s8798_s3 + $0x8c] sm:$0xf] }
 0x11b   :  { %2434 = vmatpush.bf16.msrb.mxu3 %v5088_v13  ;;  %2377 = vmatmul.bf16.vlgmr.msra.gmra.mxu2 %v7011_v44  ;;  %v5805_v13 = vld [vmem:[%s8798_s3 + $0x414] sm:$0xf0] }
 0x11c   :  { %2421 = vmatpush.bf16.msrb.mxu2 %v4960_v9  ;;  %2397 = vmatpush.bf16.msrb.mxu0 %v4672_v3  ;;  %v5909_v9 = vld [vmem:[%s8798_s3 + $0x754] sm:$0xf0]  ;;  %v4880_v3 = vor.u32 %v5877_v5, %v4879_v4  ;;  %v4592_v25 = vor.u32 %v5805_v13, %v4591_v11  ;;  %v4417_v13 = vld [vmem:[%s8798_s3 + $0x2b8] sm:$0xf0] }
 0x11d   :  { %2410 = vmatpush.bf16.msrb.mxu1 %v4800_v19  ;;  %v5735_v19 = vld [vmem:[%s8798_s3 + $0x1ec] sm:$0xf]  ;;  %v5008_v20 = vor.u32 %v5909_v9, %v5007_v8  ;;  %v4273_v8 = vld [vmem:[%s8798_s3 + $0x198] sm:$0xf0] }
 0x11e   :  { %v4324_v31 = vor.u32 %v5735_v19, %v4321_v21  ;;  %v4129_v19 = vld [vmem:[%s8798_s3 + $0x78] sm:$0xf0]  ;;  %v5719_v21 = vld [vmem:[%s8798_s3 + $0x16c] sm:$0xf] }
 0x11f   :  { %2435 = vmatpush.bf16.msrb.mxu3 %v5072_v26  ;;  %v4991_v26 = vld [vmem:[%s8798_s3 + $0x728] sm:$0xf] }
 0x120   :  { %2422 = vmatpush.bf16.msrb.mxu2 %v4944_v22  ;;  %2398 = vmatpush.bf16.msrb.mxu0 %v4656_v29  ;;  %v4863_v22 = vld [vmem:[%s8798_s3 + $0x628] sm:$0xf]  ;;  %v4196_v29 = vor.u32 %v5703_v16, %v4193_v17  ;;  %v4992_v35 = vor.u32 %v5905_v27, %v4991_v26  ;;  %v5687_v17 = vld [vmem:[%s8798_s3 + $0x6c] sm:$0xf]  ;;  %v4401_v26 = vld [vmem:[%s8798_s3 + $0x298] sm:$0xf0] }
 0x121   :  { %2411 = vmatpush.bf16.msrb.mxu1 %v4784_v32  ;;  %v4864_v32 = vor.u32 %v5873_v24, %v4863_v22  ;;  %v4257_v22 = vld [vmem:[%s8798_s3 + $0x178] sm:$0xf0]  ;;  %v4132_v27 = vor.u32 %v5687_v17, %v4129_v19 }
 0x122   :  { %v4260_v30 = vor.u32 %v5719_v21, %v4257_v22  ;;  %v4481_v17 = vld [vmem:[%s8798_s3 + $0x338] sm:$0xf0]  ;;  %v5827_v21 = vld [vmem:[%s8798_s3 + $0x4cc] sm:$0xf] }
 0x123   :  { %2436 = vmatpush.bf16.msrb.mxu3 %v5056_v37  ;;  %v5869_v37 = vld [vmem:[%s8798_s3 + $0x614] sm:$0xf0] }
 0x124   :  { %2423 = vmatpush.bf16.msrb.mxu2 %v4928_v48  ;;  %2399 = vmatpush.bf16.msrb.mxu0 %v4640_v40  ;;  %v4305_v48 = vld [vmem:[%s8798_s3 + $0x1d8] sm:$0xf0]  ;;  %v5767_v40 = vld [vmem:[%s8798_s3 + $0x2ec] sm:$0xf] }
 0x125   :  { %2412 = vmatpush.bf16.msrb.mxu1 %v4768_v46  ;;  %v5799_v46 = vld [vmem:[%s8798_s3 + $0x3ec] sm:$0xf]  ;;  %v4308_v49 = vor.u32 %v5731_v34, %v4305_v48  ;;  %v4452_v55 = vor.u32 %v5767_v40, %v4449_v41 }
 0x126   :  { %v4580_v58 = vor.u32 %v5799_v46, %v4577_v47  ;;  %v5715_v48 = vld [vmem:[%s8798_s3 + $0x14c] sm:$0xf] }
 0x127   :  { %2437 = vmatpush.bf16.msrb.mxu3 %v5040_v54  ;;  %v4976_v54 = vor.u32 %v5901_v39, %v4975_v38  ;;  %v5751_v38 = vld [vmem:[%s8798_s3 + $0x26c] sm:$0xf]  ;;  %v4385_v39 = vld [vmem:[%s8798_s3 + $0x278] sm:$0xf0] }
 0x128   :  { %2424 = vmatpush.bf16.msrb.mxu2 %v4912_v50  ;;  %2400 = vmatpush.bf16.msrb.mxu0 %v4624_v57  ;;  %v4848_v50 = vor.u32 %v5869_v37, %v4847_v36  ;;  %v4289_v57 = vld [vmem:[%s8798_s3 + $0x1b8] sm:$0xf0]  ;;  %v5783_v41 = vld [vmem:[%s8798_s3 + $0x36c] sm:$0xf] }
 0x129   :  { %2413 = vmatpush.bf16.msrb.mxu1 %v4752_v60  ;;  %v4433_v60 = vld [vmem:[%s8798_s3 + $0x2d8] sm:$0xf0]  ;;  %v4292_v0 = vor.u32 %v5727_v56, %v4289_v57  ;;  %v5679_v47 = vld [vmem:[%s8798_s3 + $0x2c] sm:$0xf] }
 0x12a   :  { %v4436_v5 = vor.u32 %v5763_v59, %v4433_v60  ;;  %v5747_v56 = vld [vmem:[%s8798_s3 + $0x24c] sm:$0xf]  ;;  %v4369_v57 = vld [vmem:[%s8798_s3 + $0x258] sm:$0xf0] }
 0x12b   :  { %2438 = vmatpush.bf16.msrb.mxu3 %v5024_v2  ;;  %v4145_v2 = vld [vmem:[%s8798_s3 + $0x98] sm:$0xf0]  ;;  %v5779_v60 = vld [vmem:[%s8798_s3 + $0x34c] sm:$0xf] }
 0x12c   :  { %2425 = vmatpush.bf16.msrb.mxu2 %v4896_v63  ;;  %2401 = vmatpush.bf16.msrb.mxu0 %v4608_v6  ;;  %v4561_v63 = vld [vmem:[%s8798_s3 + $0x3d8] sm:$0xf0]  ;;  %v5723_v6 = vld [vmem:[%s8798_s3 + $0x18c] sm:$0xf]  ;;  %v4148_v14 = vor.u32 %v5691_v1, %v4145_v2 }
 0x12d   :  { %2414 = vmatpush.bf16.msrb.mxu1 %v4736_v12  ;;  %v4564_v9 = vor.u32 %v5795_v62, %v4561_v63  ;;  %v5759_v12 = vld [vmem:[%s8798_s3 + $0x2ac] sm:$0xf]  ;;  %v4276_v16 = vor.u32 %v5723_v6, %v4273_v8  ;;  %v4228_v63 = vor.u32 %v5711_v52, %v4225_v53  ;;  %v4209_v2 = vld [vmem:[%s8798_s3 + $0x118] sm:$0xf0] }
 0x12e   :  { %v5675_v62 = vld [vmem:[%s8798_s3 + $0xc] sm:$0xf]  ;;  %v4705_v8 = vld [vmem:[%s8798_s3 + $0x4f8] sm:$0xf0] }
 0x12f   :  { %2439 = vmatpush.bf16.msrb.mxu3 %v5008_v20  ;;  %v7833_v4 = vpop.f32.mrf.mxu0  ;;  %v7841_v11 = vpop.f32.mrf.mxu1  ;;  %v4420_v20 = vor.u32 %v5759_v12, %v4417_v13  ;;  %v5707_v1 = vld [vmem:[%s8798_s3 + $0x10c] sm:$0xf]  ;;  %v4833_v13 = vld [vmem:[%s8798_s3 + $0x5f8] sm:$0xf0] }
 0x130   :  { %2426 = vmatpush.bf16.msrb.mxu2 %v4880_v3  ;;  %2402 = vmatpush.bf16.msrb.mxu0 %v4592_v25  ;;  %v4545_v3 = vld [vmem:[%s8798_s3 + $0x3b8] sm:$0xf0]  ;;  %v5755_v25 = vld [vmem:[%s8798_s3 + $0x28c] sm:$0xf]  ;;  %v4212_v19 = vor.u32 %v5707_v1, %v4209_v2 }
 0x131   :  { %2415 = vmatpush.bf16.msrb.mxu1 %v4720_v28  ;;  %v4548_v24 = vor.u32 %v5791_v15, %v4545_v3  ;;  %v5787_v28 = vld [vmem:[%s8798_s3 + $0x38c] sm:$0xf]  ;;  %v4404_v34 = vor.u32 %v5755_v25, %v4401_v26  ;;  %v4353_v15 = vld [vmem:[%s8798_s3 + $0x238] sm:$0xf0] }
 0x132   :  { %v5831_v6 = vld [vmem:[%s8798_s3 + $0x4ec] sm:$0xf]  ;;  %v4689_v25 = vld [vmem:[%s8798_s3 + $0x4d8] sm:$0xf0] }
 0x133   :  { %2440 = vmatpush.bf16.msrb.mxu3 %v4992_v35  ;;  %2403 = vmatmul.bf16.vlgmr.msrb.gmra.mxu0 %v7164_v7  ;;  %v4241_v35 = vld [vmem:[%s8798_s3 + $0x158] sm:$0xf0]  ;;  %v5859_v26 = vld [vmem:[%s8798_s3 + $0x5cc] sm:$0xf] }
 0x134   :  { %2447 = vmatpush.bf16.msra.mxu0 %v4196_v29  ;;  %2427 = vmatpush.bf16.msrb.mxu2 %v4864_v32  ;;  %v4529_v29 = vld [vmem:[%s8798_s3 + $0x398] sm:$0xf0]  ;;  %v4244_v46 = vor.u32 %v5715_v48, %v4241_v35  ;;  %v5895_v48 = vld [vmem:[%s8798_s3 + $0x6ec] sm:$0xf] }
 0x135   :  { %2460 = vmatpush.bf16.msra.mxu1 %v4324_v31  ;;  %v5683_v31 = vld [vmem:[%s8798_s3 + $0x4c] sm:$0xf]  ;;  %v4113_v32 = vld [vmem:[%s8798_s3 + $0x58] sm:$0xf0]  ;;  %v4532_v36 = vor.u32 %v5787_v28, %v4529_v29 }
 0x136   :  { %2416 = vmatmul.bf16.vlgmr.msrb.gmra.mxu1 %v7167_v10  ;;  %v4116_v40 = vor.u32 %v5683_v31, %v4113_v32  ;;  %v4337_v31 = vld [vmem:[%s8798_s3 + $0x218] sm:$0xf0]  ;;  %v5771_v32 = vld [vmem:[%s8798_s3 + $0x30c] sm:$0xf] }
 0x137   :  { %2441 = vmatpush.bf16.msrb.mxu3 %v4976_v54  ;;  %v2146_v33 = vpop.f32.mrf.mxu0  ;;  %v2159_v37 = vpop.f32.mrf.mxu1  ;;  %v4961_v35 = vld [vmem:[%s8798_s3 + $0x6f8] sm:$0xf0]  ;;  %v5891_v53 = vld [vmem:[%s8798_s3 + $0x6cc] sm:$0xf] }
 0x138   :  { %2448 = vmatpush.bf16.msra.mxu0 %v4180_v43  ;;  %2428 = vmatpush.bf16.msrb.mxu2 %v4848_v50  ;;  %v4513_v43 = vld [vmem:[%s8798_s3 + $0x378] sm:$0xf0]  ;;  %v4388_v50 = vor.u32 %v5751_v38, %v4385_v39  ;;  %v5927_v37 = vld [vmem:[%s8798_s3 + $0x7ec] sm:$0xf] }
 0x139   :  { %2461 = vmatpush.bf16.msra.mxu1 %v4308_v49  ;;  %v4097_v49 = vld [vmem:[%s8798_s3 + $0x38] sm:$0xf0]  ;;  %v5887_v2 = vld [vmem:[%s8798_s3 + $0x6ac] sm:$0xf] }
 0x13a   :  { %2442 = vmatmul.bf16.vlgmr.msrb.gmra.mxu3 %v7221_v45  ;;  %v4100_v59 = vor.u32 %v5679_v47, %v4097_v49  ;;  %v5089_v38 = vld [vmem:[%s8798_s3 + $0x7f8] sm:$0xf0]  ;;  %v4964_v47 = vor.u32 %v5895_v48, %v4961_v35  ;;  %v5855_v49 = vld [vmem:[%s8798_s3 + $0x5ac] sm:$0xf] }
 0x13b   :  { %2486 = vmatpush.bf16.msra.mxu3 %v4580_v58  ;;  %2429 = vmatmul.bf16.vlgmr.msrb.gmra.mxu2 %v7219_v42  ;;  %v5092_v52 = vor.u32 %v5927_v37, %v5089_v38  ;;  %v5911_v35 = vld [vmem:[%s8798_s3 + $0x76c] sm:$0xf] }
 0x13c   :  { %2473 = vmatpush.bf16.msra.mxu2 %v4452_v55  ;;  %2449 = vmatpush.bf16.msra.mxu0 %v4164_v61  ;;  %v4516_v55 = vor.u32 %v5783_v41, %v4513_v43  ;;  %v4497_v61 = vld [vmem:[%s8798_s3 + $0x358] sm:$0xf0]  ;;  %v5823_v41 = vld [vmem:[%s8798_s3 + $0x4ac] sm:$0xf] }
 0x13d   :  { %2462 = vmatpush.bf16.msra.mxu1 %v4292_v0  ;;  %v7925_v58 = vpop.f32.mrf.mxu3  ;;  %v4081_v0 = vld [vmem:[%s8798_s3 + $0x18] sm:$0xf0]  ;;  %v4500_v12 = vor.u32 %v5779_v60, %v4497_v61  ;;  %v5807_v38 = vld [vmem:[%s8798_s3 + $0x42c] sm:$0xf] }
 0x13e   :  { %v7917_v54 = vpop.f32.mrf.mxu2  ;;  %v4084_v3 = vor.u32 %v5675_v62, %v4081_v0  ;;  %v4673_v43 = vld [vmem:[%s8798_s3 + $0x4b8] sm:$0xf0]  ;;  %v5851_v62 = vld [vmem:[%s8798_s3 + $0x58c] sm:$0xf] }
 0x13f   :  { %2487 = vmatpush.bf16.msra.mxu3 %v4564_v9  ;;  %v5863_v9 = vld [vmem:[%s8798_s3 + $0x5ec] sm:$0xf]  ;;  %v4657_v60 = vld [vmem:[%s8798_s3 + $0x498] sm:$0xf0] }
 0x140   :  { %2474 = vmatpush.bf16.msra.mxu2 %v4436_v5  ;;  %2450 = vmatpush.bf16.msra.mxu0 %v4148_v14  ;;  %v4372_v5 = vor.u32 %v5747_v56, %v4369_v57  ;;  %v5743_v14 = vld [vmem:[%s8798_s3 + $0x22c] sm:$0xf]  ;;  %v4836_v22 = vor.u32 %v5863_v9, %v4833_v13  ;;  %v5073_v57 = vld [vmem:[%s8798_s3 + $0x7d8] sm:$0xf0] }
 0x141   :  { %2463 = vmatpush.bf16.msra.mxu1 %v4276_v16  ;;  %v5775_v16 = vld [vmem:[%s8798_s3 + $0x32c] sm:$0xf] }
 0x142   :  { %v4484_v29 = vor.u32 %v5775_v16, %v4481_v17  ;;  %v5923_v56 = vld [vmem:[%s8798_s3 + $0x7cc] sm:$0xf] }
 0x143   :  { %2488 = vmatpush.bf16.msra.mxu3 %v4548_v24  ;;  %v4356_v24 = vor.u32 %v5743_v14, %v4353_v15  ;;  %v5076_v1 = vor.u32 %v5923_v56, %v5073_v57  ;;  %v5919_v9 = vld [vmem:[%s8798_s3 + $0x7ac] sm:$0xf]  ;;  %v4641_v14 = vld [vmem:[%s8798_s3 + $0x478] sm:$0xf0] }
 0x144   :  { %2475 = vmatpush.bf16.msra.mxu2 %v4420_v20  ;;  %2451 = vmatpush.bf16.msra.mxu0 %v4132_v27  ;;  %v4708_v20 = vor.u32 %v5831_v6, %v4705_v8  ;;  %v4817_v27 = vld [vmem:[%s8798_s3 + $0x5d8] sm:$0xf0]  ;;  %v5883_v17 = vld [vmem:[%s8798_s3 + $0x68c] sm:$0xf] }
 0x145   :  { %2464 = vmatpush.bf16.msra.mxu1 %v4260_v30  ;;  %v5739_v30 = vld [vmem:[%s8798_s3 + $0x20c] sm:$0xf]  ;;  %v2185_v33 = vpop.f32.mrf.mxu3  ;;  %v4820_v39 = vor.u32 %v5859_v26, %v4817_v27  ;;  %v4625_v26 = vld [vmem:[%s8798_s3 + $0x458] sm:$0xf0] }
 0x146   :  { %v2172_v28 = vpop.f32.mrf.mxu2  ;;  %v4897_v33 = vld [vmem:[%s8798_s3 + $0x678] sm:$0xf0] }
 0x147   :  { %2489 = vmatpush.bf16.msra.mxu3 %v4532_v36  ;;  %v4692_v36 = vor.u32 %v5827_v21, %v4689_v25  ;;  %v5915_v21 = vld [vmem:[%s8798_s3 + $0x78c] sm:$0xf] }
 0x148   :  { %2476 = vmatpush.bf16.msra.mxu2 %v4404_v34  ;;  %2452 = vmatpush.bf16.msra.mxu0 %v4116_v40  ;;  %v4465_v34 = vld [vmem:[%s8798_s3 + $0x318] sm:$0xf0]  ;;  %v4340_v40 = vor.u32 %v5739_v30, %v4337_v31  ;;  %v5811_v25 = vld [vmem:[%s8798_s3 + $0x44c] sm:$0xf] }
 0x149   :  { %2465 = vmatpush.bf16.msra.mxu1 %v4244_v46  ;;  %v4468_v46 = vor.u32 %v5771_v32, %v4465_v34  ;;  %v5843_v28 = vld [vmem:[%s8798_s3 + $0x54c] sm:$0xf]  ;;  %v4628_v48 = vor.u32 %v5811_v25, %v4625_v26  ;;  %v5936_v25 = vld [vmem:[%s8775_s6 + $0x30] sm:$0xff] }
 0x14a   :  { %v5879_v32 = vld [vmem:[%s8798_s3 + $0x66c] sm:$0xf] }
 0x14b   :  { %2490 = vmatpush.bf16.msra.mxu3 %v4516_v55  ;;  %v4676_v55 = vor.u32 %v5823_v41, %v4673_v43  ;;  %v5839_v41 = vld [vmem:[%s8798_s3 + $0x52c] sm:$0xf]  ;;  %v4737_v43 = vld [vmem:[%s8798_s3 + $0x538] sm:$0xf0] }
 0x14c   :  { %2477 = vmatpush.bf16.msra.mxu2 %v4388_v50  ;;  %2453 = vmatpush.bf16.msra.mxu0 %v4100_v59  ;;  %v4801_v50 = vld [vmem:[%s8798_s3 + $0x5b8] sm:$0xf0]  ;;  %v5819_v59 = vld [vmem:[%s8798_s3 + $0x48c] sm:$0xf]  ;;  %v4740_v57 = vor.u32 %v5839_v41, %v4737_v43 }
 0x14d   :  { %2466 = vmatpush.bf16.msra.mxu1 %v4228_v63  ;;  %v4785_v63 = vld [vmem:[%s8798_s3 + $0x598] sm:$0xf0]  ;;  %v4660_v8 = vor.u32 %v5819_v59, %v4657_v60 }
 0x14e   :  { %v4788_v13 = vor.u32 %v5851_v62, %v4785_v63  ;;  %v4593_v59 = vld [vmem:[%s8798_s3 + $0x418] sm:$0xf0]  ;;  %v5835_v62 = vld [vmem:[%s8798_s3 + $0x50c] sm:$0xf] }
 0x14f   :  { %2491 = vmatpush.bf16.msra.mxu3 %v4500_v12  ;;  %v8043_v0 = vpop.f32.mrf.mxu0  ;;  %v8052_v6 = vpop.f32.mrf.mxu1  ;;  %v5057_v12 = vld [vmem:[%s8798_s3 + $0x7b8] sm:$0xf0] }
 0x150   :  { %2478 = vmatpush.bf16.msra.mxu2 %v4372_v5  ;;  %2454 = vmatpush.bf16.msra.mxu0 %v4084_v3  ;;  %v4929_v5 = vld [vmem:[%s8798_s3 + $0x6b8] sm:$0xf0]  ;;  %v5847_v3 = vld [vmem:[%s8798_s3 + $0x56c] sm:$0xf]  ;;  %v5060_v16 = vor.u32 %v5919_v9, %v5057_v12 }
 0x151   :  { %2467 = vmatpush.bf16.msra.mxu1 %v4212_v19  ;;  %v4932_v15 = vor.u32 %v5887_v2, %v4929_v5  ;;  %v4913_v19 = vld [vmem:[%s8798_s3 + $0x698] sm:$0xf0]  ;;  %v5871_v5 = vld [vmem:[%s8798_s3 + $0x62c] sm:$0xf] }
 0x152   :  { %v4916_v27 = vor.u32 %v5883_v17, %v4913_v19  ;;  %v4721_v63 = vld [vmem:[%s8798_s3 + $0x518] sm:$0xf0]  ;;  %v5867_v19 = vld [vmem:[%s8798_s3 + $0x60c] sm:$0xf] }
 0x153   :  { %2492 = vmatpush.bf16.msra.mxu3 %v4484_v29  ;;  %2455 = vmatmul.bf16.vlgmr.msra.gmra.mxu0 %v6968_v18  ;;  %v4945_v18 = vld [vmem:[%s8798_s3 + $0x6d8] sm:$0xf0] }
 0x154   :  { %2499 = vmatpush.bf16.msrb.mxu0 %v4708_v20  ;;  %2479 = vmatpush.bf16.msra.mxu2 %v4356_v24  ;;  %v4948_v61 = vor.u32 %v5891_v53, %v4945_v18  ;;  %v4753_v29 = vld [vmem:[%s8798_s3 + $0x558] sm:$0xf0]  ;;  %v5907_v18 = vld [vmem:[%s8798_s3 + $0x74c] sm:$0xf] }
 0x155   :  { %2512 = vmatpush.bf16.msrb.mxu1 %v4836_v22  ;;  %v5041_v22 = vld [vmem:[%s8798_s3 + $0x798] sm:$0xf0]  ;;  %v4756_v37 = vor.u32 %v5843_v28, %v4753_v29  ;;  %v5944_v29 = vld [vmem:[%s8775_s6 + $0x70] sm:$0xff] }
 0x156   :  { %2468 = vmatmul.bf16.vlgmr.msra.gmra.mxu1 %v6977_v23  ;;  %v4804_v23 = vor.u32 %v5855_v49, %v4801_v50  ;;  %v5044_v31 = vor.u32 %v5915_v21, %v5041_v22  ;;  %v5875_v49 = vld [vmem:[%s8798_s3 + $0x64c] sm:$0xf]  ;;  %v4881_v50 = vld [vmem:[%s8798_s3 + $0x658] sm:$0xf0] }
 0x157   :  { %2493 = vmatpush.bf16.msra.mxu3 %v4468_v46  ;;  %v2198_v30 = vpop.f32.mrf.mxu0  ;;  %v2211_v34 = vpop.f32.mrf.mxu1  ;;  %v8124_v46 = vld [vmem:[%s8774_s5] sm:$0xf]  ;;  %v4977_v22 = vld [vmem:[%s8798_s3 + $0x718] sm:$0xf0] }
 0x158   :  { %2500 = vmatpush.bf16.msrb.mxu0 %v4692_v36  ;;  %2480 = vmatpush.bf16.msra.mxu2 %v4340_v40  ;;  %v5025_v36 = vld [vmem:[%s8798_s3 + $0x778] sm:$0xf0]  ;;  %v4900_v40 = vor.u32 %v5879_v32, %v4897_v33  ;;  %v847_v60 = vperm.slane %v8124_v46, 0 }
 0x159   :  { %2513 = vmatpush.bf16.msrb.mxu1 %v4820_v39  ;;  %v4609_v39 = vld [vmem:[%s8798_s3 + $0x438] sm:$0xf0] }
 0x15a   :  { %2494 = vmatmul.bf16.vlgmr.msra.gmra.mxu3 %v7022_v51  ;;  %v4769_v51 = vld [vmem:[%s8798_s3 + $0x578] sm:$0xf0]  ;;  %v4612_v53 = vor.u32 %v5807_v38, %v4609_v39 }
 0x15b   :  { %2538 = vmatpush.bf16.msrb.mxu3 %v5092_v52  ;;  %2481 = vmatmul.bf16.vlgmr.msra.gmra.mxu2 %v7011_v44  ;;  %v5815_v44 = vld [vmem:[%s8798_s3 + $0x46c] sm:$0xf]  ;;  %v4772_v24 = vor.u32 %v5847_v3, %v4769_v51  ;;  %v2145_v3 = vadd.f32 %v7833_v4, %v847_v60  ;;  %v5933_v41 = vld [vmem:[%s8775_s6 + $0x18] sm:$0xff] }
 0x15c   :  { %2525 = vmatpush.bf16.msrb.mxu2 %v4964_v47  ;;  %2501 = vmatpush.bf16.msrb.mxu0 %v4676_v55  ;;  %v4644_v20 = vor.u32 %v5815_v44, %v4641_v14  ;;  %v5028_v47 = vor.u32 %v5911_v35, %v5025_v36  ;;  %v5009_v55 = vld [vmem:[%s8798_s3 + $0x758] sm:$0xf0]  ;;  %v4724_v14 = vor.u32 %v5835_v62, %v4721_v63  ;;  %v5899_v4 = vld [vmem:[%s8798_s3 + $0x70c] sm:$0xf]  ;;  %v5930_v63 = vld [vmem:[%s8775_s6] sm:$0xff] }
 0x15d   :  { %2514 = vmatpush.bf16.msrb.mxu1 %v4804_v23  ;;  %v8132_v52 = vpop.f32.mrf.mxu2  ;;  %v8140_v56 = vpop.f32.mrf.mxu3  ;;  %v5803_v23 = vld [vmem:[%s8798_s3 + $0x40c] sm:$0xf]  ;;  %v5012_v2 = vor.u32 %v5907_v18, %v5009_v55  ;;  %v4993_v44 = vld [vmem:[%s8798_s3 + $0x738] sm:$0xf0]  ;;  %v2158_v26 = vadd.f32 %v7841_v11, %v2145_v3  ;;  %v5950_v3 = vld [vmem:[%s8775_s6 + $0xa0] sm:$0xff] }
 0x15e   :  { %v4596_v12 = vor.u32 %v5803_v23, %v4593_v59  ;;  %v5935_v11 = vld [vmem:[%s8775_s6 + $0x28] sm:$0xff]  ;;  %v5953_v60 = vld [vmem:[%s8775_s6 + $0xb8] sm:$0xff] }
 0x15f   :  { %2539 = vmatpush.bf16.msrb.mxu3 %v5076_v1  ;;  %v2248_v1 = vpop.f32.mrf.mxu0  ;;  %v2261_v9 = vpop.f32.mrf.mxu1  ;;  %v2171_v33 = vadd.f32 %v7917_v54, %v2158_v26  ;;  %v849_v26 = vperm.slane %v8124_v46, 2 }
 0x160   :  { %2526 = vmatpush.bf16.msrb.mxu2 %v4948_v61  ;;  %2502 = vmatpush.bf16.msrb.mxu0 %v4660_v8  ;;  %v4884_v61 = vor.u32 %v5875_v49, %v4881_v50  ;;  %v4865_v8 = vld [vmem:[%s8798_s3 + $0x638] sm:$0xf0] }
 0x161   :  { %2515 = vmatpush.bf16.msrb.mxu1 %v4788_v13  ;;  %v5903_v13 = vld [vmem:[%s8798_s3 + $0x72c] sm:$0xf]  ;;  %v4868_v51 = vor.u32 %v5871_v5, %v4865_v8  ;;  %v2184_v36 = vadd.f32 %v7925_v58, %v2171_v33 }
 0x162   :  { %v4996_v17 = vor.u32 %v5903_v13, %v4993_v44  ;;  %v5951_v44 = vld [vmem:[%s8775_s6 + $0xa8] sm:$0xff] }
 0x163   :  { %2540 = vmatpush.bf16.msrb.mxu3 %v5060_v16  ;;  %v5945_v16 = vld [vmem:[%s8775_s6 + $0x78] sm:$0xff]  ;;  %v2197_v38 = vadd.f32 %v8043_v0, %v2184_v36  ;;  %v5932_v0 = vld [vmem:[%s8775_s6 + $0x10] sm:$0xff]  ;;  %v5959_v36 = vld [vmem:[%s8775_s6 + $0xe8] sm:$0xff] }
 0x164   :  { %2527 = vmatpush.bf16.msrb.mxu2 %v4932_v15  ;;  %2503 = vmatpush.bf16.msrb.mxu0 %v4644_v20  ;;  %v5937_v15 = vld [vmem:[%s8775_s6 + $0x38] sm:$0xff] }
 0x165   :  { %2516 = vmatpush.bf16.msrb.mxu1 %v4772_v24  ;;  %v4849_v20 = vld [vmem:[%s8798_s3 + $0x618] sm:$0xf0]  ;;  %v2224_v21 = vpop.f32.mrf.mxu2  ;;  %v2237_v24 = vpop.f32.mrf.mxu3  ;;  %v2210_v58 = vadd.f32 %v8052_v6, %v2197_v38  ;;  %v5931_v6 = vld [vmem:[%s8775_s6 + $0x8] sm:$0xff]  ;;  %v5958_v38 = vld [vmem:[%s8775_s6 + $0xe0] sm:$0xff] }
 0x166   :  { %v4852_v28 = vor.u32 %v5867_v19, %v4849_v20  ;;  %v5948_v19 = vld [vmem:[%s8775_s6 + $0x90] sm:$0xff] }
 0x167   :  { %2541 = vmatpush.bf16.msrb.mxu3 %v5044_v31  ;;  %v2250_v30 = vpop.f32.mrf.mxu0  ;;  %v4980_v31 = vor.u32 %v5899_v4, %v4977_v22  ;;  %v2263_v32 = vpop.f32.mrf.mxu1  ;;  %v2223_v50 = vadd.f32 %v8132_v52, %v2210_v58  ;;  %v5939_v52 = vld [vmem:[%s8775_s6 + $0x48] sm:$0xff] }
 0x168   :  { %2528 = vmatpush.bf16.msrb.mxu2 %v4916_v27  ;;  %2504 = vmatpush.bf16.msrb.mxu0 %v4628_v48  ;;  %v848_v27 = vperm.slane %v8124_v46, 1  ;;  %v5943_v48 = vld [vmem:[%s8775_s6 + $0x68] sm:$0xff]  ;;  %v5961_v32 = vld [vmem:[%s8775_s6 + $0xf8] sm:$0xff] }
 0x169   :  { %2517 = vmatpush.bf16.msrb.mxu1 %v4756_v37  ;;  %v5942_v37 = vld [vmem:[%s8775_s6 + $0x60] sm:$0xff]  ;;  %v2236_v23 = vadd.f32 %v8140_v56, %v2223_v50  ;;  %v5947_v4 = vld [vmem:[%s8775_s6 + $0x88] sm:$0xff]  ;;  %v5956_v50 = vld [vmem:[%s8775_s6 + $0xd0] sm:$0xff] }
 0x16a   :  { %v2249_v34 = vadd.f32 %v2248_v1, %v848_v27  ;;  %v5938_v56 = vld [vmem:[%s8775_s6 + $0x40] sm:$0xff]  ;;  %v5343_v58 = vld [vmem:[%s8777_s8 + $0xe8] sm:$0xf] }
 0x16b   :  { %2542 = vmatpush.bf16.msrb.mxu3 %v5028_v47  ;;  %v2551_v1 = vmax.f32 %v2236_v23, 0.0  ;;  %v5335_v23 = vld [vmem:[%s8777_s8 + $0xe0] sm:$0xf] }
 0x16c   :  { %2529 = vmatpush.bf16.msrb.mxu2 %v4900_v40  ;;  %2505 = vmatpush.bf16.msrb.mxu0 %v4612_v53  ;;  %v2262_v54 = vadd.f32 %v2261_v9, %v2249_v34  ;;  %v5940_v53 = vld [vmem:[%s8775_s6 + $0x50] sm:$0xff] }
 0x16d   :  { %2518 = vmatpush.bf16.msrb.mxu1 %v4740_v57  ;;  %v2287_v35 = vpop.f32.mrf.mxu3  ;;  %v2555_v8 = vpack.c.bf16 %v2551_v1, %v2551_v1  ;;  %v5990_v1 = vld [vmem:[%s8777_s8 + $0xe4] sm:$0xf] }
 0x16f   :  { %2543 = vmatpush.bf16.msrb.mxu3 %v5012_v2 }
 0x170   :  { %2530 = vmatpush.bf16.msrb.mxu2 %v4884_v61  ;;  %2506 = vmatpush.bf16.msrb.mxu0 %v4596_v12  ;;  %v2300_v40 = vpop.f32.mrf.mxu0  ;;  %v5952_v12 = vld [vmem:[%s8775_s6 + $0xb0] sm:$0xff] }
 0x171   :  { %2519 = vmatpush.bf16.msrb.mxu1 %v4724_v14 }
 0x173   :  { %2544 = vmatpush.bf16.msrb.mxu3 %v4996_v17  ;;  %2507 = vmatmul.bf16.vlgmr.msrb.gmra.mxu0 %v7164_v7  ;;  %v2274_v7 = vpop.f32.mrf.mxu2 }
 0x174   :  { %2819 = vmatpush.bf16.msra.mxu0 %v5937_v15  ;;  %2531 = vmatpush.bf16.msrb.mxu2 %v4868_v51  ;;  %v2275_v39 = vadd.f32 %v2274_v7, %v2262_v54 }
 0x175   :  { %2832 = vmatpush.bf16.msra.mxu1 %v5945_v16  ;;  %v2289_v49 = vpop.f32.mrf.mxu3  ;;  %v5949_v16 = vld [vmem:[%s8775_s6 + $0x98] sm:$0xff] }
 0x176   :  { %2520 = vmatmul.bf16.vlgmr.msrb.gmra.mxu1 %v7167_v10  ;;  %v5934_v10 = vld [vmem:[%s8775_s6 + $0x20] sm:$0xff]  ;;  %v2288_v43 = vadd.f32 %v2287_v35, %v2275_v39 }
 0x177   :  { %2545 = vmatpush.bf16.msrb.mxu3 %v4980_v31 }
 0x178   :  { %2820 = vmatpush.bf16.msra.mxu0 %v5936_v25  ;;  %2532 = vmatpush.bf16.msrb.mxu2 %v4852_v28  ;;  %v2301_v18 = vadd.f32 %v2300_v40, %v2288_v43  ;;  %v2302_v55 = vpop.f32.mrf.mxu0  ;;  %v5946_v25 = vld [vmem:[%s8775_s6 + $0x80] sm:$0xff]  ;;  %v5993_v43 = vld [vmem:[%s8777_s8 + $0xf4] sm:$0xf0] }
 0x179   :  { %2833 = vmatpush.bf16.msra.mxu1 %v5944_v29  ;;  %v5344_v49 = vor.u32 %v5993_v43, %v5343_v58  ;;  %v5989_v55 = vld [vmem:[%s8777_s8 + $0xd4] sm:$0xf0]  ;;  %v5297_v43 = vld [vmem:[%s8777_s8 + $0x98] sm:$0xf0] }
 0x17a   :  { %2546 = vmatmul.bf16.vlgmr.msrb.gmra.mxu3 %v7221_v45  ;;  %v5941_v45 = vld [vmem:[%s8775_s6 + $0x58] sm:$0xff] }
 0x17b   :  { %2533 = vmatmul.bf16.vlgmr.msrb.gmra.mxu2 %v7219_v42  ;;  %v2313_v42 = vpop.f32.mrf.mxu1  ;;  %v2276_v47 = vpop.f32.mrf.mxu2  ;;  %2858 = vmatpush.bf16.msra.mxu3 %v5961_v32  ;;  %v5982_v32 = vld [vmem:[%s8777_s8 + $0xa4] sm:$0xf] }
 0x17c   :  { %2821 = vmatpush.bf16.msra.mxu0 %v5935_v11  ;;  %v2314_v59 = vadd.f32 %v2313_v42, %v2301_v18  ;;  %2845 = vmatpush.bf16.msra.mxu2 %v5953_v60  ;;  %v5327_v18 = vld [vmem:[%s8777_s8 + $0xc8] sm:$0xf] }
 0x17d   :  { %2834 = vmatpush.bf16.msra.mxu1 %v5943_v48  ;;  %v2339_v62 = vpop.f32.mrf.mxu3  ;;  %v5960_v48 = vld [vmem:[%s8775_s6 + $0xf0] sm:$0xff] }
 0x17f   :  { %2859 = vmatpush.bf16.msra.mxu3 %v5960_v48  ;;  %v5313_v48 = vld [vmem:[%s8777_s8 + $0xb8] sm:$0xf0] }
 0x180   :  { %2822 = vmatpush.bf16.msra.mxu0 %v5934_v10  ;;  %2846 = vmatpush.bf16.msra.mxu2 %v5952_v12 }
 0x181   :  { %2835 = vmatpush.bf16.msra.mxu1 %v5942_v37 }
 0x183   :  { %v2315_v57 = vpop.f32.mrf.mxu1  ;;  %v2326_v61 = vpop.f32.mrf.mxu2  ;;  %2860 = vmatpush.bf16.msra.mxu3 %v5959_v36  ;;  %v5263_v36 = vld [vmem:[%s8777_s8 + $0x48] sm:$0xf] }
 0x184   :  { %2823 = vmatpush.bf16.msra.mxu0 %v5933_v41  ;;  %v2327_v2 = vadd.f32 %v2326_v61, %v2314_v59  ;;  %2847 = vmatpush.bf16.msra.mxu2 %v5951_v44  ;;  %v5328_v57 = vor.u32 %v5989_v55, %v5327_v18  ;;  %v5311_v59 = vld [vmem:[%s8777_s8 + $0xa8] sm:$0xf]  ;;  %v5319_v44 = vld [vmem:[%s8777_s8 + $0xc0] sm:$0xf]  ;;  %v5969_v55 = vld [vmem:[%s8777_s8 + $0x34] sm:$0xf0] }
 0x185   :  { %2836 = vmatpush.bf16.msra.mxu1 %v5941_v45  ;;  %v2341_v15 = vpop.f32.mrf.mxu3  ;;  %v5957_v45 = vld [vmem:[%s8775_s6 + $0xd8] sm:$0xff] }
 0x186   :  { %v2340_v5 = vadd.f32 %v2339_v62, %v2327_v2  ;;  %v5985_v62 = vld [vmem:[%s8777_s8 + $0xb4] sm:$0xf0]  ;;  %v5295_v15 = vld [vmem:[%s8777_s8 + $0x88] sm:$0xf] }
 0x187   :  { %2861 = vmatpush.bf16.msra.mxu3 %v5958_v38  ;;  %v5973_v38 = vld [vmem:[%s8777_s8 + $0x54] sm:$0xf0] }
 0x188   :  { %2824 = vmatpush.bf16.msra.mxu0 %v5932_v0  ;;  %v2552_v9 = vmax.f32 %v2340_v5, 0.0  ;;  %2848 = vmatpush.bf16.msra.mxu2 %v5950_v3  ;;  %v5337_v5 = vld [vmem:[%s8777_s8 + $0xf0] sm:$0xf0] }
 0x189   :  { %2837 = vmatpush.bf16.msra.mxu1 %v5940_v53  ;;  %v5340_v12 = vor.u32 %v5990_v1, %v5337_v5  ;;  %v5965_v5 = vld [vmem:[%s8777_s8 + $0x14] sm:$0xf0] }
 0x18a   :  { %v2556_v13 = vpack.c.bf16 %v2552_v9, %v2552_v9  ;;  %v5345_v9 = vld [vmem:[%s8777_s8 + $0xf8] sm:$0xf0] }
 0x18b   :  { %v2328_v14 = vpop.f32.mrf.mxu2  ;;  %2862 = vmatpush.bf16.msra.mxu3 %v5957_v45  ;;  %v5979_v45 = vld [vmem:[%s8777_s8 + $0x8c] sm:$0xf] }
 0x18c   :  { %2825 = vmatpush.bf16.msra.mxu0 %v5931_v6  ;;  %2849 = vmatpush.bf16.msra.mxu2 %v5949_v16  ;;  %v5955_v6 = vld [vmem:[%s8775_s6 + $0xc8] sm:$0xff]  ;;  %v5988_v14 = vld [vmem:[%s8777_s8 + $0xcc] sm:$0xf0] }
 0x18d   :  { %2838 = vmatpush.bf16.msra.mxu1 %v5939_v52  ;;  %v5992_v52 = vld [vmem:[%s8777_s8 + $0xec] sm:$0xf0]  ;;  %v5320_v3 = vor.u32 %v5988_v14, %v5319_v44  ;;  %v5971_v44 = vld [vmem:[%s8777_s8 + $0x4c] sm:$0xf]  ;;  %v5265_v14 = vld [vmem:[%s8777_s8 + $0x58] sm:$0xf0] }
 0x18e   :  { %v5336_v61 = vor.u32 %v5992_v52, %v5335_v23  ;;  %v5273_v23 = vld [vmem:[%s8777_s8 + $0x70] sm:$0xf0] }
 0x18f   :  { %2863 = vmatpush.bf16.msra.mxu3 %v5956_v50  ;;  %v5247_v50 = vld [vmem:[%s8777_s8 + $0x28] sm:$0xf] }
 0x190   :  { %2826 = vmatpush.bf16.msra.mxu0 %v5930_v63  ;;  %v2352_v51 = vpop.f32.mrf.mxu0  ;;  %2850 = vmatpush.bf16.msra.mxu2 %v5948_v19  ;;  %v5954_v63 = vld [vmem:[%s8775_s6 + $0xc0] sm:$0xff]  ;;  %v5321_v19 = vld [vmem:[%s8777_s8 + $0xd0] sm:$0xf0] }
 0x191   :  { %2839 = vmatpush.bf16.msra.mxu1 %v5938_v56  ;;  %v2353_v29 = vadd.f32 %v2352_v51, %v849_v26  ;;  %v5312_v56 = vor.u32 %v5985_v62, %v5311_v59  ;;  %v5981_v51 = vld [vmem:[%s8777_s8 + $0x94] sm:$0xf0]  ;;  %v5279_v26 = vld [vmem:[%s8777_s8 + $0x68] sm:$0xf]  ;;  %v5281_v59 = vld [vmem:[%s8777_s8 + $0x78] sm:$0xf0] }
 0x192   :  { %v5296_v16 = vor.u32 %v5981_v51, %v5295_v15  ;;  %v5972_v62 = vld [vmem:[%s8777_s8 + $0x4c] sm:$0xf0]  ;;  %v5268_v51 = vor.u32 %v5971_v44, %v5265_v14  ;;  %v6013_v44 = vld [vmem:[%s8780_s10 + $0x98] sm:$0xff] }
 0x193   :  { %2827 = vmatmul.bf16.vlgmr.msra.gmra.mxu0 %v2555_v8  ;;  %v2365_v17 = vpop.f32.mrf.mxu1  ;;  %2864 = vmatpush.bf16.msra.mxu3 %v5955_v6  ;;  %v5991_v8 = vld [vmem:[%s8777_s8 + $0xec] sm:$0xf]  ;;  %v5974_v6 = vld [vmem:[%s8777_s8 + $0x64] sm:$0xf] }
 0x194   :  { %2840 = vmatmul.bf16.vlgmr.msra.gmra.mxu1 %v2556_v13  ;;  %2851 = vmatpush.bf16.msra.mxu2 %v5947_v4  ;;  %v2366_v30 = vadd.f32 %v2365_v17, %v2353_v29  ;;  %v5348_v13 = vor.u32 %v5991_v8, %v5345_v9  ;;  %v5986_v17 = vld [vmem:[%s8777_s8 + $0xc4] sm:$0xf]  ;;  %v5329_v4 = vld [vmem:[%s8777_s8 + $0xd8] sm:$0xf0]  ;;  %v5977_v29 = vld [vmem:[%s8777_s8 + $0x74] sm:$0xf0]  ;;  %v5276_v52 = vor.u32 %v5974_v6, %v5273_v23 }
 0x195   :  { %3075 = vmatpush.bf16.msrb.mxu0 %v5336_v61  ;;  %3088 = vmatpush.bf16.msrb.mxu1 %v5340_v12  ;;  %v5255_v61 = vld [vmem:[%s8777_s8 + $0x40] sm:$0xf]  ;;  %v5970_v8 = vld [vmem:[%s8777_s8 + $0x44] sm:$0xf]  ;;  %v6017_v23 = vld [vmem:[%s8780_s10 + $0xb8] sm:$0xff] }
 0x196   :  { %v5256_v1 = vor.u32 %v5972_v62, %v5255_v61  ;;  %v6000_v61 = vld [vmem:[%s8780_s10 + $0x30] sm:$0xff]  ;;  %v6025_v62 = vld [vmem:[%s8780_s10 + $0xf8] sm:$0xff] }
 0x197   :  { %2865 = vmatpush.bf16.msra.mxu3 %v5954_v63 }
 0x198   :  { %v2354_v20 = vpop.f32.mrf.mxu0  ;;  %2852 = vmatpush.bf16.msra.mxu2 %v5946_v25  ;;  %v5984_v25 = vld [vmem:[%s8777_s8 + $0xac] sm:$0xf0] }
 0x199   :  { %v5987_v20 = vld [vmem:[%s8777_s8 + $0xcc] sm:$0xf]  ;;  %3076 = vmatpush.bf16.msrb.mxu0 %v5320_v3 }
 0x19b   :  { %v2367_v21 = vpop.f32.mrf.mxu1  ;;  %3114 = vmatpush.bf16.msrb.mxu3 %v5348_v13  ;;  %v5257_v13 = vld [vmem:[%s8777_s8 + $0x50] sm:$0xf0] }
 0x19c   :  { %3101 = vmatpush.bf16.msrb.mxu2 %v5344_v49  ;;  %v5324_v21 = vor.u32 %v5986_v17, %v5321_v19  ;;  %v5271_v49 = vld [vmem:[%s8777_s8 + $0x60] sm:$0xf]  ;;  %v5260_v3 = vor.u32 %v5970_v8, %v5257_v13  ;;  %v5968_v19 = vld [vmem:[%s8777_s8 + $0x2c] sm:$0xf0]  ;;  %v6007_v8 = vld [vmem:[%s8780_s10 + $0x68] sm:$0xff] }
 0x19d   :  { %v2391_v24 = vpop.f32.mrf.mxu3  ;;  %v5239_v17 = vld [vmem:[%s8777_s8 + $0x20] sm:$0xf] }
 0x19e   :  { %v2378_v22 = vpop.f32.mrf.mxu2  ;;  %3089 = vmatpush.bf16.msrb.mxu1 %v5324_v21  ;;  %v5240_v21 = vor.u32 %v5968_v19, %v5239_v17  ;;  %v6006_v13 = vld [vmem:[%s8780_s10 + $0x60] sm:$0xff]  ;;  %v6005_v17 = vld [vmem:[%s8780_s10 + $0x58] sm:$0xff]  ;;  %v6012_v19 = vld [vmem:[%s8780_s10 + $0x90] sm:$0xff] }
 0x19f   :  { %v2379_v11 = vadd.f32 %v2378_v22, %v2366_v30  ;;  %v5332_v22 = vor.u32 %v5987_v20, %v5329_v4 }
 0x1a0   :  { %3102 = vmatpush.bf16.msrb.mxu2 %v5328_v57  ;;  %v5248_v57 = vor.u32 %v5969_v55, %v5247_v50  ;;  %v6058_v50 = vld [vmem:[%s8776_s7] ss:$0 sm:$0xff] }
 0x1a1   :  { %v2392_v34 = vadd.f32 %v2391_v24, %v2379_v11  ;;  %v5303_v24 = vld [vmem:[%s8777_s8 + $0xa0] sm:$0xf]  ;;  %3115 = vmatpush.bf16.msrb.mxu3 %v5332_v22  ;;  %v5305_v11 = vld [vmem:[%s8777_s8 + $0xb0] sm:$0xf0]  ;;  %v5966_v22 = vld [vmem:[%s8777_s8 + $0x24] sm:$0xf] }
 0x1a4   :  { %3103 = vmatpush.bf16.msrb.mxu2 %v5312_v56  ;;  %v5231_v56 = vld [vmem:[%s8777_s8 + $0x8] sm:$0xf] }
 0x1a5   :  { %v2393_v28 = vpop.f32.mrf.mxu3  ;;  %v5232_v12 = vor.u32 %v5965_v5, %v5231_v56  ;;  %v6015_v56 = vld [vmem:[%s8780_s10 + $0xa8] sm:$0xff] }
 0x1a6   :  { %v2380_v27 = vpop.f32.mrf.mxu2  ;;  %v5304_v28 = vor.u32 %v5984_v25, %v5303_v24  ;;  %v5241_v24 = vld [vmem:[%s8777_s8 + $0x30] sm:$0xf0]  ;;  %v5967_v25 = vld [vmem:[%s8777_s8 + $0x2c] sm:$0xf] }
 0x1a7   :  { %v5999_v5 = vld [vmem:[%s8780_s10 + $0x28] sm:$0xff] }
 0x1a8   :  { %3104 = vmatpush.bf16.msrb.mxu2 %v5296_v16  ;;  %3077 = vmatpush.bf16.msrb.mxu0 %v5304_v28  ;;  %v2871_v16 = vld [vmem:[%s8778_s1] sm:$0xff] }
 0x1a9   :  { %v2872_v20 = vpack.c.bf16 %v2871_v16, %v2871_v16  ;;  %v5223_v28 = vld [vmem:[%s8777_s8] sm:$0xf]  ;;  %v6023_v16 = vld [vmem:[%s8780_s10 + $0xe8] sm:$0xff] }
 0x1b0   :  { %v2404_v31 = vpop.f32.mrf.mxu0 }
 0x1b1   :  { %v2405_v7 = vadd.f32 %v2404_v31, %v2392_v34  ;;  %v5280_v31 = vor.u32 %v5977_v29, %v5279_v26  ;;  %v5308_v34 = vor.u32 %v5982_v32, %v5305_v11  ;;  %v5244_v26 = vor.u32 %v5966_v22, %v5241_v24  ;;  %v5964_v29 = vld [vmem:[%s8777_s8 + $0xc] sm:$0xf0]  ;;  %v5962_v11 = vld [vmem:[%s8777_s8 + $0x4] sm:$0xf]  ;;  %v6011_v24 = vld [vmem:[%s8780_s10 + $0x88] sm:$0xff] }
 0x1b2   :  { %v6004_v22 = vld [vmem:[%s8780_s10 + $0x50] sm:$0xff] }
 0x1b3   :  { %v2417_v33 = vpop.f32.mrf.mxu1  ;;  %3105 = vmatpush.bf16.msrb.mxu2 %v5280_v31  ;;  %3090 = vmatpush.bf16.msrb.mxu1 %v5308_v34  ;;  %v5224_v31 = vor.u32 %v5964_v29, %v5223_v28  ;;  %v5963_v34 = vld [vmem:[%s8777_s8 + $0xc] sm:$0xf] }
 0x1b4   :  { %v2418_v54 = vadd.f32 %v2417_v33, %v2405_v7  ;;  %v5983_v33 = vld [vmem:[%s8777_s8 + $0xac] sm:$0xf] }
 0x1b5   :  { %v5316_v7 = vor.u32 %v5983_v33, %v5313_v48  ;;  %v5225_v33 = vld [vmem:[%s8777_s8 + $0x10] sm:$0xf0] }
 0x1b7   :  { %3116 = vmatpush.bf16.msrb.mxu3 %v5316_v7 }
 0x1b8   :  { %v2406_v35 = vpop.f32.mrf.mxu0 }
 0x1b9   :  { %v5287_v35 = vld [vmem:[%s8777_s8 + $0x80] sm:$0xf] }
 0x1bb   :  { %v2419_v10 = vpop.f32.mrf.mxu1 }
 0x1bc   :  { %v5980_v10 = vld [vmem:[%s8777_s8 + $0x8c] sm:$0xf0] }
 0x1bd   :  { %v2443_v40 = vpop.f32.mrf.mxu3 }
 0x1be   :  { %v2430_v37 = vpop.f32.mrf.mxu2 }
 0x1bf   :  { %v2431_v39 = vadd.f32 %v2430_v37, %v2418_v54  ;;  %v5288_v37 = vor.u32 %v5980_v10, %v5287_v35  ;;  %v5233_v35 = vld [vmem:[%s8777_s8 + $0x18] sm:$0xf0] }
 0x1c0   :  { %v5236_v10 = vor.u32 %v5963_v34, %v5233_v35  ;;  %v6020_v34 = vld [vmem:[%s8780_s10 + $0xd0] sm:$0xff]  ;;  %v6002_v35 = vld [vmem:[%s8780_s10 + $0x40] sm:$0xff] }
 0x1c1   :  { %v2444_v42 = vadd.f32 %v2443_v40, %v2431_v39  ;;  %v5264_v40 = vor.u32 %v5973_v38, %v5263_v36  ;;  %3078 = vmatpush.bf16.msrb.mxu0 %v5288_v37 }
 0x1c3   :  { %v2553_v41 = vmax.f32 %v2444_v42, 0.0  ;;  %v5978_v42 = vld [vmem:[%s8777_s8 + $0x84] sm:$0xf]  ;;  %3106 = vmatpush.bf16.msrb.mxu2 %v5264_v40 }
 0x1c5   :  { %v2557_v47 = vpack.c.bf16 %v2553_v41, %v2553_v41  ;;  %v2445_v53 = vpop.f32.mrf.mxu3  ;;  %v5289_v41 = vld [vmem:[%s8777_s8 + $0x90] sm:$0xf0] }
 0x1c6   :  { %v2432_v0 = vpop.f32.mrf.mxu2  ;;  %v5292_v58 = vor.u32 %v5978_v42, %v5289_v41  ;;  %v850_v53 = vperm.slane %v8124_v46, 3  ;;  %v5975_v46 = vld [vmem:[%s8777_s8 + $0x6c] sm:$0xf] }
 0x1c7   :  { %2853 = vmatmul.bf16.vlgmr.msra.gmra.mxu2 %v2557_v47  ;;  %v5300_v47 = vor.u32 %v5979_v45, %v5297_v43  ;;  %v5976_v0 = vld [vmem:[%s8777_s8 + $0x6c] sm:$0xf0]  ;;  %v5284_v63 = vor.u32 %v5975_v46, %v5281_v59  ;;  %v6001_v46 = vld [vmem:[%s8780_s10 + $0x38] sm:$0xff] }
 0x1c8   :  { %3091 = vmatpush.bf16.msrb.mxu1 %v5292_v58  ;;  %v5272_v18 = vor.u32 %v5976_v0, %v5271_v49  ;;  %3107 = vmatpush.bf16.msrb.mxu2 %v5248_v57  ;;  %v6016_v59 = vld [vmem:[%s8780_s10 + $0xb0] sm:$0xff] }
 0x1c9   :  { %3117 = vmatpush.bf16.msrb.mxu3 %v5300_v47 }
 0x1ca   :  { %3079 = vmatpush.bf16.msrb.mxu0 %v5272_v18 }
 0x1cc   :  { %3092 = vmatpush.bf16.msrb.mxu1 %v5276_v52  ;;  %3108 = vmatpush.bf16.msrb.mxu2 %v5232_v12  ;;  %v6009_v52 = vld [vmem:[%s8780_s10 + $0x78] sm:$0xff]  ;;  %v5998_v12 = vld [vmem:[%s8780_s10 + $0x20] sm:$0xff] }
 0x1cd   :  { %3118 = vmatpush.bf16.msrb.mxu3 %v5284_v63  ;;  %v6008_v63 = vld [vmem:[%s8780_s10 + $0x70] sm:$0xff] }
 0x1ce   :  { %3080 = vmatpush.bf16.msrb.mxu0 %v5256_v1  ;;  %v6024_v1 = vld [vmem:[%s8780_s10 + $0xf0] sm:$0xff] }
 0x1d0   :  { %v8307_v60 = vpop.f32.mrf.mxu0  ;;  %3093 = vmatpush.bf16.msrb.mxu1 %v5260_v3  ;;  %3421 = vmatpush.bf16.msra.mxu2 %v6017_v23  ;;  %v6041_v23 = vld [vmem:[%s8782_s13 + $0x34] sm:$0xf0] }
 0x1d1   :  { %v2457_v4 = vadd.f32 %v8307_v60, %v850_v53  ;;  %3119 = vmatpush.bf16.msrb.mxu3 %v5268_v51  ;;  %v5249_v60 = vld [vmem:[%s8777_s8 + $0x38] sm:$0xf0] }
 0x1d2   :  { %3081 = vmatpush.bf16.msrb.mxu0 %v5240_v21  ;;  %v5997_v51 = vld [vmem:[%s8780_s10 + $0x18] sm:$0xff]  ;;  %v6022_v21 = vld [vmem:[%s8780_s10 + $0xe0] sm:$0xff] }
 0x1d3   :  { %v8318_v2 = vpop.f32.mrf.mxu1 }
 0x1d4   :  { %3094 = vmatpush.bf16.msrb.mxu1 %v5244_v26  ;;  %3422 = vmatpush.bf16.msra.mxu2 %v6016_v59  ;;  %v5995_v26 = vld [vmem:[%s8780_s10 + $0x8] sm:$0xff]  ;;  %v5505_v59 = vld [vmem:[%s8782_s13 + $0x38] sm:$0xf0] }
 0x1d6   :  { %3082 = vmatpush.bf16.msrb.mxu0 %v5224_v31  ;;  %v6010_v31 = vld [vmem:[%s8780_s10 + $0x80] sm:$0xff] }
 0x1d7   :  { %3109 = vmatmul.bf16.vlgmr.msrb.gmra.mxu2 %v2872_v20 }
 0x1d8   :  { %v2458_v27 = vpop.f32.mrf.mxu0  ;;  %3423 = vmatpush.bf16.msra.mxu2 %v6015_v56  ;;  %v6038_v56 = vld [vmem:[%s8782_s13 + $0x24] sm:$0xf] }
 0x1d9   :  { %v5252_v27 = vor.u32 %v5967_v25, %v5249_v60  ;;  %3083 = vmatmul.bf16.vlgmr.msrb.gmra.mxu0 %v2872_v20  ;;  %v6021_v60 = vld [vmem:[%s8780_s10 + $0xd8] sm:$0xff] }
 0x1da   :  { %3395 = vmatpush.bf16.msra.mxu0 %v6001_v46 }
 0x1db   :  { %v2471_v30 = vpop.f32.mrf.mxu1  ;;  %3120 = vmatpush.bf16.msrb.mxu3 %v5252_v27 }
 0x1dc   :  { %v2470_v30 = vadd.f32 %v8318_v2, %v2457_v4  ;;  %v5228_v2 = vor.u32 %v5962_v11, %v5225_v33  ;;  %v2905_v4 = vld [vmem:[%s8781_s9] sm:$0xf] }
 0x1dd   :  { %v8391_v39 = vpop.f32.mrf.mxu3  ;;  %v2909_v25 = vperm.slane %v2905_v4, 2  ;;  %v2907_v28 = vperm.slane %v2905_v4, 0  ;;  %v2908_v29 = vperm.slane %v2905_v4, 1  ;;  %v5994_v33 = vld [vmem:[%s8780_s10] sm:$0xff] }
 0x1de   :  { %v8386_v54 = vpop.f32.mrf.mxu2  ;;  %3095 = vmatpush.bf16.msrb.mxu1 %v5228_v2  ;;  %3396 = vmatpush.bf16.msra.mxu0 %v6000_v61  ;;  %v5495_v61 = vld [vmem:[%s8782_s13 + $0x20] sm:$0xf] }
 0x1df   :  { %v2483_v48 = vadd.f32 %v8386_v54, %v2470_v30  ;;  %3121 = vmatpush.bf16.msrb.mxu3 %v5236_v10  ;;  %v6003_v30 = vld [vmem:[%s8780_s10 + $0x48] sm:$0xff] }
 0x1e1   :  { %v2496_v36 = vadd.f32 %v8391_v39, %v2483_v48  ;;  %3096 = vmatmul.bf16.vlgmr.msrb.gmra.mxu1 %v2872_v20 }
 0x1e2   :  { %3408 = vmatpush.bf16.msra.mxu1 %v6009_v52  ;;  %3397 = vmatpush.bf16.msra.mxu0 %v5999_v5  ;;  %v6040_v52 = vld [vmem:[%s8782_s13 + $0x34] sm:$0xf]  ;;  %v5497_v5 = vld [vmem:[%s8782_s13 + $0x28] sm:$0xf0] }
 0x1e5   :  { %v2497_v15 = vpop.f32.mrf.mxu3 }
 0x1e6   :  { %v2484_v9 = vpop.f32.mrf.mxu2  ;;  %3409 = vmatpush.bf16.msra.mxu1 %v6008_v63  ;;  %3398 = vmatpush.bf16.msra.mxu0 %v5998_v12  ;;  %v6039_v63 = vld [vmem:[%s8782_s13 + $0x24] sm:$0xf0]  ;;  %v6037_v12 = vld [vmem:[%s8782_s13 + $0x14] sm:$0xf0] }
 0x1e7   :  { %v6014_v9 = vld [vmem:[%s8780_s10 + $0xa0] sm:$0xff] }
 0x1e8   :  { %3424 = vmatpush.bf16.msra.mxu2 %v6014_v9  ;;  %v5487_v9 = vld [vmem:[%s8782_s13 + $0x10] sm:$0xf] }
 0x1ea   :  { %3410 = vmatpush.bf16.msra.mxu1 %v6007_v8  ;;  %3399 = vmatpush.bf16.msra.mxu0 %v5997_v51  ;;  %v5500_v8 = vor.u32 %v6038_v56, %v5497_v5  ;;  %v6044_v56 = vld [vmem:[%s8784_s15 + $0x10] sm:$0xff] }
 0x1eb   :  { %v6052_v5 = vld [vmem:[%s8784_s15 + $0x50] sm:$0xff] }
 0x1ec   :  { %3425 = vmatpush.bf16.msra.mxu2 %v6013_v44  ;;  %v6036_v44 = vld [vmem:[%s8782_s13 + $0x14] sm:$0xf] }
 0x1ee   :  { %3411 = vmatpush.bf16.msra.mxu1 %v6006_v13  ;;  %v5488_v13 = vor.u32 %v6037_v12, %v5487_v9  ;;  %v6051_v9 = vld [vmem:[%s8784_s15 + $0x48] sm:$0xff]  ;;  %v6042_v12 = vld [vmem:[%s8784_s15] sm:$0xff] }
 0x1f0   :  { %v2508_v32 = vpop.f32.mrf.mxu0  ;;  %3426 = vmatpush.bf16.msra.mxu2 %v6012_v19 }
 0x1f1   :  { %v2509_v37 = vadd.f32 %v2508_v32, %v2496_v36 }
 0x1f2   :  { %3412 = vmatpush.bf16.msra.mxu1 %v6005_v17 }
 0x1f3   :  { %v2521_v7 = vpop.f32.mrf.mxu1 }
 0x1f4   :  { %v2522_v42 = vadd.f32 %v2521_v7, %v2509_v37  ;;  %3427 = vmatpush.bf16.msra.mxu2 %v6011_v24 }
 0x1f6   :  { %3413 = vmatpush.bf16.msra.mxu1 %v6004_v22  ;;  %v6034_v22 = vld [vmem:[%s8782_s13 + $0x4] sm:$0xf] }
 0x1f8   :  { %v2510_v38 = vpop.f32.mrf.mxu0  ;;  %3428 = vmatpush.bf16.msra.mxu2 %v6010_v31 }
 0x1fa   :  { %3414 = vmatpush.bf16.msra.mxu1 %v6003_v30  ;;  %v5539_v30 = vld [vmem:[%s8783_s12 + $0x38] sm:$0xf0] }
 0x1fb   :  { %v2523_v40 = vpop.f32.mrf.mxu1 }
 0x1fd   :  { %v2547_v45 = vpop.f32.mrf.mxu3 }
 0x1fe   :  { %v2534_v41 = vpop.f32.mrf.mxu2  ;;  %3415 = vmatpush.bf16.msra.mxu1 %v6002_v35 }
 0x1ff   :  { %v2535_v54 = vadd.f32 %v2534_v41, %v2522_v42  ;;  %v6019_v42 = vld [vmem:[%s8780_s10 + $0xc8] sm:$0xff] }
 0x201   :  { %v2548_v58 = vadd.f32 %v2547_v45, %v2535_v54 }
 0x203   :  { %v2554_v43 = vmax.f32 %v2548_v58, 0.0 }
 0x205   :  { %v2558_v47 = vpack.c.bf16 %v2554_v43, %v2554_v43  ;;  %v2549_v0 = vpop.f32.mrf.mxu3  ;;  %v6018_v43 = vld [vmem:[%s8780_s10 + $0xc0] sm:$0xff] }
 0x206   :  { %v2536_v49 = vpop.f32.mrf.mxu2 }
 0x207   :  { %2866 = vmatmul.bf16.vlgmr.msra.gmra.mxu3 %v2558_v47 }
 0x208   :  { %3434 = vmatpush.bf16.msra.mxu3 %v6025_v62  ;;  %v5508_v62 = vor.u32 %v6040_v52, %v5505_v59  ;;  %v6047_v59 = vld [vmem:[%s8784_s15 + $0x28] sm:$0xff] }
 0x20c   :  { %3435 = vmatpush.bf16.msra.mxu3 %v6024_v1  ;;  %v5496_v1 = vor.u32 %v6039_v63, %v5495_v61  ;;  %v6055_v61 = vld [vmem:[%s8784_s15 + $0x68] sm:$0xff]  ;;  %v6045_v63 = vld [vmem:[%s8784_s15 + $0x18] sm:$0xff] }
 0x210   :  { %v2828_v53 = vpop.f32.mrf.mxu0  ;;  %3436 = vmatpush.bf16.msra.mxu3 %v6023_v16 }
 0x211   :  { %v2829_v39 = vadd.f32 %v6058_v50, %v2828_v53  ;;  %v2841_v18 = vpop.f32.mrf.mxu1  ;;  %v2910_v50 = vperm.slane %v2905_v4, 3  ;;  %v6035_v4 = vld [vmem:[%s8782_s13 + $0x4] sm:$0xf0] }
 0x213   :  { %v2842_v55 = vadd.f32 %v2841_v18, %v2829_v39 }
 0x214   :  { %3437 = vmatpush.bf16.msra.mxu3 %v6022_v21  ;;  %v5479_v21 = vld [vmem:[%s8782_s13] sm:$0xf] }
 0x215   :  { %v5480_v24 = vor.u32 %v6035_v4, %v5479_v21 }
 0x217   :  { %3122 = vmatmul.bf16.vlgmr.msrb.gmra.mxu3 %v2872_v20  ;;  %v5996_v20 = vld [vmem:[%s8780_s10 + $0x10] sm:$0xff] }
 0x218   :  { %v2830_v57 = vpop.f32.mrf.mxu0  ;;  %3400 = vmatpush.bf16.msra.mxu0 %v5996_v20  ;;  %3438 = vmatpush.bf16.msra.mxu3 %v6021_v60  ;;  %v5537_v60 = vld [vmem:[%s8783_s12 + $0x30] sm:$0xf] }
 0x219   :  { %v2843_v6 = vpop.f32.mrf.mxu1 }
 0x21a   :  { %v5503_v6 = vld [vmem:[%s8782_s13 + $0x30] sm:$0xf] }
 0x21b   :  { %v5504_v46 = vor.u32 %v6041_v23, %v5503_v6 }
 0x21c   :  { %3401 = vmatpush.bf16.msra.mxu0 %v5995_v26  ;;  %3439 = vmatpush.bf16.msra.mxu3 %v6020_v34 }
 0x21d   :  { %3513 = vmatpush.bf16.msrb.mxu2 %v5504_v46 }
 0x220   :  { %3402 = vmatpush.bf16.msra.mxu0 %v5994_v33  ;;  %3440 = vmatpush.bf16.msra.mxu3 %v6019_v42  ;;  %v6030_v33 = vld [vmem:[%s8783_s12 + $0x24] sm:$0xf]  ;;  %v6027_v42 = vld [vmem:[%s8783_s12 + $0x4] sm:$0xf0] }
 0x221   :  { %3514 = vmatpush.bf16.msrb.mxu2 %v5496_v1  ;;  %v6053_v1 = vld [vmem:[%s8784_s15 + $0x58] sm:$0xff] }
 0x224   :  { %3441 = vmatpush.bf16.msra.mxu3 %v6018_v43  ;;  %v6059_v43 = vld [vmem:[%s8779_s11] ss:$0 sm:$0xff] }
 0x225   :  { %3515 = vmatpush.bf16.msrb.mxu2 %v5488_v13  ;;  %v6050_v13 = vld [vmem:[%s8784_s15 + $0x40] sm:$0xff] }
 0x228   :  { %3526 = vmatpush.bf16.msrb.mxu3 %v5508_v62  ;;  %v6046_v62 = vld [vmem:[%s8784_s15 + $0x20] sm:$0xff] }
 0x229   :  { %3516 = vmatpush.bf16.msrb.mxu2 %v5480_v24 }
 0x22c   :  { %3527 = vmatpush.bf16.msrb.mxu3 %v5500_v8  ;;  %v6043_v8 = vld [vmem:[%s8784_s15 + $0x8] sm:$0xff] }
 0x24a   :  { %v2854_v14 = vpop.f32.mrf.mxu2 }
 0x24b   :  { %v2855_v15 = vadd.f32 %v2854_v14, %v2842_v55  ;;  %v5489_v14 = vld [vmem:[%s8782_s13 + $0x18] sm:$0xf0] }
 0x252   :  { %v2856_v3 = vpop.f32.mrf.mxu2 }
 0x256   :  { %v3084_v11 = vpop.f32.mrf.mxu0 }
 0x257   :  { %v3085_v48 = vadd.f32 %v3084_v11, %v2907_v28  ;;  %v6032_v28 = vld [vmem:[%s8783_s12 + $0x34] sm:$0xf]  ;;  %v6031_v11 = vld [vmem:[%s8783_s12 + $0x24] sm:$0xf0] }
 0x258   :  { %v5542_v31 = vor.u32 %v6032_v28, %v5539_v30  ;;  %v24_v30 = vstv %s8788_s18 }
 0x259   :  { %v3127_v10 = vmax.f32 %v3085_v48, 0.0  ;;  %v5531_v48 = vld [vmem:[%s8783_s12 + $0x28] sm:$0xf0]  ;;  %25 = vst [vmem:[#allocation2] sm:$0x1] %v24_v30 }
 0x25a   :  { %v3110_v27 = vpop.f32.mrf.mxu2  ;;  %v5534_v35 = vor.u32 %v6030_v33, %v5531_v48  ;;  %v6061_v48 = vld [vmem:[%s8787_s17] ss:$0 sm:$0xff] }
 0x25b   :  { %v3111_v32 = vadd.f32 %v3110_v27, %v2909_v25  ;;  %v3131_v38 = vpack.c.bf16 %v3127_v10, %v3127_v10  ;;  %v5481_v25 = vld [vmem:[%s8782_s13 + $0x8] sm:$0xf0]  ;;  %v6033_v27 = vld [vmem:[%s8783_s12 + $0x34] sm:$0xf0]  ;;  %v6028_v10 = vld [vmem:[%s8783_s12 + $0x14] sm:$0xf] }
 0x25c   :  { %v5484_v26 = vor.u32 %v6034_v22, %v5481_v25 }
 0x25d   :  { %v3129_v7 = vmax.f32 %v3111_v32, 0.0  ;;  %3403 = vmatmul.bf16.vlgmr.msra.gmra.mxu0 %v3131_v38  ;;  %v5529_v32 = vld [vmem:[%s8783_s12 + $0x20] sm:$0xf] }
 0x25e   :  { %v3097_v2 = vpop.f32.mrf.mxu1  ;;  %v3086_v45 = vpop.f32.mrf.mxu0  ;;  %v5530_v34 = vor.u32 %v6031_v11, %v5529_v32 }
 0x25f   :  { %v3098_v36 = vadd.f32 %v3097_v2, %v2908_v29  ;;  %v3133_v37 = vpack.c.bf16 %v3129_v7, %v3129_v7  ;;  %v5538_v29 = vor.u32 %v6033_v27, %v5537_v60  ;;  %v5521_v7 = vld [vmem:[%s8783_s12 + $0x10] sm:$0xf]  ;;  %v6029_v2 = vld [vmem:[%s8783_s12 + $0x14] sm:$0xf0] }
 0x261   :  { %v3128_v40 = vmax.f32 %v3098_v36, 0.0  ;;  %3429 = vmatmul.bf16.vlgmr.msra.gmra.mxu2 %v3133_v37  ;;  %v5523_v36 = vld [vmem:[%s8783_s12 + $0x18] sm:$0xf0]  ;;  %v5522_v37 = vor.u32 %v6029_v2, %v5521_v7 }
 0x262   :  { %v3112_v54 = vpop.f32.mrf.mxu2  ;;  %3582 = vmatpush.bf16.msra.mxu2 %v5538_v29  ;;  %v5526_v38 = vor.u32 %v6028_v10, %v5523_v36 }
 0x263   :  { %v3132_v41 = vpack.c.bf16 %v3128_v40, %v3128_v40  ;;  %v5513_v40 = vld [vmem:[%s8783_s12] sm:$0xf]  ;;  %v5515_v54 = vld [vmem:[%s8783_s12 + $0x8] sm:$0xf0] }
 0x264   :  { %v5514_v45 = vor.u32 %v6027_v42, %v5513_v40 }
 0x265   :  { %3416 = vmatmul.bf16.vlgmr.msra.gmra.mxu1 %v3132_v41  ;;  %v6026_v41 = vld [vmem:[%s8783_s12 + $0x4] sm:$0xf] }
 0x266   :  { %v3099_v58 = vpop.f32.mrf.mxu1  ;;  %3583 = vmatpush.bf16.msra.mxu2 %v5530_v34 }
 0x267   :  { %v5518_v58 = vor.u32 %v6026_v41, %v5515_v54 }
 0x26a   :  { %3584 = vmatpush.bf16.msra.mxu2 %v5522_v37  ;;  %v6062_v37 = vld [vmem:[#allocation2] ss:$0 sm:$0xff] }
 0x26e   :  { %3585 = vmatpush.bf16.msra.mxu2 %v5514_v45 }
 0x28a   :  { %v2867_v47 = vpop.f32.mrf.mxu3 }
 0x28b   :  { %v8599_v49 = vadd.f32 %v2867_v47, %v2855_v15  ;;  %v5492_v15 = vor.u32 %v6036_v44, %v5489_v14 }
 0x28d   :  { %3528 = vmatpush.bf16.msrb.mxu3 %v5492_v15  ;;  %v3447_v52 = vpack.c.bf16 %v8599_v49, %v8599_v49  ;;  %v6054_v49 = vld [vmem:[%s8784_s15 + $0x60] sm:$0xff] }
 0x291   :  { %3529 = vmatpush.bf16.msrb.mxu3 %v5484_v26 }
 0x292   :  { %v2869_v0 = vpop.f32.mrf.mxu3 }
 0x293   :  { %v6049_v0 = vld [vmem:[%s8784_s15 + $0x38] sm:$0xff] }
 0x294   :  { %3748 = vmatpush.bf16.msrb.mxu0 %v6049_v0 }
 0x29a   :  { %v3123_v53 = vpop.f32.mrf.mxu3 }
 0x29b   :  { %v3124_v39 = vadd.f32 %v3123_v53, %v2910_v50  ;;  %v6057_v50 = vld [vmem:[%s8784_s15 + $0x78] sm:$0xff]  ;;  %v6048_v53 = vld [vmem:[%s8784_s15 + $0x30] sm:$0xff] }
 0x29c   :  { %3761 = vmatpush.bf16.msrb.mxu1 %v6057_v50  ;;  %3749 = vmatpush.bf16.msrb.mxu0 %v6048_v53 }
 0x29d   :  { %v3130_v18 = vmax.f32 %v3124_v39, 0.0  ;;  %v6056_v39 = vld [vmem:[%s8784_s15 + $0x70] sm:$0xff] }
 0x29f   :  { %v3134_v55 = vpack.c.bf16 %v3130_v18, %v3130_v18 }
 0x2a0   :  { %3762 = vmatpush.bf16.msrb.mxu1 %v6056_v39  ;;  %3750 = vmatpush.bf16.msrb.mxu0 %v6047_v59 }
 0x2a1   :  { %3442 = vmatmul.bf16.vlgmr.msra.gmra.mxu3 %v3134_v55 }
 0x2a2   :  { %v3125_v57 = vpop.f32.mrf.mxu3  ;;  %3595 = vmatpush.bf16.msra.mxu3 %v5542_v31  ;;  %v6060_v31 = vld [vmem:[%s8785_s16] ss:$0 sm:$0xff] }
 0x2a4   :  { %3763 = vmatpush.bf16.msrb.mxu1 %v6055_v61  ;;  %3751 = vmatpush.bf16.msrb.mxu0 %v6046_v62 }
 0x2a6   :  { %3596 = vmatpush.bf16.msra.mxu3 %v5534_v35 }
 0x2a8   :  { %3764 = vmatpush.bf16.msrb.mxu1 %v6054_v49  ;;  %3752 = vmatpush.bf16.msrb.mxu0 %v6045_v63 }
 0x2aa   :  { %3597 = vmatpush.bf16.msra.mxu3 %v5526_v38 }
 0x2ac   :  { %3765 = vmatpush.bf16.msrb.mxu1 %v6053_v1  ;;  %3753 = vmatpush.bf16.msrb.mxu0 %v6044_v56 }
 0x2ae   :  { %3598 = vmatpush.bf16.msra.mxu3 %v5518_v58 }
 0x2b0   :  { %3766 = vmatpush.bf16.msrb.mxu1 %v6052_v5  ;;  %3754 = vmatpush.bf16.msrb.mxu0 %v6043_v8 }
 0x2b4   :  { %3767 = vmatpush.bf16.msrb.mxu1 %v6051_v9  ;;  %3755 = vmatpush.bf16.msrb.mxu0 %v6042_v12 }
 0x2b8   :  { %3768 = vmatpush.bf16.msrb.mxu1 %v6050_v13 }
 0x2da   :  { %v3404_v3 = vpop.f32.mrf.mxu0 }
 0x2db   :  { %v3405_v47 = vadd.f32 %v6059_v43, %v3404_v3 }
 0x2e2   :  { %v3417_v51 = vpop.f32.mrf.mxu1  ;;  %v3406_v17 = vpop.f32.mrf.mxu0 }
 0x2e3   :  { %v3418_v18 = vadd.f32 %v3417_v51, %v3405_v47  ;;  %v3604_v51 = vld [vmem:[%s8786_s14] sm:$0x3] }
 0x2e4   :  { %v3430_v16 = vpop.f32.mrf.mxu2  ;;  %v3607_v17 = vperm.slane %v3604_v51, 1 }
 0x2e5   :  { %v3431_v55 = vadd.f32 %v3430_v16, %v3418_v18  ;;  %v3606_v16 = vperm.slane %v3604_v51, 0 }
 0x2ea   :  { %v3419_v19 = vpop.f32.mrf.mxu1 }
 0x2ec   :  { %v3432_v20 = vpop.f32.mrf.mxu2 }
 0x324   :  { %v3443_v57 = vpop.f32.mrf.mxu3 }
 0x325   :  { %v3444_v6 = vadd.f32 %v3443_v57, %v3431_v55 }
 0x327   :  { %v3456_v23 = vpack.c.bf16 %v3444_v6, %v3444_v6 }
 0x329   :  { %5509 = vmatmul.msk.bf16.vlgmr.msrb.gmra.mxu2 %vm3505_vm0, %v3456_v23  ;;  %5510 = vmatmul.msk.bf16.vlgmr.msrb.gmra.mxu3 %vm3505_vm0, %v3456_v23 }
 0x32c   :  { %v3445_v46 = vpop.f32.mrf.mxu3 }
 0x339   :  { %5543 = vmatmul.msk.bf16.vlgmr.msra.gmra.mxu2 %vm3505_vm0, %v3447_v52  ;;  %5544 = vmatmul.msk.bf16.vlgmr.msra.gmra.mxu3 %vm3505_vm0, %v3447_v52 }
 0x3ac   :  { %v3518_v44 = vpop.f32.mrf.mxu2  ;;  %v3531_v14 = vpop.f32.mrf.mxu3 }
 0x3b4   :  { %v3520_v15 = vpop.f32.mrf.mxu2  ;;  %v3533_v3 = vpop.f32.mrf.mxu3 }
 0x3bc   :  { %v3587_v19 = vpop.f32.mrf.mxu2  ;;  %v3600_v20 = vpop.f32.mrf.mxu3 }
 0x3bd   :  { %v3588_v21 = vadd.f32 %v3587_v19, %v3518_v44  ;;  %v3601_v4 = vadd.f32 %v3600_v20, %v3531_v14 }
 0x3bf   :  { %v3610_v22 = vadd.f32 %v3606_v16, %v3588_v21  ;;  %v3611_v24 = vadd.f32 %v3607_v17, %v3601_v4 }
 0x3c1   :  { %v3612_v25 = vmax.f32 %v3610_v22, 0.0  ;;  %v3613_v26 = vmax.f32 %v3611_v24, 0.0 }
 0x3c3   :  { %v3614_v60 = vpack.c.bf16 %v3612_v25, %v3612_v25  ;;  %v3615_v27 = vpack.c.bf16 %v3613_v26, %v3613_v26 }
 0x3c4   :  { %v3589_v28 = vpop.f32.mrf.mxu2  ;;  %v3602_v29 = vpop.f32.mrf.mxu3 }
 0x3c5   :  { %3756 = vmatmul.bf16.vlgmr.msrb.gmra.mxu0 %v3614_v60  ;;  %3769 = vmatmul.bf16.vlgmr.msrb.gmra.mxu1 %v3615_v27 }
 0x442   :  { %v3757_v32 = vpop.f32.mrf.mxu0  ;;  %v3770_v11 = vpop.f32.mrf.mxu1 }
 0x443   :  { %v3758_v33 = vadd.f32 %v6060_v31, %v3757_v32 }
 0x445   :  { %v3771_v34 = vadd.f32 %v3770_v11, %v3758_v33 }
 0x447   :  { %v3774_v7 = vmax.f32 %v3771_v34, 0.0 }
 0x449   :  { %v3779_v2 = vmul.f32 %v6061_v48, %v3774_v7 }
 0x44a   :  { %v3759_v35 = vpop.f32.mrf.mxu0  ;;  %v3772_v10 = vpop.f32.mrf.mxu1 }
 0x44b   :  { %v3780_v36 = vsel %vm3505_vm0, %v3779_v2, 0.0 }
 0x44c   :  { %3781 = vadd.xlane.f32.xlu0 %v3780_v36 }
 0x4bf   :  { %v3782_v38 = vpop.xlane.xlu0 %3781 }
 0x4c0   :  { %v3787_v40 = vadd.f32 %v6062_v37, %v3782_v38 }
 0x4c2   :  { %v5609_v42 = vmul.f32 -1.442695, %v3787_v40 }
 0x4c4   :  { %6063 = vpow2.f32 %v5609_v42 }
 0x4ca   :  { %v6064_v41 = vpop.eup %6063 }
 0x4cb   :  { %v3791_v54 = vadd.f32 1.0, %v6064_v41 }
 0x4cd   :  { %6065 = vrcp.f32 %v3791_v54  ;;  %v3803_v47 = vand.u32 2147483648, %v3791_v54  ;;  %v3801_v50 = vand.u32 2147483647, %v3791_v54  ;;  %vm3797_vm2 = vweird.f32 %v3791_v54 }
 0x4cf   :  { %v3804_v39 = vor.u32 1.1754944e-38, %v3803_v47  ;;  %vm3802_vm5 = vcmp.eq.f32.partialorder %v3801_v50, 8.507059e+37 }
 0x4d3   :  { %v6066_v45 = vpop.eup %6065 }
 0x4d4   :  { %v3793_v58 = vmul.f32 %v6066_v45, %v3791_v54  ;;  %vm3798_vm1 = vweird.f32 %v6066_v45 }
 0x4d5   :  { %vm3799_vm3 = vmor %vm3797_vm2, %vm3798_vm1 }
 0x4d6   :  { %v3794_v43 = vsub.f32 1.0, %v3793_v58 }
 0x4d8   :  { %v3795_v0 = vmul.f32 %v6066_v45, %v3794_v43 }
 0x4da   :  { %v3796_v53 = vadd.f32 %v6066_v45, %v3795_v0 }
 0x4dc   :  { %v3800_v18 = vsel %vm3799_vm3, %v6066_v45, %v3796_v53 }
 0x4dd   :  { %v3805_v55 = vsel %vm3802_vm5, %v3804_v39, %v3800_v18 }
 0x4de   :  { %3808 = vst.msk [vmem:[%s8789_s19] sm:$0xff] %vm3807_vm4, %v3805_v55 }

</bundles_post_ra>
